<compile_context>
chip_gen: v6e
topology: v6e:2x2x1
jax: 0.10.0
libtpu: 0.0.40
codegen_flags: <defaults>
</compile_context>

<pallas_src>
import numpy as np
import jax
import jax.numpy as jnp
from jax.experimental import pallas as pl
from jax.experimental.pallas import tpu as pltpu


# ----------------------------- fused Pallas kernel ---------------------------

def lenet_fused_kernel(x_ref,
                       s1_ref, m1e_ref, m1o_ref, bc1e_ref, bc1o_ref, pr1_ref,
                       s2_ref, m2e_ref, m2o_ref, bc2e_ref, bc2o_ref, pr2_ref,
                       rf_ref, w1f_ref, b1f_ref, w2f_ref, b2f_ref, w3f_ref, b3f_ref,
                       o_ref):
    """Whole forward for one batch tile; body = bf16 MXU dots + f32 VPU ops."""
    bf16, f32 = jnp.bfloat16, jnp.float32

    def mm(a, b):
        # bf16 MXU operands, f32 accumulation; elementwise stays f32 (v5e safe).
        return jnp.dot(a.astype(bf16), b.astype(bf16), preferred_element_type=f32)

    def conv_relu_pool(a, s_ref, me_ref, mo_ref, be_ref, bo_ref, pr_ref):
        # Wide-K im2col: 5 row-shift selections concatenated along lanes, then one
        # K=640 GEMM per pool column tap (2x2 pool column taps + conv zero-padding
        # are folded into me/mo at init).  Row taps: one stacked even/odd selection
        # GEMM, then max of contiguous sublane halves; relu applied last (commutes).
        a = a.astype(bf16)                                   # hoisted operand cast
        wide = jnp.concatenate([mm(s_ref[ki], a) for ki in range(5)],
                               axis=-1).astype(bf16)         # [rows, 640]
        z = jnp.maximum(mm(wide, me_ref[...]) + be_ref[...],
                        mm(wide, mo_ref[...]) + bo_ref[...])  # f32, [rows, 128]
        t = mm(pr_ref[...], z.astype(bf16))                   # even rows | odd rows
        half = t.shape[0] // 2
        return jnp.maximum(jnp.maximum(t[:half], t[half:]), 0.0)

    a = x_ref[...]                                            # [Bt*28, 128] bf16
    p1 = conv_relu_pool(a, s1_ref, m1e_ref, m1o_ref, bc1e_ref, bc1o_ref, pr1_ref)
    p2 = conv_relu_pool(p1, s2_ref, m2e_ref, m2o_ref, bc2e_ref, bc2o_ref, pr2_ref)

    # flatten (PyTorch (C,H,W) .view order folded into w1f at init) + fc1/fc2/fc3
    p2b = p2.astype(bf16)
    widef = jnp.concatenate([mm(rf_ref[ii], p2b) for ii in range(5)],
                            axis=-1).astype(bf16)             # [Bt, 640]
    h1 = jnp.maximum(mm(widef, w1f_ref[...]) + b1f_ref[...], 0.0)
    h2 = jnp.maximum(mm(h1, w2f_ref[...]) + b2f_ref[...], 0.0)
    o_ref[...] = mm(h2, w3f_ref[...]) + b3f_ref[...]          # [Bt, 128] slab


# --------------------- one-time constant folding (init path) -----------------

_LANES = 128  # every activation slab / GEMM N dim is padded to 128 lanes


def _conv_pool_consts(w, b, bt, h_in, w_in, pad):
    """Fold Conv2d(w,b) + ReLU + 2x2 max-pool into:
         pieces_ki = S[ki] @ A ;  Wide = concat_ki pieces        (lane concat)
         z  = max(Wide @ Me + be, Wide @ Mo + bo)                (col pool folded in)
         out = relu(max(top, bottom) of PR @ z)                  (stacked row pool)
       A layout: [b*h_in + h, c*w_in + w], padded to 128 lanes."""
    oc, cin, kh, kw = w.shape
    h_conv = h_in + 2 * pad - kh + 1
    w_conv = w_in + 2 * pad - kw + 1
    h_out, w_out = h_conv // 2, w_conv // 2
    assert h_conv % 2 == 0 and w_conv % 2 == 0
    assert cin * w_in <= _LANES and oc * w_out <= _LANES

    # S[ki]: per-image row shift; conv zero-padding rows are simply absent.
    s = np.zeros((kh, bt * h_conv, bt * h_in), np.float32)
    for ki in range(kh):
        for bb in range(bt):
            for i in range(h_conv):
                h = i + ki - pad
                if 0 <= h < h_in:
                    s[ki, bb * h_conv + i, bb * h_in + h] = 1.0

    # Me/Mo: stacked Toeplitz blocks (row = ki*128 + c*w_in + wcol) with the 2x2
    # pool's even/odd column taps folded in; output cols padded to 128.
    me = np.zeros((kh * _LANES, _LANES), np.float32)
    mo = np.zeros((kh * _LANES, _LANES), np.float32)
    for ki in range(kh):
        for c in range(cin):
            for wcol in range(w_in):
                row = ki * _LANES + c * w_in + wcol
                for o in range(oc):
                    for jp in range(w_out):
                        for d, m in ((0, me), (1, mo)):
                            kj = wcol - (2 * jp + d) + pad
                            if 0 <= kj < kw:
                                m[row, o * w_out + jp] = w[o, c, ki, kj]

    be = np.zeros((1, _LANES), np.float32)
    be[0, :oc * w_out] = np.repeat(b.astype(np.float32), w_out)
    bo = be.copy()

    # PR: stacked row selectors -- top half picks even rows, bottom half odd rows.
    pr = np.zeros((bt * h_conv, bt * h_conv), np.float32)
    half = bt * h_out
    for bb in range(bt):
        for ip in range(h_out):
            pr[bb * h_out + ip, bb * h_conv + 2 * ip] = 1.0
            pr[half + bb * h_out + ip, bb * h_conv + 2 * ip + 1] = 1.0
    return s, me, mo, be, bo, pr, h_out, w_out


def _fc1_consts(w1, b1, bt, ch, hw):
    """Fold PyTorch's x.view(-1, C*H*W) flatten (C,H,W order) into fc1:
         h1 = relu(concat_ii(RF[ii] @ P2) @ W1s + b1row)."""
    out_dim = w1.shape[0]
    rf = np.zeros((hw, bt, bt * hw), np.float32)
    for ii in range(hw):
        for bb in range(bt):
            rf[ii, bb, bb * hw + ii] = 1.0
    w1s = np.zeros((hw * _LANES, _LANES), np.float32)
    for ii in range(hw):
        for c in range(ch):
            for jj in range(hw):
                w1s[ii * _LANES + c * hw + jj, :out_dim] = w1[:, c * hw * hw + ii * hw + jj]
    b1row = np.zeros((1, _LANES), np.float32)
    b1row[0, :out_dim] = b1
    return rf, w1s, b1row


def _fc_consts(w, b):
    kout, kin = w.shape
    wm = np.zeros((_LANES, _LANES), np.float32)
    wm[:kin, :kout] = w.T
    brow = np.zeros((1, _LANES), np.float32)
    brow[0, :kout] = b
    return wm, brow


def build_lenet_constants(params, bt):
    p = {k: np.asarray(v, np.float32) for k, v in params.items()}
    s1, m1e, m1o, b1e, b1o, pr1, hp1, wp1 = _conv_pool_consts(
        p["conv1_w"], p["conv1_b"], bt, 28, 28, pad=2)
    assert (hp1, wp1) == (14, 14)
    s2, m2e, m2o, b2e, b2o, pr2, hp2, wp2 = _conv_pool_consts(
        p["conv2_w"], p["conv2_b"], bt, hp1, wp1, pad=0)
    assert (hp2, wp2) == (5, 5)
    rf, w1s, b1row = _fc1_consts(p["fc1_w"], p["fc1_b"], bt, 16, 5)
    w2m, b2row = _fc_consts(p["fc2_w"], p["fc2_b"])
    w3m, b3row = _fc_consts(p["fc3_w"], p["fc3_b"])

    bf = lambda a: jnp.asarray(a, jnp.bfloat16)   # GEMM operands: bf16 (selections exact)
    f32 = lambda a: jnp.asarray(a, jnp.float32)   # biases: stay f32 (added post-accum)
    return [
        bf(s1), bf(m1e), bf(m1o), f32(b1e), f32(b1o), bf(pr1),
        bf(s2), bf(m2e), bf(m2o), f32(b2e), f32(b2o), bf(pr2),
        bf(rf), bf(w1s), f32(b1row),
        bf(w2m), f32(b2row),
        bf(w3m), f32(b3row),
    ]


def make_lenet_forward(params, batch, batch_tile=8):
    # TODO(synk): handle batch % batch_tile != 0 by padding the batch in the wrapper.
    assert batch % batch_tile == 0 and batch_tile % 2 == 0
    consts = build_lenet_constants(params, batch_tile)
    grid = (batch // batch_tile,)

    def tiled(block_shape):            # per-batch-tile operands
        return pl.BlockSpec(block_shape, lambda i: (i, 0))

    def resident(shape):               # constants: same block every step -> stays in VMEM
        return pl.BlockSpec(shape, lambda i: (0,) * len(shape))

    in_specs = [tiled((batch_tile * 28, _LANES))] + [resident(c.shape) for c in consts]
    out_specs = tiled((batch_tile, _LANES))

    fused = pl.pallas_call(
        lenet_fused_kernel,
        out_shape=jax.ShapeDtypeStruct((batch, _LANES), jnp.float32),
        grid_spec=pltpu.PrefetchScalarGridSpec(
            num_scalar_prefetch=0,
            grid=grid,
            in_specs=in_specs,
            out_specs=out_specs),
        compiler_params=pltpu.CompilerParams(
            dimension_semantics=("parallel",),        # v7x: 2 TCs split the batch tiles
            vmem_limit_bytes=32 * 1024 * 1024),       # > v5e 16 MiB default, < v7x 64 MiB
    )

    @jax.jit
    def _forward(x, *cs):
        x2d = x.reshape(batch * 28, 28)                              # contiguous -> free
        x2d = jnp.pad(x2d, ((0, 0), (0, _LANES - 28))).astype(jnp.bfloat16)
        out = fused(x2d, *cs)                                        # [B, 128] slab
        return out[:, :10]

    return lambda x: _forward(x, *consts)


# ------------------------------ reference & init -----------------------------

def init_params(key):
    ks = jax.random.split(key, 10)

    def n(k, shape, fan_in):
        return jax.random.normal(k, shape, jnp.float32) / jnp.sqrt(fan_in)

    return {
        "conv1_w": n(ks[0], (6, 1, 5, 5), 25),
        "conv1_b": n(ks[1], (6,), 25),
        "conv2_w": n(ks[2], (16, 6, 5, 5), 150),
        "conv2_b": n(ks[3], (16,), 150),
        "fc1_w":   n(ks[4], (120, 400), 400),
        "fc1_b":   n(ks[5], (120,), 400),
        "fc2_w":   n(ks[6], (84, 120), 120),
        "fc2_b":   n(ks[7], (84,), 120),
        "fc3_w":   n(ks[8], (10, 84), 84),
        "fc3_b":   n(ks[9], (10,), 84),
    }


def reference_forward(x, p):
    hi = jax.lax.Precision.HIGHEST
    y = jax.lax.conv_general_dilated(
        x, p["conv1_w"], (1, 1), ((2, 2), (2, 2)),
        dimension_numbers=("NCHW", "OIHW", "NCHW"), precision=hi)
    y = jax.nn.relu(y + p["conv1_b"][None, :, None, None])
    y = jax.lax.reduce_window(y, -jnp.inf, jax.lax.max, (1, 1, 2, 2), (1, 1, 2, 2), "VALID")
    y = jax.lax.conv_general_dilated(
        y, p["conv2_w"], (1, 1), "VALID",
        dimension_numbers=("NCHW", "OIHW", "NCHW"), precision=hi)
    y = jax.nn.relu(y + p["conv2_b"][None, :, None, None])
    y = jax.lax.reduce_window(y, -jnp.inf, jax.lax.max, (1, 1, 2, 2), (1, 1, 2, 2), "VALID")
    y = y.reshape(y.shape[0], -1)
    y = jax.nn.relu(y @ p["fc1_w"].T + p["fc1_b"])
    y = jax.nn.relu(y @ p["fc2_w"].T + p["fc2_b"])
    return y @ p["fc3_w"].T + p["fc3_b"]


# ---------------------------------- main -------------------------------------

if __name__ == "__main__":
    key = jax.random.PRNGKey(0)
    pkey, xkey = jax.random.split(key)
    params = init_params(pkey)

    B, BT = 16, 8
    x = jax.random.normal(xkey, (B, 1, 28, 28), jnp.float32)

    forward = make_lenet_forward(params, B, batch_tile=BT)
    out = jax.block_until_ready(forward(x))
    assert out.shape == (B, 10) and out.dtype == jnp.float32

    ref = jax.block_until_ready(reference_forward(x, params))
    rel = float(jnp.linalg.norm(out - ref) / (jnp.linalg.norm(ref) + 1e-12))
    # All-f32 folding sits ~1e-6; bf16 MXU operands (f32 accumulate) sit ~1e-2,
    # so 2.5e-2 is a genuine (2x tighter) regression guard vs the old 5e-2.
    assert rel < 2.5e-2, f"relative L2 error vs reference too large: {rel}"

    print("KERNEL_OK")
</pallas_src>

<mosaic_0001>
module attributes {stable_mosaic.version = 11 : i64} {
  func.func @lenet_fused_kernel(%arg0: i32, %arg1: memref<224x128xbf16, #tpu.memory_space<vmem>>, %arg2: memref<5x224x224xbf16, #tpu.memory_space<vmem>>, %arg3: memref<640x128xbf16, #tpu.memory_space<vmem>>, %arg4: memref<640x128xbf16, #tpu.memory_space<vmem>>, %arg5: memref<1x128xf32, #tpu.memory_space<vmem>>, %arg6: memref<1x128xf32, #tpu.memory_space<vmem>>, %arg7: memref<224x224xbf16, #tpu.memory_space<vmem>>, %arg8: memref<5x80x112xbf16, #tpu.memory_space<vmem>>, %arg9: memref<640x128xbf16, #tpu.memory_space<vmem>>, %arg10: memref<640x128xbf16, #tpu.memory_space<vmem>>, %arg11: memref<1x128xf32, #tpu.memory_space<vmem>>, %arg12: memref<1x128xf32, #tpu.memory_space<vmem>>, %arg13: memref<80x80xbf16, #tpu.memory_space<vmem>>, %arg14: memref<5x8x40xbf16, #tpu.memory_space<vmem>>, %arg15: memref<640x128xbf16, #tpu.memory_space<vmem>>, %arg16: memref<1x128xf32, #tpu.memory_space<vmem>>, %arg17: memref<128x128xbf16, #tpu.memory_space<vmem>>, %arg18: memref<1x128xf32, #tpu.memory_space<vmem>>, %arg19: memref<128x128xbf16, #tpu.memory_space<vmem>>, %arg20: memref<1x128xf32, #tpu.memory_space<vmem>>, %arg21: memref<8x128xf32, #tpu.memory_space<vmem>>) attributes {dimension_semantics = [#tpu.dimension_semantics<parallel>], iteration_bounds = array<i64: 2>, scalar_prefetch = 0 : i64, scratch_operands = 0 : i64, tpu.core_type = #tpu.core_type<tc>, window_params = [{transform_indices = @transform_0, window_bounds = array<i64: 224, 128>}, {pipeline_mode = #tpu.pipeline_mode<synchronous>, transform_indices = @transform_1, window_bounds = array<i64: 5, 224, 224>}, {pipeline_mode = #tpu.pipeline_mode<synchronous>, transform_indices = @transform_2, window_bounds = array<i64: 640, 128>}, {pipeline_mode = #tpu.pipeline_mode<synchronous>, transform_indices = @transform_3, window_bounds = array<i64: 640, 128>}, {pipeline_mode = #tpu.pipeline_mode<synchronous>, transform_indices = @transform_4, window_bounds = array<i64: 1, 128>}, {pipeline_mode = #tpu.pipeline_mode<synchronous>, transform_indices = @transform_5, window_bounds = array<i64: 1, 128>}, {pipeline_mode = #tpu.pipeline_mode<synchronous>, transform_indices = @transform_6, window_bounds = array<i64: 224, 224>}, {pipeline_mode = #tpu.pipeline_mode<synchronous>, transform_indices = @transform_7, window_bounds = array<i64: 5, 80, 112>}, {pipeline_mode = #tpu.pipeline_mode<synchronous>, transform_indices = @transform_8, window_bounds = array<i64: 640, 128>}, {pipeline_mode = #tpu.pipeline_mode<synchronous>, transform_indices = @transform_9, window_bounds = array<i64: 640, 128>}, {pipeline_mode = #tpu.pipeline_mode<synchronous>, transform_indices = @transform_10, window_bounds = array<i64: 1, 128>}, {pipeline_mode = #tpu.pipeline_mode<synchronous>, transform_indices = @transform_11, window_bounds = array<i64: 1, 128>}, {pipeline_mode = #tpu.pipeline_mode<synchronous>, transform_indices = @transform_12, window_bounds = array<i64: 80, 80>}, {pipeline_mode = #tpu.pipeline_mode<synchronous>, transform_indices = @transform_13, window_bounds = array<i64: 5, 8, 40>}, {pipeline_mode = #tpu.pipeline_mode<synchronous>, transform_indices = @transform_14, window_bounds = array<i64: 640, 128>}, {pipeline_mode = #tpu.pipeline_mode<synchronous>, transform_indices = @transform_15, window_bounds = array<i64: 1, 128>}, {pipeline_mode = #tpu.pipeline_mode<synchronous>, transform_indices = @transform_16, window_bounds = array<i64: 128, 128>}, {pipeline_mode = #tpu.pipeline_mode<synchronous>, transform_indices = @transform_17, window_bounds = array<i64: 1, 128>}, {pipeline_mode = #tpu.pipeline_mode<synchronous>, transform_indices = @transform_18, window_bounds = array<i64: 128, 128>}, {pipeline_mode = #tpu.pipeline_mode<synchronous>, transform_indices = @transform_19, window_bounds = array<i64: 1, 128>}, {transform_indices = @transform_20, window_bounds = array<i64: 8, 128>}]} {
    %c0 = arith.constant 0 : index
    %c0_0 = arith.constant 0 : index
    %0 = vector.load %arg1[%c0, %c0_0] : memref<224x128xbf16, #tpu.memory_space<vmem>>, vector<224x128xbf16>
    %c0_1 = arith.constant 0 : index
    %c0_2 = arith.constant 0 : index
    %c0_3 = arith.constant 0 : index
    %1 = vector.load %arg2[%c0_1, %c0_2, %c0_3] : memref<5x224x224xbf16, #tpu.memory_space<vmem>>, vector<1x224x224xbf16>
    %2 = vector.shape_cast %1 : vector<1x224x224xbf16> to vector<224x224xbf16>
    %cst = arith.constant dense<0.000000e+00> : vector<224x128xf32>
    %3 = tpu.matmul %2, %0, %cst {dimension_numbers = #tpu.dot_dimension_numbers<[1], [0], [0], [1], [0, 0, 1, 1], [], []>} : vector<224x224xbf16>, vector<224x128xbf16>, vector<224x128xf32> -> vector<224x128xf32>
    %c1 = arith.constant 1 : index
    %c0_4 = arith.constant 0 : index
    %c0_5 = arith.constant 0 : index
    %4 = vector.load %arg2[%c1, %c0_4, %c0_5] : memref<5x224x224xbf16, #tpu.memory_space<vmem>>, vector<1x224x224xbf16>
    %5 = vector.shape_cast %4 : vector<1x224x224xbf16> to vector<224x224xbf16>
    %cst_6 = arith.constant dense<0.000000e+00> : vector<224x128xf32>
    %6 = tpu.matmul %5, %0, %cst_6 {dimension_numbers = #tpu.dot_dimension_numbers<[1], [0], [0], [1], [0, 0, 1, 1], [], []>} : vector<224x224xbf16>, vector<224x128xbf16>, vector<224x128xf32> -> vector<224x128xf32>
    %c2 = arith.constant 2 : index
    %c0_7 = arith.constant 0 : index
    %c0_8 = arith.constant 0 : index
    %7 = vector.load %arg2[%c2, %c0_7, %c0_8] : memref<5x224x224xbf16, #tpu.memory_space<vmem>>, vector<1x224x224xbf16>
    %8 = vector.shape_cast %7 : vector<1x224x224xbf16> to vector<224x224xbf16>
    %cst_9 = arith.constant dense<0.000000e+00> : vector<224x128xf32>
    %9 = tpu.matmul %8, %0, %cst_9 {dimension_numbers = #tpu.dot_dimension_numbers<[1], [0], [0], [1], [0, 0, 1, 1], [], []>} : vector<224x224xbf16>, vector<224x128xbf16>, vector<224x128xf32> -> vector<224x128xf32>
    %c3 = arith.constant 3 : index
    %c0_10 = arith.constant 0 : index
    %c0_11 = arith.constant 0 : index
    %10 = vector.load %arg2[%c3, %c0_10, %c0_11] : memref<5x224x224xbf16, #tpu.memory_space<vmem>>, vector<1x224x224xbf16>
    %11 = vector.shape_cast %10 : vector<1x224x224xbf16> to vector<224x224xbf16>
    %cst_12 = arith.constant dense<0.000000e+00> : vector<224x128xf32>
    %12 = tpu.matmul %11, %0, %cst_12 {dimension_numbers = #tpu.dot_dimension_numbers<[1], [0], [0], [1], [0, 0, 1, 1], [], []>} : vector<224x224xbf16>, vector<224x128xbf16>, vector<224x128xf32> -> vector<224x128xf32>
    %c4 = arith.constant 4 : index
    %c0_13 = arith.constant 0 : index
    %c0_14 = arith.constant 0 : index
    %13 = vector.load %arg2[%c4, %c0_13, %c0_14] : memref<5x224x224xbf16, #tpu.memory_space<vmem>>, vector<1x224x224xbf16>
    %14 = vector.shape_cast %13 : vector<1x224x224xbf16> to vector<224x224xbf16>
    %cst_15 = arith.constant dense<0.000000e+00> : vector<224x128xf32>
    %15 = tpu.matmul %14, %0, %cst_15 {dimension_numbers = #tpu.dot_dimension_numbers<[1], [0], [0], [1], [0, 0, 1, 1], [], []>} : vector<224x224xbf16>, vector<224x128xbf16>, vector<224x128xf32> -> vector<224x128xf32>
    %16 = tpu.concatenate %3, %6, %9, %12, %15 in 1 : vector<224x128xf32>, vector<224x128xf32>, vector<224x128xf32>, vector<224x128xf32>, vector<224x128xf32> -> vector<224x640xf32>
    %17 = arith.truncf %16 : vector<224x640xf32> to vector<224x640xbf16>
    %c0_16 = arith.constant 0 : index
    %c0_17 = arith.constant 0 : index
    %18 = vector.load %arg3[%c0_16, %c0_17] : memref<640x128xbf16, #tpu.memory_space<vmem>>, vector<640x128xbf16>
    %cst_18 = arith.constant dense<0.000000e+00> : vector<224x128xf32>
    %19 = tpu.matmul %17, %18, %cst_18 {dimension_numbers = #tpu.dot_dimension_numbers<[1], [0], [0], [1], [0, 0, 1, 1], [], []>} : vector<224x640xbf16>, vector<640x128xbf16>, vector<224x128xf32> -> vector<224x128xf32>
    %c0_19 = arith.constant 0 : index
    %c0_20 = arith.constant 0 : index
    %20 = vector.load %arg5[%c0_19, %c0_20] : memref<1x128xf32, #tpu.memory_space<vmem>>, vector<1x128xf32>
    %21 = vector.broadcast %20 : vector<1x128xf32> to vector<224x128xf32>
    %22 = arith.addf %19, %21 : vector<224x128xf32>
    %c0_21 = arith.constant 0 : index
    %c0_22 = arith.constant 0 : index
    %23 = vector.load %arg4[%c0_21, %c0_22] : memref<640x128xbf16, #tpu.memory_space<vmem>>, vector<640x128xbf16>
    %cst_23 = arith.constant dense<0.000000e+00> : vector<224x128xf32>
    %24 = tpu.matmul %17, %23, %cst_23 {dimension_numbers = #tpu.dot_dimension_numbers<[1], [0], [0], [1], [0, 0, 1, 1], [], []>} : vector<224x640xbf16>, vector<640x128xbf16>, vector<224x128xf32> -> vector<224x128xf32>
    %c0_24 = arith.constant 0 : index
    %c0_25 = arith.constant 0 : index
    %25 = vector.load %arg6[%c0_24, %c0_25] : memref<1x128xf32, #tpu.memory_space<vmem>>, vector<1x128xf32>
    %26 = vector.broadcast %25 : vector<1x128xf32> to vector<224x128xf32>
    %27 = arith.addf %24, %26 : vector<224x128xf32>
    %28 = arith.maximumf %22, %27 : vector<224x128xf32>
    %c0_26 = arith.constant 0 : index
    %c0_27 = arith.constant 0 : index
    %29 = vector.load %arg7[%c0_26, %c0_27] : memref<224x224xbf16, #tpu.memory_space<vmem>>, vector<224x224xbf16>
    %30 = arith.truncf %28 : vector<224x128xf32> to vector<224x128xbf16>
    %cst_28 = arith.constant dense<0.000000e+00> : vector<224x128xf32>
    %31 = tpu.matmul %29, %30, %cst_28 {dimension_numbers = #tpu.dot_dimension_numbers<[1], [0], [0], [1], [0, 0, 1, 1], [], []>} : vector<224x224xbf16>, vector<224x128xbf16>, vector<224x128xf32> -> vector<224x128xf32>
    %32 = vector.extract_strided_slice %31 {offsets = [0, 0], sizes = [112, 128], strides = [1, 1]} : vector<224x128xf32> to vector<112x128xf32>
    %33 = vector.extract_strided_slice %31 {offsets = [112, 0], sizes = [112, 128], strides = [1, 1]} : vector<224x128xf32> to vector<112x128xf32>
    %34 = arith.maximumf %32, %33 : vector<112x128xf32>
    %cst_29 = arith.constant 0.000000e+00 : f32
    %35 = vector.broadcast %cst_29 : f32 to vector<112x128xf32>
    %36 = arith.maximumf %34, %35 : vector<112x128xf32>
    %37 = arith.truncf %36 : vector<112x128xf32> to vector<112x128xbf16>
    %c0_30 = arith.constant 0 : index
    %c0_31 = arith.constant 0 : index
    %c0_32 = arith.constant 0 : index
    %38 = vector.load %arg8[%c0_30, %c0_31, %c0_32] : memref<5x80x112xbf16, #tpu.memory_space<vmem>>, vector<1x80x112xbf16>
    %39 = vector.shape_cast %38 : vector<1x80x112xbf16> to vector<80x112xbf16>
    %cst_33 = arith.constant dense<0.000000e+00> : vector<80x128xf32>
    %40 = tpu.matmul %39, %37, %cst_33 {dimension_numbers = #tpu.dot_dimension_numbers<[1], [0], [0], [1], [0, 0, 1, 1], [], []>} : vector<80x112xbf16>, vector<112x128xbf16>, vector<80x128xf32> -> vector<80x128xf32>
    %c1_34 = arith.constant 1 : index
    %c0_35 = arith.constant 0 : index
    %c0_36 = arith.constant 0 : index
    %41 = vector.load %arg8[%c1_34, %c0_35, %c0_36] : memref<5x80x112xbf16, #tpu.memory_space<vmem>>, vector<1x80x112xbf16>
    %42 = vector.shape_cast %41 : vector<1x80x112xbf16> to vector<80x112xbf16>
    %cst_37 = arith.constant dense<0.000000e+00> : vector<80x128xf32>
    %43 = tpu.matmul %42, %37, %cst_37 {dimension_numbers = #tpu.dot_dimension_numbers<[1], [0], [0], [1], [0, 0, 1, 1], [], []>} : vector<80x112xbf16>, vector<112x128xbf16>, vector<80x128xf32> -> vector<80x128xf32>
    %c2_38 = arith.constant 2 : index
    %c0_39 = arith.constant 0 : index
    %c0_40 = arith.constant 0 : index
    %44 = vector.load %arg8[%c2_38, %c0_39, %c0_40] : memref<5x80x112xbf16, #tpu.memory_space<vmem>>, vector<1x80x112xbf16>
    %45 = vector.shape_cast %44 : vector<1x80x112xbf16> to vector<80x112xbf16>
    %cst_41 = arith.constant dense<0.000000e+00> : vector<80x128xf32>
    %46 = tpu.matmul %45, %37, %cst_41 {dimension_numbers = #tpu.dot_dimension_numbers<[1], [0], [0], [1], [0, 0, 1, 1], [], []>} : vector<80x112xbf16>, vector<112x128xbf16>, vector<80x128xf32> -> vector<80x128xf32>
    %c3_42 = arith.constant 3 : index
    %c0_43 = arith.constant 0 : index
    %c0_44 = arith.constant 0 : index
    %47 = vector.load %arg8[%c3_42, %c0_43, %c0_44] : memref<5x80x112xbf16, #tpu.memory_space<vmem>>, vector<1x80x112xbf16>
    %48 = vector.shape_cast %47 : vector<1x80x112xbf16> to vector<80x112xbf16>
    %cst_45 = arith.constant dense<0.000000e+00> : vector<80x128xf32>
    %49 = tpu.matmul %48, %37, %cst_45 {dimension_numbers = #tpu.dot_dimension_numbers<[1], [0], [0], [1], [0, 0, 1, 1], [], []>} : vector<80x112xbf16>, vector<112x128xbf16>, vector<80x128xf32> -> vector<80x128xf32>
    %c4_46 = arith.constant 4 : index
    %c0_47 = arith.constant 0 : index
    %c0_48 = arith.constant 0 : index
    %50 = vector.load %arg8[%c4_46, %c0_47, %c0_48] : memref<5x80x112xbf16, #tpu.memory_space<vmem>>, vector<1x80x112xbf16>
    %51 = vector.shape_cast %50 : vector<1x80x112xbf16> to vector<80x112xbf16>
    %cst_49 = arith.constant dense<0.000000e+00> : vector<80x128xf32>
    %52 = tpu.matmul %51, %37, %cst_49 {dimension_numbers = #tpu.dot_dimension_numbers<[1], [0], [0], [1], [0, 0, 1, 1], [], []>} : vector<80x112xbf16>, vector<112x128xbf16>, vector<80x128xf32> -> vector<80x128xf32>
    %53 = tpu.concatenate %40, %43, %46, %49, %52 in 1 : vector<80x128xf32>, vector<80x128xf32>, vector<80x128xf32>, vector<80x128xf32>, vector<80x128xf32> -> vector<80x640xf32>
    %54 = arith.truncf %53 : vector<80x640xf32> to vector<80x640xbf16>
    %c0_50 = arith.constant 0 : index
    %c0_51 = arith.constant 0 : index
    %55 = vector.load %arg9[%c0_50, %c0_51] : memref<640x128xbf16, #tpu.memory_space<vmem>>, vector<640x128xbf16>
    %cst_52 = arith.constant dense<0.000000e+00> : vector<80x128xf32>
    %56 = tpu.matmul %54, %55, %cst_52 {dimension_numbers = #tpu.dot_dimension_numbers<[1], [0], [0], [1], [0, 0, 1, 1], [], []>} : vector<80x640xbf16>, vector<640x128xbf16>, vector<80x128xf32> -> vector<80x128xf32>
    %c0_53 = arith.constant 0 : index
    %c0_54 = arith.constant 0 : index
    %57 = vector.load %arg11[%c0_53, %c0_54] : memref<1x128xf32, #tpu.memory_space<vmem>>, vector<1x128xf32>
    %58 = vector.broadcast %57 : vector<1x128xf32> to vector<80x128xf32>
    %59 = arith.addf %56, %58 : vector<80x128xf32>
    %c0_55 = arith.constant 0 : index
    %c0_56 = arith.constant 0 : index
    %60 = vector.load %arg10[%c0_55, %c0_56] : memref<640x128xbf16, #tpu.memory_space<vmem>>, vector<640x128xbf16>
    %cst_57 = arith.constant dense<0.000000e+00> : vector<80x128xf32>
    %61 = tpu.matmul %54, %60, %cst_57 {dimension_numbers = #tpu.dot_dimension_numbers<[1], [0], [0], [1], [0, 0, 1, 1], [], []>} : vector<80x640xbf16>, vector<640x128xbf16>, vector<80x128xf32> -> vector<80x128xf32>
    %c0_58 = arith.constant 0 : index
    %c0_59 = arith.constant 0 : index
    %62 = vector.load %arg12[%c0_58, %c0_59] : memref<1x128xf32, #tpu.memory_space<vmem>>, vector<1x128xf32>
    %63 = vector.broadcast %62 : vector<1x128xf32> to vector<80x128xf32>
    %64 = arith.addf %61, %63 : vector<80x128xf32>
    %65 = arith.maximumf %59, %64 : vector<80x128xf32>
    %c0_60 = arith.constant 0 : index
    %c0_61 = arith.constant 0 : index
    %66 = vector.load %arg13[%c0_60, %c0_61] : memref<80x80xbf16, #tpu.memory_space<vmem>>, vector<80x80xbf16>
    %67 = arith.truncf %65 : vector<80x128xf32> to vector<80x128xbf16>
    %cst_62 = arith.constant dense<0.000000e+00> : vector<80x128xf32>
    %68 = tpu.matmul %66, %67, %cst_62 {dimension_numbers = #tpu.dot_dimension_numbers<[1], [0], [0], [1], [0, 0, 1, 1], [], []>} : vector<80x80xbf16>, vector<80x128xbf16>, vector<80x128xf32> -> vector<80x128xf32>
    %69 = vector.extract_strided_slice %68 {offsets = [0, 0], sizes = [40, 128], strides = [1, 1]} : vector<80x128xf32> to vector<40x128xf32>
    %70 = vector.extract_strided_slice %68 {offsets = [40, 0], sizes = [40, 128], strides = [1, 1]} : vector<80x128xf32> to vector<40x128xf32>
    %71 = arith.maximumf %69, %70 : vector<40x128xf32>
    %cst_63 = arith.constant 0.000000e+00 : f32
    %72 = vector.broadcast %cst_63 : f32 to vector<40x128xf32>
    %73 = arith.maximumf %71, %72 : vector<40x128xf32>
    %74 = arith.truncf %73 : vector<40x128xf32> to vector<40x128xbf16>
    %c0_64 = arith.constant 0 : index
    %c0_65 = arith.constant 0 : index
    %c0_66 = arith.constant 0 : index
    %75 = vector.load %arg14[%c0_64, %c0_65, %c0_66] : memref<5x8x40xbf16, #tpu.memory_space<vmem>>, vector<1x8x40xbf16>
    %76 = vector.shape_cast %75 : vector<1x8x40xbf16> to vector<8x40xbf16>
    %cst_67 = arith.constant dense<0.000000e+00> : vector<8x128xf32>
    %77 = tpu.matmul %76, %74, %cst_67 {dimension_numbers = #tpu.dot_dimension_numbers<[1], [0], [0], [1], [0, 0, 1, 1], [], []>} : vector<8x40xbf16>, vector<40x128xbf16>, vector<8x128xf32> -> vector<8x128xf32>
    %c1_68 = arith.constant 1 : index
    %c0_69 = arith.constant 0 : index
    %c0_70 = arith.constant 0 : index
    %78 = vector.load %arg14[%c1_68, %c0_69, %c0_70] : memref<5x8x40xbf16, #tpu.memory_space<vmem>>, vector<1x8x40xbf16>
    %79 = vector.shape_cast %78 : vector<1x8x40xbf16> to vector<8x40xbf16>
    %cst_71 = arith.constant dense<0.000000e+00> : vector<8x128xf32>
    %80 = tpu.matmul %79, %74, %cst_71 {dimension_numbers = #tpu.dot_dimension_numbers<[1], [0], [0], [1], [0, 0, 1, 1], [], []>} : vector<8x40xbf16>, vector<40x128xbf16>, vector<8x128xf32> -> vector<8x128xf32>
    %c2_72 = arith.constant 2 : index
    %c0_73 = arith.constant 0 : index
    %c0_74 = arith.constant 0 : index
    %81 = vector.load %arg14[%c2_72, %c0_73, %c0_74] : memref<5x8x40xbf16, #tpu.memory_space<vmem>>, vector<1x8x40xbf16>
    %82 = vector.shape_cast %81 : vector<1x8x40xbf16> to vector<8x40xbf16>
    %cst_75 = arith.constant dense<0.000000e+00> : vector<8x128xf32>
    %83 = tpu.matmul %82, %74, %cst_75 {dimension_numbers = #tpu.dot_dimension_numbers<[1], [0], [0], [1], [0, 0, 1, 1], [], []>} : vector<8x40xbf16>, vector<40x128xbf16>, vector<8x128xf32> -> vector<8x128xf32>
    %c3_76 = arith.constant 3 : index
    %c0_77 = arith.constant 0 : index
    %c0_78 = arith.constant 0 : index
    %84 = vector.load %arg14[%c3_76, %c0_77, %c0_78] : memref<5x8x40xbf16, #tpu.memory_space<vmem>>, vector<1x8x40xbf16>
    %85 = vector.shape_cast %84 : vector<1x8x40xbf16> to vector<8x40xbf16>
    %cst_79 = arith.constant dense<0.000000e+00> : vector<8x128xf32>
    %86 = tpu.matmul %85, %74, %cst_79 {dimension_numbers = #tpu.dot_dimension_numbers<[1], [0], [0], [1], [0, 0, 1, 1], [], []>} : vector<8x40xbf16>, vector<40x128xbf16>, vector<8x128xf32> -> vector<8x128xf32>
    %c4_80 = arith.constant 4 : index
    %c0_81 = arith.constant 0 : index
    %c0_82 = arith.constant 0 : index
    %87 = vector.load %arg14[%c4_80, %c0_81, %c0_82] : memref<5x8x40xbf16, #tpu.memory_space<vmem>>, vector<1x8x40xbf16>
    %88 = vector.shape_cast %87 : vector<1x8x40xbf16> to vector<8x40xbf16>
    %cst_83 = arith.constant dense<0.000000e+00> : vector<8x128xf32>
    %89 = tpu.matmul %88, %74, %cst_83 {dimension_numbers = #tpu.dot_dimension_numbers<[1], [0], [0], [1], [0, 0, 1, 1], [], []>} : vector<8x40xbf16>, vector<40x128xbf16>, vector<8x128xf32> -> vector<8x128xf32>
    %90 = tpu.concatenate %77, %80, %83, %86, %89 in 1 : vector<8x128xf32>, vector<8x128xf32>, vector<8x128xf32>, vector<8x128xf32>, vector<8x128xf32> -> vector<8x640xf32>
    %91 = arith.truncf %90 : vector<8x640xf32> to vector<8x640xbf16>
    %c0_84 = arith.constant 0 : index
    %c0_85 = arith.constant 0 : index
    %92 = vector.load %arg15[%c0_84, %c0_85] : memref<640x128xbf16, #tpu.memory_space<vmem>>, vector<640x128xbf16>
    %cst_86 = arith.constant dense<0.000000e+00> : vector<8x128xf32>
    %93 = tpu.matmul %91, %92, %cst_86 {dimension_numbers = #tpu.dot_dimension_numbers<[1], [0], [0], [1], [0, 0, 1, 1], [], []>} : vector<8x640xbf16>, vector<640x128xbf16>, vector<8x128xf32> -> vector<8x128xf32>
    %c0_87 = arith.constant 0 : index
    %c0_88 = arith.constant 0 : index
    %94 = vector.load %arg16[%c0_87, %c0_88] : memref<1x128xf32, #tpu.memory_space<vmem>>, vector<1x128xf32>
    %95 = vector.broadcast %94 : vector<1x128xf32> to vector<8x128xf32>
    %96 = arith.addf %93, %95 : vector<8x128xf32>
    %cst_89 = arith.constant 0.000000e+00 : f32
    %97 = vector.broadcast %cst_89 : f32 to vector<8x128xf32>
    %98 = arith.maximumf %96, %97 : vector<8x128xf32>
    %c0_90 = arith.constant 0 : index
    %c0_91 = arith.constant 0 : index
    %99 = vector.load %arg17[%c0_90, %c0_91] : memref<128x128xbf16, #tpu.memory_space<vmem>>, vector<128x128xbf16>
    %100 = arith.truncf %98 : vector<8x128xf32> to vector<8x128xbf16>
    %cst_92 = arith.constant dense<0.000000e+00> : vector<8x128xf32>
    %101 = tpu.matmul %100, %99, %cst_92 {dimension_numbers = #tpu.dot_dimension_numbers<[1], [0], [0], [1], [0, 0, 1, 1], [], []>} : vector<8x128xbf16>, vector<128x128xbf16>, vector<8x128xf32> -> vector<8x128xf32>
    %c0_93 = arith.constant 0 : index
    %c0_94 = arith.constant 0 : index
    %102 = vector.load %arg18[%c0_93, %c0_94] : memref<1x128xf32, #tpu.memory_space<vmem>>, vector<1x128xf32>
    %103 = vector.broadcast %102 : vector<1x128xf32> to vector<8x128xf32>
    %104 = arith.addf %101, %103 : vector<8x128xf32>
    %cst_95 = arith.constant 0.000000e+00 : f32
    %105 = vector.broadcast %cst_95 : f32 to vector<8x128xf32>
    %106 = arith.maximumf %104, %105 : vector<8x128xf32>
    %c0_96 = arith.constant 0 : index
    %c0_97 = arith.constant 0 : index
    %107 = vector.load %arg19[%c0_96, %c0_97] : memref<128x128xbf16, #tpu.memory_space<vmem>>, vector<128x128xbf16>
    %108 = arith.truncf %106 : vector<8x128xf32> to vector<8x128xbf16>
    %cst_98 = arith.constant dense<0.000000e+00> : vector<8x128xf32>
    %109 = tpu.matmul %108, %107, %cst_98 {dimension_numbers = #tpu.dot_dimension_numbers<[1], [0], [0], [1], [0, 0, 1, 1], [], []>} : vector<8x128xbf16>, vector<128x128xbf16>, vector<8x128xf32> -> vector<8x128xf32>
    %c0_99 = arith.constant 0 : index
    %c0_100 = arith.constant 0 : index
    %110 = vector.load %arg20[%c0_99, %c0_100] : memref<1x128xf32, #tpu.memory_space<vmem>>, vector<1x128xf32>
    %111 = vector.broadcast %110 : vector<1x128xf32> to vector<8x128xf32>
    %112 = arith.addf %109, %111 : vector<8x128xf32>
    %c0_101 = arith.constant 0 : index
    %c0_102 = arith.constant 0 : index
    %113 = vector.load %arg21[%c0_101, %c0_102] : memref<8x128xf32, #tpu.memory_space<vmem>>, vector<8x128xf32>
    tpu.vector_store %arg21[%c0_101, %c0_102], %112 {strides = array<i32>} : memref<8x128xf32, #tpu.memory_space<vmem>>, vector<8x128xf32>,
    return
  }
  func.func @transform_0(%arg0: i32) -> (i32, i32) {
    %c0_i32 = arith.constant 0 : i32
    %c0_i32_0 = arith.constant 0 : i32
    return %arg0, %c0_i32 : i32, i32
  }
  func.func @transform_1(%arg0: i32) -> (i32, i32, i32) {
    %c0_i32 = arith.constant 0 : i32
    %c0_i32_0 = arith.constant 0 : i32
    %c0_i32_1 = arith.constant 0 : i32
    %c0_i32_2 = arith.constant 0 : i32
    return %c0_i32, %c0_i32_0, %c0_i32_1 : i32, i32, i32
  }
  func.func @transform_2(%arg0: i32) -> (i32, i32) {
    %c0_i32 = arith.constant 0 : i32
    %c0_i32_0 = arith.constant 0 : i32
    %c0_i32_1 = arith.constant 0 : i32
    return %c0_i32, %c0_i32_0 : i32, i32
  }
  func.func @transform_3(%arg0: i32) -> (i32, i32) {
    %c0_i32 = arith.constant 0 : i32
    %c0_i32_0 = arith.constant 0 : i32
    %c0_i32_1 = arith.constant 0 : i32
    return %c0_i32, %c0_i32_0 : i32, i32
  }
  func.func @transform_4(%arg0: i32) -> (i32, i32) {
    %c0_i32 = arith.constant 0 : i32
    %c0_i32_0 = arith.constant 0 : i32
    %c0_i32_1 = arith.constant 0 : i32
    return %c0_i32, %c0_i32_0 : i32, i32
  }
  func.func @transform_5(%arg0: i32) -> (i32, i32) {
    %c0_i32 = arith.constant 0 : i32
    %c0_i32_0 = arith.constant 0 : i32
    %c0_i32_1 = arith.constant 0 : i32
    return %c0_i32, %c0_i32_0 : i32, i32
  }
  func.func @transform_6(%arg0: i32) -> (i32, i32) {
    %c0_i32 = arith.constant 0 : i32
    %c0_i32_0 = arith.constant 0 : i32
    %c0_i32_1 = arith.constant 0 : i32
    return %c0_i32, %c0_i32_0 : i32, i32
  }
  func.func @transform_7(%arg0: i32) -> (i32, i32, i32) {
    %c0_i32 = arith.constant 0 : i32
    %c0_i32_0 = arith.constant 0 : i32
    %c0_i32_1 = arith.constant 0 : i32
    %c0_i32_2 = arith.constant 0 : i32
    return %c0_i32, %c0_i32_0, %c0_i32_1 : i32, i32, i32
  }
  func.func @transform_8(%arg0: i32) -> (i32, i32) {
    %c0_i32 = arith.constant 0 : i32
    %c0_i32_0 = arith.constant 0 : i32
    %c0_i32_1 = arith.constant 0 : i32
    return %c0_i32, %c0_i32_0 : i32, i32
  }
  func.func @transform_9(%arg0: i32) -> (i32, i32) {
    %c0_i32 = arith.constant 0 : i32
    %c0_i32_0 = arith.constant 0 : i32
    %c0_i32_1 = arith.constant 0 : i32
    return %c0_i32, %c0_i32_0 : i32, i32
  }
  func.func @transform_10(%arg0: i32) -> (i32, i32) {
    %c0_i32 = arith.constant 0 : i32
    %c0_i32_0 = arith.constant 0 : i32
    %c0_i32_1 = arith.constant 0 : i32
    return %c0_i32, %c0_i32_0 : i32, i32
  }
  func.func @transform_11(%arg0: i32) -> (i32, i32) {
    %c0_i32 = arith.constant 0 : i32
    %c0_i32_0 = arith.constant 0 : i32
    %c0_i32_1 = arith.constant 0 : i32
    return %c0_i32, %c0_i32_0 : i32, i32
  }
  func.func @transform_12(%arg0: i32) -> (i32, i32) {
    %c0_i32 = arith.constant 0 : i32
    %c0_i32_0 = arith.constant 0 : i32
    %c0_i32_1 = arith.constant 0 : i32
    return %c0_i32, %c0_i32_0 : i32, i32
  }
  func.func @transform_13(%arg0: i32) -> (i32, i32, i32) {
    %c0_i32 = arith.constant 0 : i32
    %c0_i32_0 = arith.constant 0 : i32
    %c0_i32_1 = arith.constant 0 : i32
    %c0_i32_2 = arith.constant 0 : i32
    return %c0_i32, %c0_i32_0, %c0_i32_1 : i32, i32, i32
  }
  func.func @transform_14(%arg0: i32) -> (i32, i32) {
    %c0_i32 = arith.constant 0 : i32
    %c0_i32_0 = arith.constant 0 : i32
    %c0_i32_1 = arith.constant 0 : i32
    return %c0_i32, %c0_i32_0 : i32, i32
  }
  func.func @transform_15(%arg0: i32) -> (i32, i32) {
    %c0_i32 = arith.constant 0 : i32
    %c0_i32_0 = arith.constant 0 : i32
    %c0_i32_1 = arith.constant 0 : i32
    return %c0_i32, %c0_i32_0 : i32, i32
  }
  func.func @transform_16(%arg0: i32) -> (i32, i32) {
    %c0_i32 = arith.constant 0 : i32
    %c0_i32_0 = arith.constant 0 : i32
    %c0_i32_1 = arith.constant 0 : i32
    return %c0_i32, %c0_i32_0 : i32, i32
  }
  func.func @transform_17(%arg0: i32) -> (i32, i32) {
    %c0_i32 = arith.constant 0 : i32
    %c0_i32_0 = arith.constant 0 : i32
    %c0_i32_1 = arith.constant 0 : i32
    return %c0_i32, %c0_i32_0 : i32, i32
  }
  func.func @transform_18(%arg0: i32) -> (i32, i32) {
    %c0_i32 = arith.constant 0 : i32
    %c0_i32_0 = arith.constant 0 : i32
    %c0_i32_1 = arith.constant 0 : i32
    return %c0_i32, %c0_i32_0 : i32, i32
  }
  func.func @transform_19(%arg0: i32) -> (i32, i32) {
    %c0_i32 = arith.constant 0 : i32
    %c0_i32_0 = arith.constant 0 : i32
    %c0_i32_1 = arith.constant 0 : i32
    return %c0_i32, %c0_i32_0 : i32, i32
  }
  func.func @transform_20(%arg0: i32) -> (i32, i32) {
    %c0_i32 = arith.constant 0 : i32
    %c0_i32_0 = arith.constant 0 : i32
    return %arg0, %c0_i32 : i32, i32
  }
}

</mosaic_0001>

<bundles_post_ra>
// kernel: _forward.1
= control target key start
LH: loop header
LB: loop body
LE: loop exit
PB: predicated region body
PF: predicated region fallthrough
CT: control target
= control target key end

     0   :  { %s13018_s0 = inlined_call_operand.vmem [shape: bf16[448,128], index: 0, kind: input, shape index: {}]   ;;  %s13019_s1 = inlined_call_operand.vmem [shape: bf16[5,224,224], index: 1, kind: input, shape index: {}]   ;;  %s13020_s2 = inlined_call_operand.vmem [shape: bf16[640,128], index: 2, kind: input, shape index: {}]   ;;  %s13021_s3 = inlined_call_operand.hbm [shape: bf16[640,128], index: 3, kind: input, shape index: {}]   ;;  %s13022_s4 = inlined_call_operand.vmem [shape: f32[1,128], index: 4, kind: input, shape index: {}]   ;;  %s13023_s5 = inlined_call_operand.vmem [shape: f32[1,128], index: 5, kind: input, shape index: {}]   ;;  %s13024_s6 = inlined_call_operand.hbm [shape: bf16[224,224], index: 6, kind: input, shape index: {}]   ;;  %s13025_s7 = inlined_call_operand.hbm [shape: bf16[5,80,112], index: 7, kind: input, shape index: {}]   ;;  %s13026_s8 = inlined_call_operand.hbm [shape: bf16[640,128], index: 8, kind: input, shape index: {}]   ;;  %s13027_s9 = inlined_call_operand.hbm [shape: bf16[640,128], index: 9, kind: input, shape index: {}]   ;;  %s13028_s10 = inlined_call_operand.vmem [shape: f32[1,128], index: 10, kind: input, shape index: {}]   ;;  %s13029_s11 = inlined_call_operand.vmem [shape: f32[1,128], index: 11, kind: input, shape index: {}]   ;;  %s13030_s12 = inlined_call_operand.vmem [shape: bf16[80,80], index: 12, kind: input, shape index: {}]   ;;  %s13031_s13 = inlined_call_operand.vmem [shape: bf16[5,8,40], index: 13, kind: input, shape index: {}]   ;;  %s13032_s14 = inlined_call_operand.hbm [shape: bf16[640,128], index: 14, kind: input, shape index: {}]   ;;  %s13033_s15 = inlined_call_operand.vmem [shape: f32[1,128], index: 15, kind: input, shape index: {}]   ;;  %s13034_s16 = inlined_call_operand.vmem [shape: bf16[128,128], index: 16, kind: input, shape index: {}]   ;;  %s13035_s17 = inlined_call_operand.vmem [shape: f32[1,128], index: 17, kind: input, shape index: {}]   ;;  %s13036_s18 = inlined_call_operand.vmem [shape: bf16[128,128], index: 18, kind: input, shape index: {}]   ;;  %s13037_s19 = inlined_call_operand.vmem [shape: f32[1,128], index: 19, kind: input, shape index: {}]   ;;  %s13038_s20 = inlined_call_operand.hbm [shape: f32[16,128], index: 20, kind: output, shape index: {}]  }
   0x1   :  { %13081 = sst [smem:[#allocation76_spill]] %s13018_s0 }
   0x2   :  { %13082 = sst [smem:[#allocation77_spill]] %s13019_s1 }
   0x3   :  { %13083 = sst [smem:[#allocation78_spill]] %s13020_s2 }
   0x4   :  { %13084 = sst [smem:[#allocation79_spill]] %s13021_s3 }
   0x5   :  { %13085 = sst [smem:[#allocation80_spill]] %s13022_s4 }
   0x6   :  { %13086 = sst [smem:[#allocation81_spill]] %s13024_s6 }
   0x7   :  { %13087 = sst [smem:[#allocation82_spill]] %s13037_s19 }
   0x8   :  { %13088 = sst [smem:[#allocation83_spill]] %s13038_s20 }
   0x9   :  { %25 = vsyncpa [#allocation3], 0 }
   0xa   :  { %26 = vsyncpa [#allocation6], 0 }
   0xb   :  { %27 = vsyncpa [#allocation9], 0 }
   0xc   :  { %28 = vsyncpa [#allocation12], 0 }
   0xd   :  { %29 = vsyncpa [#allocation4], 0 }
   0xe   :  { %31 = vsyncpa [#allocation4 + $0x1], 0  ;;  %s10446_s1 = smov 0   ;;  %s10448_s22 = smov 0  }
   0xf   :  { %s10450_s23 = smov 0   ;;  %s10452_s24 = smov 0  }
  0x10 LB: > { %13089 = sst [smem:[#allocation19_spill]] %s10313_s1  ;;  %s10467_s2 = sadd.s32 4294967295, %s10325_s24   ;;  %s10325_s24 = sphi %s10452_s24, %s13296_s24   ;;  %s10321_s23 = sphi %s10450_s23, %s13298_s23   ;;  %s10317_s22 = sphi %s10448_s22, %s13300_s22   ;;  %s10313_s1 = sphi %s10446_s1, %s13299_s1  }
  0x11   : > { %13090 = sst [smem:[#allocation20_spill]] %s10321_s23  ;;  %s7483_s25 = sadd.s32 4294967294, %s10325_s24  }
  0x12   : > { %13091 = sst [smem:[#allocation21_spill]] %s10325_s24  ;;  %s10471_s3 = sadd.s32 1, %s10325_s24  }
  0x13   : > { %13092 = sst [smem:[#allocation22_spill]] %s10471_s3  ;;  %s469_s26 = sadd.s32 1, %s10321_s23 }
  0x14   : > { %s466_s27 = ssub.s32 %s10325_s24, %s10471_s3  ;;  %p479_p0 = scmp.ne.s32.totalorder %s10321_s23, %s10317_s22 }
  0x15   : > { %p467_p1 = scmp.eq.s32.totalorder %s466_s27, 0  ;;  %p480_p2 = scmp.eq.s32.totalorder %s10467_s2, 1 }
  0x16   : > { %p485_p3 = scmp.ne.s32.totalorder %s10317_s22, %s10313_s1  ;;  %p486_p4 = scmp.eq.s32.totalorder %s7483_s25, 1 }
  0x17   : > { %s10482_s28 = scalar_select %p467_p1, %s10321_s23, %s469_s26  }
  0x18   : > { %p10484_p5 = por %p480_p2, %p479_p0  ;;  %p10488_p6 = por %p486_p4, %p485_p3 }
  0x19   : > { %13093 = sst [smem:[#allocation23_spill]] %s10482_s28  ;;  %p7484_p7 = scmp.ge.s32.totalorder %s10325_s24, 1 }
  0x1a   : > { %s13095_s29 = scalar_select %p10488_p6, 1, 0 }
  0x1b   : > { %p493_p8 = scmp.lt.s32.totalorder %s10325_s24, 3  ;;  %p13048_p9 = scmp.eq.s32.totalorder %s10467_s2, 0 }
  0x1c   : > { %13096 = sst [smem:[#allocation24_spill]] %s13095_s29  ;;  %s10327_s0 = smov [#allocation5]  }
  0x1d   : > { %p10495_p10 = pnand %p7484_p7, %p493_p8  ;;  %s530_s21 = sshll.u32 %s10327_s0, 4  ;;  %s531_s21 = int_to_ptr.vmem [resolvable:$true] %s530_s21 }
  0x1e   : > { %s10328_s26 = smov [#allocation8]   ;;  %s10104_s23 = scalar_lea.vmem %s531_s21, 3584 }
  0x1f   : > { %p9486_p11 = pneg %p10495_p10  ;;  %s556_s27 = sshll.u32 %s10328_s26, 4  ;;  %s557_s27 = int_to_ptr.vmem [resolvable:$true] %s556_s27 }
  0x20   : > { %p10105_p0 = scmp.ne.s32.totalorder %s531_s21, %s10104_s23  ;;  %p10112_p3 = scmp.lt.s32.totalorder %s531_s21, %s531_s21 }
  0x21   : > { %p10503_p12 = pnand %p13048_p9, %p9486_p11  ;;  %p10113_p4 = scmp.lt.s32.totalorder %s10104_s23, %s10104_s23 }
  0x23   : > { %p10509_p13 = pneg %p10503_p12  ;;  %p10114_p7 = por %p10113_p4, %p10112_p3 }
  0x25   : > { %p10107_p1 = pnand %p10105_p0, %p10509_p13 }
  0x27   : > { %p10108_p2 = pneg %p10107_p1 }
  0x29   : > { %p10115_p8 = pnand %p10114_p7, %p10108_p2 }
  0x2b   : > { %10118 = shalt.err (!%p10115_p8)
}
  0x2c   : > { %s10329_s0 = smov 128   ;;  %s10330_s26 = smov 8  }
  0x2d   : > { %s13100_s6 = sld [smem:[#allocation81_spill]]  ;;  %s10331_s1 = smov [#allocation2]  }
  0x2e   : > { %s511_s24 = sshll.u32 %s10331_s1, 4  ;;  %s10130_s20 = scalar_lea.vmem %s557_s27, 5120  ;;  %s512_s24 = int_to_ptr.vmem [resolvable:$true] %s511_s24 }
  0x2f   : > { %p10131_p11 = scmp.ne.s32.totalorder %s557_s27, %s10130_s20  ;;  %p10138_p3 = scmp.lt.s32.totalorder %s557_s27, %s557_s27 }
  0x30   : > { %p10139_p2 = scmp.lt.s32.totalorder %s10130_s20, %s10130_s20 }
  0x31   : > { %p10133_p0 = pnand %p10131_p11, %p10509_p13 }
  0x32   : > { %p10140_p4 = por %p10139_p2, %p10138_p3 }
  0x33   : > { %9492 = dma.hbm_to_vmem [thread:$0]  (!%p10503_p12), %s13100_s6, 3584, %s531_s21, [#allocation6], %s10329_s0, %s10329_s0, %s10330_s26  }
  0x34   : > { %p10134_p1 = pneg %p10133_p0 }
  0x36   : > { %p10141_p7 = pnand %p10140_p4, %p10134_p1 }
  0x38   : > { %10144 = shalt.err (!%p10141_p7)
}
  0x39   : > { %s10332_s23 = smov 64   ;;  %s10333_s19 = smov 4  }
  0x3a   : > { %9498 = dma.hbm_to_vmem [thread:$0]  (!%p10503_p12), %s13026_s8, 5120, %s557_s27, [#allocation9], %s10332_s23, %s10332_s23, %s10333_s19  }
  0x3b   : > { %s10156_s29 = scalar_lea.vmem %s512_s24, 5120  ;;  %p10164_p1 = scmp.lt.s32.totalorder %s512_s24, %s512_s24 }
  0x3c   : > { %p10157_p8 = scmp.ne.s32.totalorder %s512_s24, %s10156_s29  ;;  %p10165_p3 = scmp.lt.s32.totalorder %s10156_s29, %s10156_s29 }
  0x3e   : > { %p10159_p11 = pnand %p10157_p8, %p10509_p13  ;;  %p10166_p2 = por %p10165_p3, %p10164_p1 }
  0x40   : > { %p10160_p0 = pneg %p10159_p11 }
  0x42   : > { %p10167_p4 = pnand %p10166_p2, %p10160_p0 }
  0x44   : > { %10170 = shalt.err (!%p10167_p4)
}
  0x45   : > { %s13101_s0 = sld [smem:[#allocation79_spill]]  ;;  %s10334_s27 = smov [#allocation7]  }
  0x46   : > { %s543_s26 = sshll.u32 %s10334_s27, 4  ;;  %s10335_s3 = smov [#allocation10]   ;;  %s544_s26 = int_to_ptr.vmem [resolvable:$true] %s543_s26 }
  0x47   : > { %s569_s1 = sshll.u32 %s10335_s3, 4  ;;  %s10182_s6 = scalar_lea.vmem %s544_s26, 3200  ;;  %s570_s1 = int_to_ptr.vmem [resolvable:$true] %s569_s1 }
  0x48   : > { %p10183_p7 = scmp.ne.s32.totalorder %s544_s26, %s10182_s6  ;;  %p10190_p0 = scmp.lt.s32.totalorder %s544_s26, %s544_s26 }
  0x49   : > { %p10191_p1 = scmp.lt.s32.totalorder %s10182_s6, %s10182_s6 }
  0x4a   : > { %p10185_p8 = pnand %p10183_p7, %p10509_p13 }
  0x4b   : > { %9489 = dma.hbm_to_vmem [thread:$0]  (!%p10503_p12), %s13101_s0, 5120, %s512_s24, [#allocation3], %s10332_s23, %s10332_s23, %s10333_s19  }
  0x4c   : > { %p10186_p11 = pneg %p10185_p8  ;;  %p10192_p3 = por %p10191_p1, %p10190_p0 }
  0x4e   : > { %p10193_p2 = pnand %p10192_p3, %p10186_p11 }
  0x50   : > { %10196 = shalt.err (!%p10193_p2)
}
  0x51   : > { %9495 = dma.hbm_to_vmem [thread:$0]  (!%p10503_p12), %s13025_s7, 3200, %s544_s26, [#allocation6], %s10332_s23, %s10332_s23, %s10333_s19  }
  0x52   : > { %s10208_s20 = scalar_lea.vmem %s570_s1, 5120  ;;  %p10216_p9 = scmp.lt.s32.totalorder %s570_s1, %s570_s1 }
  0x53   : > { %p10209_p4 = scmp.ne.s32.totalorder %s570_s1, %s10208_s20  ;;  %p10217_p0 = scmp.lt.s32.totalorder %s10208_s20, %s10208_s20 }
  0x55   : > { %p10211_p7 = pnand %p10209_p4, %p10509_p13  ;;  %p10218_p11 = por %p10217_p0, %p10216_p9 }
  0x57   : > { %p10212_p8 = pneg %p10211_p7 }
  0x59   : > { %p10219_p1 = pnand %p10218_p11, %p10212_p8 }
  0x5b   : > { %10222 = shalt.err (!%p10219_p1)
}
  0x5c   : > { %9501 = dma.hbm_to_vmem [thread:$0]  (!%p10503_p12), %s13027_s9, 5120, %s570_s1, [#allocation9], %s10332_s23, %s10332_s23, %s10333_s19  }
  0x5d   : > { %s10336_s0 = smov [#allocation11]  }
  0x5e   : > { %s594_s27 = sshll.u32 %s10336_s0, 4  ;;  %s595_s27 = int_to_ptr.vmem [resolvable:$true] %s594_s27 }
  0x5f   : > { %s10234_s26 = scalar_lea.vmem %s595_s27, 5120  ;;  %p10242_p4 = scmp.lt.s32.totalorder %s595_s27, %s595_s27 }
  0x60   : > { %p10235_p3 = scmp.ne.s32.totalorder %s595_s27, %s10234_s26  ;;  %p10243_p7 = scmp.lt.s32.totalorder %s10234_s26, %s10234_s26 }
  0x62   : > { %p10237_p2 = pnand %p10235_p3, %p10509_p13  ;;  %p10244_p8 = por %p10243_p7, %p10242_p4 }
  0x64   : > { %p10238_p9 = pneg %p10237_p2 }
  0x66   : > { %p10245_p0 = pnand %p10244_p8, %p10238_p9 }
  0x68   : > { %10248 = shalt.err (!%p10245_p0)
}
  0x69   : > { %9504 = dma.hbm_to_vmem [thread:$0]  (!%p10503_p12), %s13032_s14, 5120, %s595_s27, [#allocation12], %s10332_s23, %s10332_s23, %s10333_s19  }
  0x6a   : > { %634 = sbr.rel (%p10495_p10) target bundleno = 3166 (0xc5e), region = 100 }
  0x6f   : > { %p13102_p13 = scmp.eq.s32.totalorder %s10467_s2, 0 }
  0x71   : > { %10292 = dma.done.wait (%p13102_p13), [#allocation3], 5120   ;;  %p13103_p11 = pmov %p13102_p13 }
  0x73   : > { %10294 = vsyncadd (%p13103_p11), [#allocation3], 4294962176  ;;  %p13104_p1 = pmov %p13103_p11 }
  0x75   : > { %10296 = dma.done.wait (%p13104_p1), [#allocation6], 6784   ;;  %p13105_p3 = pmov %p13104_p1 }
  0x76   : > { %p13106_p2 = pmov %p13104_p1 }
  0x77   : > { %10298 = vsyncadd (%p13105_p3), [#allocation6], 4294960512 }
  0x78   : > { %10300 = dma.done.wait (%p13106_p2), [#allocation9], 10240   ;;  %p13107_p12 = pmov %p13104_p1 }
  0x79   : > { %p13108_p10 = pmov %p13104_p1 }
  0x7a   : > { %10302 = vsyncadd (%p13107_p12), [#allocation9], 4294957056 }
  0x7b   : > { %10304 = dma.done.wait (%p13108_p10), [#allocation12], 5120   ;;  %p13109_p9 = pmov %p13104_p1 }
  0x7c   : > { %s712_s19 = smul.u32 28, %s10467_s2  ;;  %v13049_v0 = vmov 0   ;;  %s13110_s23 = sld [smem:[#allocation76_spill]]  ;;  %vm985_vm0 = vcmask 785408   ;;  %vm10339_vm1 = vmmov 0   ;;  %vm4588_vm2 = vcmask 916480  }
  0x7d   : > { %10306 = vsyncadd (%p13109_p9), [#allocation12], 4294962176  ;;  %1028 = vmatprep.subr.bf16.mxu0 %v13049_v0  ;;  %1370 = vmatprep.subr.bf16.mxu1 %v13049_v0  ;;  %s13111_s6 = sld [smem:[#allocation77_spill]]  ;;  %vm6340_vm3 = vcmask 654336   ;;  %vm6447_vm4 = vcmask 1043456   ;;  %vm6443_vm5 = vcmask 326656  }
  0x7e   : > { %p713_p4 = scmp.lt.s32.totalorder %s712_s19, 55  ;;  %s13112_s29 = sld [smem:[#allocation78_spill]] }
  0x7f   : > { %s13291_s25 = sld [smem:[#allocation82_spill]] }
  0x80   : > { %s13302_s19 = smov (!%p713_p4, %s712_s19), 55  ;;  %s13292_s26 = sld [smem:[#allocation83_spill]] }
  0x81   : > { %s7500_s28 = sshll.u32 %s13302_s19, 2  ;;  %s709_s19 = sand.u32 1, %s10317_s22  }
  0x82   : > { %s10594_s24 = scalar_lea.vmem %s13110_s23, %s7500_s28  ;;  %s13150_s28 = sld [smem:[#allocation80_spill]] }
  0x83   : > { %v10597_v1 = vld [vmem:[%s10594_s24 + $0x38] sm:$0xff]   ;;  %v10602_v2 = vld [vmem:[%s10594_s24 + $0x30] sm:$0xff]   ;;  %v10609_v3 = vld [vmem:[%s10594_s24 + $0x28] sm:$0xff]   ;;  %s8172_s23 = sshll.u32 %s10467_s2, 7  ;;  %s7351_s1 = scalar_lea.sflag [#allocation4], %s709_s19 }
  0x84   : > { %1029 = vmatpush1.bf16.msra.mxu0 %v10597_v1  ;;  %1371 = vmatpush1.bf16.msra.mxu1 %v10597_v1  ;;  %v10616_v4 = vld [vmem:[%s10594_s24 + $0x20] sm:$0xff]   ;;  %v10621_v5 = vld [vmem:[%s10594_s24 + $0x18] sm:$0xff]   ;;  %v10638_v8 = vld [vmem:[%s10594_s24 + $0x10] sm:$0xff]   ;;  %s10340_s2 = smov [#allocation13]  }
  0x85   : > { %1030 = vmatprep.subr.bf16.mxu0 %v13049_v0  ;;  %1372 = vmatprep.subr.bf16.mxu1 %v13049_v0  ;;  %v9583_v6 = vld [vmem:[%s13111_s6 + $0x4] ss:$8 sps:$4 sm:$0xff]   ;;  %v10673_v13 = vld [vmem:[%s10594_s24 + $0x58] sm:$0xff]   ;;  %v10680_v14 = vld [vmem:[%s10594_s24 + $0x50] sm:$0xff]  }
  0x86   : > { %v9586_v7 = vld [vmem:[%s13111_s6 + $0xe4] ss:$8 sps:$4 sm:$0xff]   ;;  %7543 = vmatprep.mubr.msk.bf16.mxu0 %vm985_vm0, %v9583_v6  ;;  %v9581_v17 = vld [vmem:[%s13111_s6] ss:$8 sps:$4 sm:$0xff]   ;;  %v9587_v19 = vld [vmem:[%s13111_s6 + $0x14] ss:$8 sps:$4 sm:$0xff]   ;;  %s12977_s3 = scalar_lea.hbm %s13292_s26, %s8172_s23 }
  0x87   : > { %7613 = vmatprep.mubr.msk.bf16.mxu1 %vm985_vm0, %v9586_v7  ;;  %v10645_v9 = vld [vmem:[%s10594_s24 + $0x8] sm:$0xff]   ;;  %v10652_v10 = vld [vmem:[%s10594_s24] sm:$0xff]   ;;  %v9589_v20 = vld [vmem:[%s13111_s6 + $0xf4] ss:$8 sps:$4 sm:$0xff]  }
  0x88   : > { %1031 = vmatpush1.bf16.msra.mxu0 %v10602_v2  ;;  %1373 = vmatpush1.bf16.msra.mxu1 %v10602_v2  ;;  %v10659_v11 = vld [vmem:[%s10594_s24 + $0x68] sm:$0xff]   ;;  %v10666_v12 = vld [vmem:[%s10594_s24 + $0x60] sm:$0xff]   ;;  %v9591_v21 = vld [vmem:[%s13111_s6 + $0x10] ss:$8 sps:$4 sm:$0xff]  }
  0x89   : > { %1032 = vmatprep.subr.bf16.mxu0 %v13049_v0  ;;  %1374 = vmatprep.subr.bf16.mxu1 %v13049_v0  ;;  %v10687_v15 = vld [vmem:[%s10594_s24 + $0x48] sm:$0xff]   ;;  %v10694_v16 = vld [vmem:[%s10594_s24 + $0x40] sm:$0xff]   ;;  %v9592_v22 = vld [vmem:[%s13111_s6 + $0xf0] ss:$8 sps:$4 sm:$0xff]  }
  0x8a   : > { %v9584_v18 = vld [vmem:[%s13111_s6 + $0xe0] ss:$8 sps:$4 sm:$0xff]   ;;  %v9593_v23 = vld [vmem:[%s13111_s6 + $0x24] ss:$8 sps:$4 sm:$0xff]   ;;  %v9599_v27 = vld [vmem:[%s13111_s6 + $0x34] ss:$8 sps:$4 sm:$0xff]  }
  0x8b   : > { %v9595_v24 = vld [vmem:[%s13111_s6 + $0x104] ss:$8 sps:$4 sm:$0xff]   ;;  %v9597_v25 = vld [vmem:[%s13111_s6 + $0x20] ss:$8 sps:$4 sm:$0xff]   ;;  %v9601_v28 = vld [vmem:[%s13111_s6 + $0x114] ss:$8 sps:$4 sm:$0xff]  }
  0x8c   : > { %1033 = vmatpush1.bf16.msra.mxu0 %v10609_v3  ;;  %1375 = vmatpush1.bf16.msra.mxu1 %v10609_v3  ;;  %v9598_v26 = vld [vmem:[%s13111_s6 + $0x100] ss:$8 sps:$4 sm:$0xff]   ;;  %v9603_v29 = vld [vmem:[%s13111_s6 + $0x30] ss:$8 sps:$4 sm:$0xff]   ;;  %v9605_v31 = vld [vmem:[%s13111_s6 + $0x44] ss:$8 sps:$4 sm:$0xff]  }
  0x8d   : > { %1034 = vmatprep.subr.bf16.mxu0 %v13049_v0  ;;  %1376 = vmatprep.subr.bf16.mxu1 %v13049_v0  ;;  %v9604_v30 = vld [vmem:[%s13111_s6 + $0x110] ss:$8 sps:$4 sm:$0xff]   ;;  %v9607_v32 = vld [vmem:[%s13111_s6 + $0x124] ss:$8 sps:$4 sm:$0xff]   ;;  %v9609_v33 = vld [vmem:[%s13111_s6 + $0x40] ss:$8 sps:$4 sm:$0xff]  }
  0x8e   : > { %v9610_v34 = vld [vmem:[%s13111_s6 + $0x120] ss:$8 sps:$4 sm:$0xff]   ;;  %v9611_v35 = vld [vmem:[%s13111_s6 + $0x54] ss:$8 sps:$4 sm:$0xff]   ;;  %v9615_v37 = vld [vmem:[%s13111_s6 + $0x50] ss:$8 sps:$4 sm:$0xff]  }
  0x8f   : > { %v9613_v36 = vld [vmem:[%s13111_s6 + $0x134] ss:$8 sps:$4 sm:$0xff]   ;;  %v9616_v38 = vld [vmem:[%s13111_s6 + $0x130] ss:$8 sps:$4 sm:$0xff]   ;;  %v9617_v39 = vld [vmem:[%s13111_s6 + $0x64] ss:$8 sps:$4 sm:$0xff]  }
  0x90   : > { %1035 = vmatpush1.bf16.msra.mxu0 %v10616_v4  ;;  %1377 = vmatpush1.bf16.msra.mxu1 %v10616_v4  ;;  %v9619_v40 = vld [vmem:[%s13111_s6 + $0x144] ss:$8 sps:$4 sm:$0xff]   ;;  %v9621_v41 = vld [vmem:[%s13111_s6 + $0x60] ss:$8 sps:$4 sm:$0xff]   ;;  %v9623_v43 = vld [vmem:[%s13111_s6 + $0x74] ss:$8 sps:$4 sm:$0xff]  }
  0x91   : > { %1036 = vmatprep.subr.bf16.mxu0 %v13049_v0  ;;  %1378 = vmatprep.subr.bf16.mxu1 %v13049_v0  ;;  %v9622_v42 = vld [vmem:[%s13111_s6 + $0x140] ss:$8 sps:$4 sm:$0xff]   ;;  %v9625_v44 = vld [vmem:[%s13111_s6 + $0x154] ss:$8 sps:$4 sm:$0xff]   ;;  %v9627_v45 = vld [vmem:[%s13111_s6 + $0x70] ss:$8 sps:$4 sm:$0xff]  }
  0x92   : > { %v9628_v46 = vld [vmem:[%s13111_s6 + $0x150] ss:$8 sps:$4 sm:$0xff]   ;;  %v9629_v47 = vld [vmem:[%s13111_s6 + $0x84] ss:$8 sps:$4 sm:$0xff]   ;;  %v9633_v49 = vld [vmem:[%s13111_s6 + $0x80] ss:$8 sps:$4 sm:$0xff]  }
  0x93   : > { %v9631_v48 = vld [vmem:[%s13111_s6 + $0x164] ss:$8 sps:$4 sm:$0xff]   ;;  %v9634_v50 = vld [vmem:[%s13111_s6 + $0x160] ss:$8 sps:$4 sm:$0xff]   ;;  %v9635_v51 = vld [vmem:[%s13111_s6 + $0x94] ss:$8 sps:$4 sm:$0xff]  }
  0x94   : > { %1037 = vmatpush1.bf16.msra.mxu0 %v10621_v5  ;;  %1379 = vmatpush1.bf16.msra.mxu1 %v10621_v5  ;;  %v9637_v52 = vld [vmem:[%s13111_s6 + $0x174] ss:$8 sps:$4 sm:$0xff]   ;;  %v9639_v54 = vld [vmem:[%s13111_s6 + $0x90] ss:$8 sps:$4 sm:$0xff]   ;;  %v9641_v56 = vld [vmem:[%s13111_s6 + $0xa4] ss:$8 sps:$4 sm:$0xff]  }
  0x95   : > { %1038 = vmatprep.subr.bf16.mxu0 %v13049_v0  ;;  %1380 = vmatprep.subr.bf16.mxu1 %v13049_v0  ;;  %v9731_v53 = vld [vmem:[%s13112_s29 + $0x78] sm:$0xff]   ;;  %v9643_v57 = vld [vmem:[%s13111_s6 + $0x184] ss:$8 sps:$4 sm:$0xff]   ;;  %v9645_v58 = vld [vmem:[%s13111_s6 + $0xa0] ss:$8 sps:$4 sm:$0xff]  }
  0x96   : > { %v9640_v55 = vld [vmem:[%s13111_s6 + $0x170] ss:$8 sps:$4 sm:$0xff]   ;;  %v9646_v59 = vld [vmem:[%s13111_s6 + $0x180] ss:$8 sps:$4 sm:$0xff]   ;;  %v9647_v60 = vld [vmem:[%s13111_s6 + $0xb4] ss:$8 sps:$4 sm:$0xff]  }
  0x97   : > { %v9649_v61 = vld [vmem:[%s13111_s6 + $0x194] ss:$8 sps:$4 sm:$0xff]   ;;  %v9651_v62 = vld [vmem:[%s13111_s6 + $0xb0] ss:$8 sps:$4 sm:$0xff]  }
  0x98   : > { %1039 = vmatpush1.bf16.msra.mxu0 %v10638_v8  ;;  %1381 = vmatpush1.bf16.msra.mxu1 %v10638_v8  ;;  %v9652_v63 = vld [vmem:[%s13111_s6 + $0x190] ss:$8 sps:$4 sm:$0xff]   ;;  %v9661_v6 = vld [vmem:[%s13111_s6 + $0x1b4] ss:$8 sps:$4 sm:$0xff]  }
  0x99   : > { %1040 = vmatprep.subr.bf16.mxu0 %v13049_v0  ;;  %1382 = vmatprep.subr.bf16.mxu1 %v13049_v0  ;;  %v9663_v7 = vld [vmem:[%s13111_s6 + $0xd0] ss:$8 sps:$4 sm:$0xff]  }
  0x9c   : > { %1041 = vmatpush1.bf16.msra.mxu0 %v10645_v9  ;;  %1383 = vmatpush1.bf16.msra.mxu1 %v10645_v9 }
  0x9d   : > { %1042 = vmatprep.subr.bf16.mxu0 %v13049_v0  ;;  %1384 = vmatprep.subr.bf16.mxu1 %v13049_v0 }
  0xa0   : > { %1043 = vmatpush1.bf16.msra.mxu0 %v10652_v10  ;;  %1385 = vmatpush1.bf16.msra.mxu1 %v10652_v10 }
  0xa1   : > { %1048 = vmatprep.subr.bf16.mxu0 %v13049_v0  ;;  %1390 = vmatprep.subr.bf16.mxu1 %v13049_v0 }
  0xa4   : > { %1049 = vmatpush2.bf16.msra.mxu0 %v10659_v11  ;;  %1391 = vmatpush2.bf16.msra.mxu1 %v10659_v11 }
  0xa5   : > { %1050 = vmatprep.subr.bf16.mxu0 %v13049_v0  ;;  %1392 = vmatprep.subr.bf16.mxu1 %v13049_v0 }
  0xa8   : > { %1051 = vmatpush2.bf16.msra.mxu0 %v10666_v12  ;;  %1393 = vmatpush2.bf16.msra.mxu1 %v10666_v12 }
  0xa9   : > { %1052 = vmatprep.subr.bf16.mxu0 %v13049_v0  ;;  %1394 = vmatprep.subr.bf16.mxu1 %v13049_v0 }
  0xac   : > { %1053 = vmatpush2.bf16.msra.mxu0 %v10673_v13  ;;  %1395 = vmatpush2.bf16.msra.mxu1 %v10673_v13 }
  0xad   : > { %1054 = vmatprep.subr.bf16.mxu0 %v13049_v0  ;;  %1396 = vmatprep.subr.bf16.mxu1 %v13049_v0 }
  0xb0   : > { %1055 = vmatpush2.bf16.msra.mxu0 %v10680_v14  ;;  %1397 = vmatpush2.bf16.msra.mxu1 %v10680_v14 }
  0xb1   : > { %1056 = vmatprep.subr.bf16.mxu0 %v13049_v0  ;;  %1398 = vmatprep.subr.bf16.mxu1 %v13049_v0 }
  0xb4   : > { %1057 = vmatpush2.bf16.msra.mxu0 %v10687_v15  ;;  %1399 = vmatpush2.bf16.msra.mxu1 %v10687_v15 }
  0xb5   : > { %1058 = vmatprep.subr.bf16.mxu0 %v13049_v0  ;;  %1400 = vmatprep.subr.bf16.mxu1 %v13049_v0 }
  0xb8   : > { %1059 = vmatpush2.bf16.msra.mxu0 %v10694_v16  ;;  %1401 = vmatpush2.bf16.msra.mxu1 %v10694_v16 }
  0xb9   : > { %1712 = vmatprep.subr.bf16.mxu0 %v13049_v0  ;;  %2054 = vmatprep.subr.bf16.mxu1 %v13049_v0 }
  0xbb   : > { %1061 = vmatmul.mubr.bf16.vlgmr.msra.gmra.mxu0 %v9581_v17  ;;  %1403 = vmatmul.mubr.bf16.vlgmr.msra.gmra.mxu1 %v9584_v18  ;;  %v9734_v17 = vld [vmem:[%s13112_s29 + $0x30] sm:$0xff]   ;;  %v9741_v18 = vld [vmem:[%s13112_s29 + $0x68] sm:$0xff]  }
  0xbc   : > { %7544 = vmatprep.mubr.msk.bf16.mxu0 %vm985_vm0, %v9587_v19  ;;  %7614 = vmatprep.mubr.msk.bf16.mxu1 %vm985_vm0, %v9589_v20  ;;  %v9675_v19 = vld [vmem:[%s13111_s6 + $0x1d0] ss:$8 sps:$4 sm:$0xff]  }
  0xbd   : > { %1713 = vmatpush1.bf16.msra.mxu0 %v10597_v1  ;;  %2055 = vmatpush1.bf16.msra.mxu1 %v10597_v1  ;;  %v9653_v1 = vld [vmem:[%s13111_s6 + $0xc4] ss:$8 sps:$4 sm:$0xff]   ;;  %v9676_v20 = vld [vmem:[%s13111_s6 + $0x2b0] ss:$8 sps:$4 sm:$0xff]  }
  0xbe   : > { %1714 = vmatprep.subr.bf16.mxu0 %v13049_v0  ;;  %2056 = vmatprep.subr.bf16.mxu1 %v13049_v0 }
  0xc1   : > { %1715 = vmatpush1.bf16.msra.mxu0 %v10602_v2  ;;  %2057 = vmatpush1.bf16.msra.mxu1 %v10602_v2  ;;  %v9655_v2 = vld [vmem:[%s13111_s6 + $0x1a4] ss:$8 sps:$4 sm:$0xff]  }
  0xc2   : > { %1716 = vmatprep.subr.bf16.mxu0 %v13049_v0  ;;  %2058 = vmatprep.subr.bf16.mxu1 %v13049_v0 }
  0xc3   : > { %1069 = vmatmul.mubr.bf16.gmra.mxu0 %v9591_v21  ;;  %1411 = vmatmul.mubr.bf16.gmra.mxu1 %v9592_v22  ;;  %v10079_v21 = vld [vmem:[%s10594_s24 + $0x38] sm:$0xff]   ;;  %v9677_v22 = vld [vmem:[%s13111_s6 + $0x1e4] ss:$8 sps:$4 sm:$0xff]  }
  0xc4   : > { %7545 = vmatprep.mubr.msk.bf16.mxu0 %vm985_vm0, %v9593_v23  ;;  %7615 = vmatprep.mubr.msk.bf16.mxu1 %vm985_vm0, %v9595_v24  ;;  %v9679_v23 = vld [vmem:[%s13111_s6 + $0x2c4] ss:$8 sps:$4 sm:$0xff]  }
  0xc5   : > { %1717 = vmatpush1.bf16.msra.mxu0 %v10609_v3  ;;  %2059 = vmatpush1.bf16.msra.mxu1 %v10609_v3  ;;  %v9657_v3 = vld [vmem:[%s13111_s6 + $0xc0] ss:$8 sps:$4 sm:$0xff]  }
  0xc6   : > { %1718 = vmatprep.subr.bf16.mxu0 %v13049_v0  ;;  %2060 = vmatprep.subr.bf16.mxu1 %v13049_v0  ;;  %v9742_v24 = vld [vmem:[%s13112_s29 + $0x28] sm:$0xff]  }
  0xc9   : > { %1719 = vmatpush1.bf16.msra.mxu0 %v10616_v4  ;;  %2061 = vmatpush1.bf16.msra.mxu1 %v10616_v4  ;;  %v9658_v4 = vld [vmem:[%s13111_s6 + $0x1a0] ss:$8 sps:$4 sm:$0xff]  }
  0xca   : > { %1720 = vmatprep.subr.bf16.mxu0 %v13049_v0  ;;  %2062 = vmatprep.subr.bf16.mxu1 %v13049_v0 }
  0xcb   : > { %1077 = vmatmul.mubr.bf16.gmra.mxu0 %v9597_v25  ;;  %1419 = vmatmul.mubr.bf16.gmra.mxu1 %v9598_v26  ;;  %v10080_v25 = vld [vmem:[%s10594_s24 + $0x30] sm:$0xff]   ;;  %v9743_v26 = vld [vmem:[%s13112_s29 + $0x60] sm:$0xff]  }
  0xcc   : > { %7546 = vmatprep.mubr.msk.bf16.mxu0 %vm985_vm0, %v9599_v27  ;;  %7616 = vmatprep.mubr.msk.bf16.mxu1 %vm985_vm0, %v9601_v28  ;;  %v9744_v27 = vld [vmem:[%s13112_s29 + $0x20] sm:$0xff]   ;;  %v9751_v28 = vld [vmem:[%s13112_s29 + $0x58] sm:$0xff]  }
  0xcd   : > { %1721 = vmatpush1.bf16.msra.mxu0 %v10621_v5  ;;  %2063 = vmatpush1.bf16.msra.mxu1 %v10621_v5  ;;  %v9659_v5 = vld [vmem:[%s13111_s6 + $0xd4] ss:$8 sps:$4 sm:$0xff]  }
  0xce   : > { %1722 = vmatprep.subr.bf16.mxu0 %v13049_v0  ;;  %2064 = vmatprep.subr.bf16.mxu1 %v13049_v0 }
  0xd1   : > { %1723 = vmatpush1.bf16.msra.mxu0 %v10638_v8  ;;  %2065 = vmatpush1.bf16.msra.mxu1 %v10638_v8  ;;  %v9664_v8 = vld [vmem:[%s13111_s6 + $0x1b0] ss:$8 sps:$4 sm:$0xff]  }
  0xd2   : > { %1724 = vmatprep.subr.bf16.mxu0 %v13049_v0  ;;  %2066 = vmatprep.subr.bf16.mxu1 %v13049_v0 }
  0xd3   : > { %1085 = vmatmul.mubr.bf16.gmra.mxu0 %v9603_v29  ;;  %1427 = vmatmul.mubr.bf16.gmra.mxu1 %v9604_v30  ;;  %v9681_v29 = vld [vmem:[%s13111_s6 + $0x1e0] ss:$8 sps:$4 sm:$0xff]  }
  0xd4   : > { %7547 = vmatprep.mubr.msk.bf16.mxu0 %vm985_vm0, %v9605_v31  ;;  %7617 = vmatprep.mubr.msk.bf16.mxu1 %vm985_vm0, %v9607_v32  ;;  %v9682_v30 = vld [vmem:[%s13111_s6 + $0x2c0] ss:$8 sps:$4 sm:$0xff]   ;;  %v9683_v32 = vld [vmem:[%s13111_s6 + $0x1f4] ss:$8 sps:$4 sm:$0xff]  }
  0xd5   : > { %1725 = vmatpush1.bf16.msra.mxu0 %v10645_v9  ;;  %2067 = vmatpush1.bf16.msra.mxu1 %v10645_v9  ;;  %v9667_v9 = vld [vmem:[%s13111_s6 + $0x1c4] ss:$8 sps:$4 sm:$0xff]  }
  0xd6   : > { %1726 = vmatprep.subr.bf16.mxu0 %v13049_v0  ;;  %2068 = vmatprep.subr.bf16.mxu1 %v13049_v0  ;;  %v10081_v31 = vld [vmem:[%s10594_s24 + $0x28] sm:$0xff]  }
  0xd9   : > { %1727 = vmatpush1.bf16.msra.mxu0 %v10652_v10  ;;  %2069 = vmatpush1.bf16.msra.mxu1 %v10652_v10  ;;  %v9670_v10 = vld [vmem:[%s13111_s6 + $0x2a4] ss:$8 sps:$4 sm:$0xff]  }
  0xda   : > { %1732 = vmatprep.subr.bf16.mxu0 %v13049_v0  ;;  %2074 = vmatprep.subr.bf16.mxu1 %v13049_v0 }
  0xdb   : > { %1093 = vmatmul.mubr.bf16.gmra.mxu0 %v9609_v33  ;;  %1435 = vmatmul.mubr.bf16.gmra.mxu1 %v9610_v34  ;;  %v9685_v33 = vld [vmem:[%s13111_s6 + $0x2d4] ss:$8 sps:$4 sm:$0xff]  }
  0xdc   : > { %7548 = vmatprep.mubr.msk.bf16.mxu0 %vm985_vm0, %v9611_v35  ;;  %7618 = vmatprep.mubr.msk.bf16.mxu1 %vm985_vm0, %v9613_v36  ;;  %v9752_v34 = vld [vmem:[%s13112_s29 + $0x18] sm:$0xff]   ;;  %v10082_v35 = vld [vmem:[%s10594_s24 + $0x20] sm:$0xff]   ;;  %v9753_v36 = vld [vmem:[%s13112_s29 + $0x50] sm:$0xff]  }
  0xdd   : > { %1733 = vmatpush2.bf16.msra.mxu0 %v10659_v11  ;;  %2075 = vmatpush2.bf16.msra.mxu1 %v10659_v11  ;;  %v9665_v11 = vld [vmem:[%s13111_s6 + $0x1c0] ss:$8 sps:$4 sm:$0xff]  }
  0xde   : > { %1734 = vmatprep.subr.bf16.mxu0 %v13049_v0  ;;  %2076 = vmatprep.subr.bf16.mxu1 %v13049_v0 }
  0xe1   : > { %1735 = vmatpush2.bf16.msra.mxu0 %v10666_v12  ;;  %2077 = vmatpush2.bf16.msra.mxu1 %v10666_v12  ;;  %v9668_v12 = vld [vmem:[%s13111_s6 + $0x2a0] ss:$8 sps:$4 sm:$0xff]  }
  0xe2   : > { %1736 = vmatprep.subr.bf16.mxu0 %v13049_v0  ;;  %2078 = vmatprep.subr.bf16.mxu1 %v13049_v0 }
  0xe3   : > { %1101 = vmatmul.mubr.bf16.gmra.mxu0 %v9615_v37  ;;  %1443 = vmatmul.mubr.bf16.gmra.mxu1 %v9616_v38  ;;  %v9754_v37 = vld [vmem:[%s13112_s29 + $0x10] sm:$0xff]   ;;  %v9761_v38 = vld [vmem:[%s13112_s29 + $0x48] sm:$0xff]  }
  0xe4   : > { %7549 = vmatprep.mubr.msk.bf16.mxu0 %vm985_vm0, %v9617_v39  ;;  %7619 = vmatprep.mubr.msk.bf16.mxu1 %vm985_vm0, %v9619_v40  ;;  %v9687_v39 = vld [vmem:[%s13111_s6 + $0x1f0] ss:$8 sps:$4 sm:$0xff]  }
  0xe5   : > { %1737 = vmatpush2.bf16.msra.mxu0 %v10673_v13  ;;  %2079 = vmatpush2.bf16.msra.mxu1 %v10673_v13  ;;  %v9671_v13 = vld [vmem:[%s13111_s6 + $0x1d4] ss:$8 sps:$4 sm:$0xff]   ;;  %v9688_v40 = vld [vmem:[%s13111_s6 + $0x2d0] ss:$8 sps:$4 sm:$0xff]  }
  0xe6   : > { %1738 = vmatprep.subr.bf16.mxu0 %v13049_v0  ;;  %2080 = vmatprep.subr.bf16.mxu1 %v13049_v0 }
  0xe9   : > { %1739 = vmatpush2.bf16.msra.mxu0 %v10680_v14  ;;  %2081 = vmatpush2.bf16.msra.mxu1 %v10680_v14  ;;  %v9673_v14 = vld [vmem:[%s13111_s6 + $0x2b4] ss:$8 sps:$4 sm:$0xff]  }
  0xea   : > { %1740 = vmatprep.subr.bf16.mxu0 %v13049_v0  ;;  %2082 = vmatprep.subr.bf16.mxu1 %v13049_v0 }
  0xeb   : > { %1109 = vmatmul.mubr.bf16.gmra.mxu0 %v9621_v41  ;;  %1451 = vmatmul.mubr.bf16.gmra.mxu1 %v9622_v42  ;;  %v10083_v41 = vld [vmem:[%s10594_s24 + $0x18] sm:$0xff]   ;;  %v9689_v42 = vld [vmem:[%s13111_s6 + $0x204] ss:$8 sps:$4 sm:$0xff]  }
  0xec   : > { %7550 = vmatprep.mubr.msk.bf16.mxu0 %vm985_vm0, %v9623_v43  ;;  %7620 = vmatprep.mubr.msk.bf16.mxu1 %vm985_vm0, %v9625_v44  ;;  %v9691_v43 = vld [vmem:[%s13111_s6 + $0x2e4] ss:$8 sps:$4 sm:$0xff]  }
  0xed   : > { %1741 = vmatpush2.bf16.msra.mxu0 %v10687_v15  ;;  %2083 = vmatpush2.bf16.msra.mxu1 %v10687_v15  ;;  %v9732_v15 = vld [vmem:[%s13112_s29 + $0x38] sm:$0xff]   ;;  %v9762_v44 = vld [vmem:[%s13112_s29 + $0x8] sm:$0xff]  }
  0xee   : > { %1742 = vmatprep.subr.bf16.mxu0 %v13049_v0  ;;  %2084 = vmatprep.subr.bf16.mxu1 %v13049_v0 }
  0xf1   : > { %1743 = vmatpush2.bf16.msra.mxu0 %v10694_v16  ;;  %2085 = vmatpush2.bf16.msra.mxu1 %v10694_v16  ;;  %v9733_v16 = vld [vmem:[%s13112_s29 + $0x70] sm:$0xff]  }
  0xf2   : > { %2396 = vmatprep.subr.bf16.mxu0 %v13049_v0  ;;  %8175 = vmatprep.subr.bf16.mxu1 %v9731_v53  ;;  %v10086_v53 = vld [vmem:[%s10594_s24] sm:$0xff]  }
  0xf3   : > { %1117 = vmatmul.mubr.bf16.gmra.mxu0 %v9627_v45  ;;  %1459 = vmatmul.mubr.bf16.gmra.mxu1 %v9628_v46  ;;  %v10084_v45 = vld [vmem:[%s10594_s24 + $0x10] sm:$0xff]   ;;  %v9763_v46 = vld [vmem:[%s13112_s29 + $0x40] sm:$0xff]  }
  0xf4   : > { %7551 = vmatprep.mubr.msk.bf16.mxu0 %vm985_vm0, %v9629_v47  ;;  %7621 = vmatprep.mubr.msk.bf16.mxu1 %vm985_vm0, %v9631_v48  ;;  %v9764_v47 = vld [vmem:[%s13112_s29] sm:$0xff]  }
  0xf5   : > { %v9693_v48 = vld [vmem:[%s13111_s6 + $0x200] ss:$8 sps:$4 sm:$0xff]  }
  0xfb   : > { %1125 = vmatmul.mubr.bf16.gmra.mxu0 %v9633_v49  ;;  %1467 = vmatmul.mubr.bf16.gmra.mxu1 %v9634_v50  ;;  %v9694_v49 = vld [vmem:[%s13111_s6 + $0x2e0] ss:$8 sps:$4 sm:$0xff]  }
  0xfc   : > { %7552 = vmatprep.mubr.msk.bf16.mxu0 %vm985_vm0, %v9635_v51  ;;  %7622 = vmatprep.mubr.msk.bf16.mxu1 %vm985_vm0, %v9637_v52  ;;  %v10085_v50 = vld [vmem:[%s10594_s24 + $0x8] sm:$0xff]   ;;  %v9695_v51 = vld [vmem:[%s13111_s6 + $0x214] ss:$8 sps:$4 sm:$0xff]  }
  0xfd   : > { %v9697_v52 = vld [vmem:[%s13111_s6 + $0x2f4] ss:$8 sps:$4 sm:$0xff]  }
 0x103   : > { %1133 = vmatmul.mubr.bf16.gmra.mxu0 %v9639_v54  ;;  %1475 = vmatmul.mubr.bf16.gmra.mxu1 %v9640_v55  ;;  %v9699_v54 = vld [vmem:[%s13111_s6 + $0x210] ss:$8 sps:$4 sm:$0xff]  }
 0x104   : > { %7553 = vmatprep.mubr.msk.bf16.mxu0 %vm985_vm0, %v9641_v56  ;;  %7623 = vmatprep.mubr.msk.bf16.mxu1 %vm985_vm0, %v9643_v57  ;;  %v9700_v55 = vld [vmem:[%s13111_s6 + $0x2f0] ss:$8 sps:$4 sm:$0xff]   ;;  %v10087_v56 = vld [vmem:[%s10594_s24 + $0x68] sm:$0xff]  }
 0x105   : > { %v9701_v57 = vld [vmem:[%s13111_s6 + $0x224] ss:$8 sps:$4 sm:$0xff]  }
 0x10b   : > { %1141 = vmatmul.mubr.bf16.gmra.mxu0 %v9645_v58  ;;  %1483 = vmatmul.mubr.bf16.gmra.mxu1 %v9646_v59  ;;  %v9703_v58 = vld [vmem:[%s13111_s6 + $0x304] ss:$8 sps:$4 sm:$0xff]  }
 0x10c   : > { %7554 = vmatprep.mubr.msk.bf16.mxu0 %vm985_vm0, %v9647_v60  ;;  %7624 = vmatprep.mubr.msk.bf16.mxu1 %vm985_vm0, %v9649_v61  ;;  %v10088_v59 = vld [vmem:[%s10594_s24 + $0x60] sm:$0xff]  }
 0x10d   : > { %v9705_v60 = vld [vmem:[%s13111_s6 + $0x220] ss:$8 sps:$4 sm:$0xff]  }
 0x10e   : > { %v9706_v61 = vld [vmem:[%s13111_s6 + $0x300] ss:$8 sps:$4 sm:$0xff]  }
 0x113   : > { %1149 = vmatmul.mubr.bf16.gmra.mxu0 %v9651_v62  ;;  %1491 = vmatmul.mubr.bf16.gmra.mxu1 %v9652_v63  ;;  %v10089_v62 = vld [vmem:[%s10594_s24 + $0x58] sm:$0xff]  }
 0x114   : > { %7555 = vmatprep.mubr.msk.bf16.mxu0 %vm985_vm0, %v9653_v1  ;;  %7625 = vmatprep.mubr.msk.bf16.mxu1 %vm985_vm0, %v9655_v2  ;;  %v9707_v63 = vld [vmem:[%s13111_s6 + $0x234] ss:$8 sps:$4 sm:$0xff]  }
 0x115   : > { %v9709_v1 = vld [vmem:[%s13111_s6 + $0x314] ss:$8 sps:$4 sm:$0xff]  }
 0x116   : > { %v10090_v2 = vld [vmem:[%s10594_s24 + $0x50] sm:$0xff]  }
 0x11b   : > { %1157 = vmatmul.mubr.bf16.gmra.mxu0 %v9657_v3  ;;  %1499 = vmatmul.mubr.bf16.gmra.mxu1 %v9658_v4  ;;  %v9711_v3 = vld [vmem:[%s13111_s6 + $0x230] ss:$8 sps:$4 sm:$0xff]  }
 0x11c   : > { %7556 = vmatprep.mubr.msk.bf16.mxu0 %vm985_vm0, %v9659_v5  ;;  %7626 = vmatprep.mubr.msk.bf16.mxu1 %vm985_vm0, %v9661_v6  ;;  %v9712_v4 = vld [vmem:[%s13111_s6 + $0x310] ss:$8 sps:$4 sm:$0xff]   ;;  %v10091_v5 = vld [vmem:[%s10594_s24 + $0x48] sm:$0xff]  }
 0x11d   : > { %v9713_v6 = vld [vmem:[%s13111_s6 + $0x244] ss:$8 sps:$4 sm:$0xff]  }
 0x123   : > { %1165 = vmatmul.mubr.bf16.gmra.mxu0 %v9663_v7  ;;  %1507 = vmatmul.mubr.bf16.gmra.mxu1 %v9664_v8  ;;  %v9715_v7 = vld [vmem:[%s13111_s6 + $0x324] ss:$8 sps:$4 sm:$0xff]  }
 0x124   : > { %7683 = vmatprep.mubr.msk.bf16.mxu0 %vm985_vm0, %v9667_v9  ;;  %7753 = vmatprep.mubr.msk.bf16.mxu1 %vm985_vm0, %v9670_v10  ;;  %v10092_v8 = vld [vmem:[%s10594_s24 + $0x40] sm:$0xff]   ;;  %s7499_s24 = sshll.u32 %s709_s19, 3 }
 0x125   : > { %v9717_v9 = vld [vmem:[%s13111_s6 + $0x240] ss:$8 sps:$4 sm:$0xff]   ;;  %s711_s20 = scalar_lea.vmem [#allocation13], %s7499_s24  ;;  %s10253_s24 = sshll.u32 %s10340_s2, 4  ;;  %s10254_s24 = int_to_ptr.vmem [resolvable:$false] %s10253_s24 }
 0x126   : > { %v9718_v10 = vld [vmem:[%s13111_s6 + $0x320] ss:$8 sps:$4 sm:$0xff]   ;;  %s7364_s21 = sshll.u32 %s711_s20, 4  ;;  %s10255_s30 = scalar_lea.vmem %s10254_s24, 256  ;;  %s12979_s21 = int_to_ptr.vmem [resolvable:$true] %s7364_s21 }
 0x127   : > { %p10256_p13 = scmp.lt.s32.totalorder %s12979_s21, %s10254_s24 }
 0x12b   : > { %1745 = vmatmul.mubr.bf16.vlgmr.msra.gmra.mxu0 %v9665_v11  ;;  %2087 = vmatmul.mubr.bf16.vlgmr.msra.gmra.mxu1 %v9668_v12  ;;  %v9719_v11 = vld [vmem:[%s13111_s6 + $0x254] ss:$8 sps:$4 sm:$0xff]  }
 0x12c   : > { %7684 = vmatprep.mubr.msk.bf16.mxu0 %vm985_vm0, %v9671_v13  ;;  %7754 = vmatprep.mubr.msk.bf16.mxu1 %vm985_vm0, %v9673_v14  ;;  %v9721_v12 = vld [vmem:[%s13111_s6 + $0x334] ss:$8 sps:$4 sm:$0xff]   ;;  %v9723_v14 = vld [vmem:[%s13111_s6 + $0x250] ss:$8 sps:$4 sm:$0xff]  }
 0x12d   : > { %2397 = vmatpush1.bf16.msra.mxu0 %v10079_v21  ;;  %8176 = vmatpush3.bf16.msra.mxu1 %v9732_v15  ;;  %v9798_v13 = vld [vmem:[%s13112_s29 + $0xf8] sm:$0xff]  }
 0x12e   : > { %2398 = vmatprep.subr.bf16.mxu0 %v13049_v0  ;;  %8177 = vmatprep.subr.bf16.mxu1 %v9733_v16  ;;  %v9724_v15 = vld [vmem:[%s13111_s6 + $0x330] ss:$8 sps:$4 sm:$0xff]   ;;  %v9725_v16 = vld [vmem:[%s13111_s6 + $0x264] ss:$8 sps:$4 sm:$0xff]   ;;  %v9737_v21 = vld [vmem:[%s13111_s6 + $0x354] ss:$8 sps:$4 sm:$0xff]  }
 0x131   : > { %2399 = vmatpush1.bf16.msra.mxu0 %v10080_v25  ;;  %8178 = vmatpush3.bf16.msra.mxu1 %v9734_v17  ;;  %v9727_v17 = vld [vmem:[%s13111_s6 + $0x344] ss:$8 sps:$4 sm:$0xff]  }
 0x132   : > { %2400 = vmatprep.subr.bf16.mxu0 %v13049_v0  ;;  %8179 = vmatprep.subr.bf16.mxu1 %v9741_v18  ;;  %v9729_v18 = vld [vmem:[%s13111_s6 + $0x260] ss:$8 sps:$4 sm:$0xff]  }
 0x133   : > { %1753 = vmatmul.mubr.bf16.gmra.mxu0 %v9675_v19  ;;  %2095 = vmatmul.mubr.bf16.gmra.mxu1 %v9676_v20  ;;  %v9730_v19 = vld [vmem:[%s13111_s6 + $0x340] ss:$8 sps:$4 sm:$0xff]   ;;  %v9735_v20 = vld [vmem:[%s13111_s6 + $0x274] ss:$8 sps:$4 sm:$0xff]  }
 0x134   : > { %7685 = vmatprep.mubr.msk.bf16.mxu0 %vm985_vm0, %v9677_v22  ;;  %7755 = vmatprep.mubr.msk.bf16.mxu1 %vm985_vm0, %v9679_v23 }
 0x135   : > { %2401 = vmatpush1.bf16.msra.mxu0 %v10081_v31  ;;  %8180 = vmatpush3.bf16.msra.mxu1 %v9742_v24  ;;  %v9747_v31 = vld [vmem:[%s13111_s6 + $0x364] ss:$8 sps:$4 sm:$0xff]  }
 0x136   : > { %2402 = vmatprep.subr.bf16.mxu0 %v13049_v0  ;;  %8181 = vmatprep.subr.bf16.mxu1 %v9743_v26  ;;  %v9739_v26 = vld [vmem:[%s13111_s6 + $0x270] ss:$8 sps:$4 sm:$0xff]  }
 0x139   : > { %2403 = vmatpush1.bf16.msra.mxu0 %v10082_v35  ;;  %8182 = vmatpush3.bf16.msra.mxu1 %v9744_v27  ;;  %v9740_v27 = vld [vmem:[%s13111_s6 + $0x350] ss:$8 sps:$4 sm:$0xff]  }
 0x13a   : > { %2404 = vmatprep.subr.bf16.mxu0 %v13049_v0  ;;  %8183 = vmatprep.subr.bf16.mxu1 %v9751_v28  ;;  %v9745_v28 = vld [vmem:[%s13111_s6 + $0x284] ss:$8 sps:$4 sm:$0xff]  }
 0x13b   : > { %1761 = vmatmul.mubr.bf16.gmra.mxu0 %v9681_v29  ;;  %2103 = vmatmul.mubr.bf16.gmra.mxu1 %v9682_v30 }
 0x13c   : > { %7686 = vmatprep.mubr.msk.bf16.mxu0 %vm985_vm0, %v9683_v32  ;;  %7756 = vmatprep.mubr.msk.bf16.mxu1 %vm985_vm0, %v9685_v33 }
 0x13d   : > { %2405 = vmatpush1.bf16.msra.mxu0 %v10083_v41  ;;  %8184 = vmatpush3.bf16.msra.mxu1 %v9752_v34  ;;  %v9757_v41 = vld [vmem:[%s13111_s6 + $0x374] ss:$8 sps:$4 sm:$0xff]  }
 0x13e   : > { %2406 = vmatprep.subr.bf16.mxu0 %v13049_v0  ;;  %8185 = vmatprep.subr.bf16.mxu1 %v9753_v36 }
 0x141   : > { %2407 = vmatpush1.bf16.msra.mxu0 %v10084_v45  ;;  %8186 = vmatpush3.bf16.msra.mxu1 %v9754_v37 }
 0x142   : > { %2408 = vmatprep.subr.bf16.mxu0 %v13049_v0  ;;  %8187 = vmatprep.subr.bf16.mxu1 %v9761_v38  ;;  %v9749_v38 = vld [vmem:[%s13111_s6 + $0x280] ss:$8 sps:$4 sm:$0xff]  }
 0x143   : > { %1769 = vmatmul.mubr.bf16.gmra.mxu0 %v9687_v39  ;;  %2111 = vmatmul.mubr.bf16.gmra.mxu1 %v9688_v40  ;;  %v9750_v39 = vld [vmem:[%s13111_s6 + $0x360] ss:$8 sps:$4 sm:$0xff]   ;;  %v9755_v40 = vld [vmem:[%s13111_s6 + $0x294] ss:$8 sps:$4 sm:$0xff]  }
 0x144   : > { %7687 = vmatprep.mubr.msk.bf16.mxu0 %vm985_vm0, %v9689_v42  ;;  %7757 = vmatprep.mubr.msk.bf16.mxu1 %vm985_vm0, %v9691_v43 }
 0x145   : > { %2409 = vmatpush1.bf16.msra.mxu0 %v10085_v50  ;;  %8188 = vmatpush3.bf16.msra.mxu1 %v9762_v44  ;;  %v9759_v50 = vld [vmem:[%s13111_s6 + $0x290] ss:$8 sps:$4 sm:$0xff]  }
 0x146   : > { %2410 = vmatprep.subr.bf16.mxu0 %v13049_v0  ;;  %8189 = vmatprep.subr.bf16.mxu1 %v9763_v46 }
 0x149   : > { %2411 = vmatpush1.bf16.msra.mxu0 %v10086_v53  ;;  %8190 = vmatpush3.bf16.msra.mxu1 %v9764_v47 }
 0x14a   : > { %2416 = vmatprep.subr.bf16.mxu0 %v13049_v0 }
 0x14b   : > { %1777 = vmatmul.mubr.bf16.gmra.mxu0 %v9693_v48  ;;  %2119 = vmatmul.mubr.bf16.gmra.mxu1 %v9694_v49 }
 0x14c   : > { %7688 = vmatprep.mubr.msk.bf16.mxu0 %vm985_vm0, %v9695_v51  ;;  %7758 = vmatprep.mubr.msk.bf16.mxu1 %vm985_vm0, %v9697_v52  ;;  %v9760_v51 = vld [vmem:[%s13111_s6 + $0x370] ss:$8 sps:$4 sm:$0xff]   ;;  %v9767_v52 = vld [vmem:[%s13111_s6 + $0x384] ss:$8 sps:$4 sm:$0xff]  }
 0x14d   : > { %2417 = vmatpush2.bf16.msra.mxu0 %v10087_v56 }
 0x14e   : > { %2418 = vmatprep.subr.bf16.mxu0 %v13049_v0 }
 0x151   : > { %2419 = vmatpush2.bf16.msra.mxu0 %v10088_v59 }
 0x152   : > { %2420 = vmatprep.subr.bf16.mxu0 %v13049_v0 }
 0x153   : > { %1785 = vmatmul.mubr.bf16.gmra.mxu0 %v9699_v54  ;;  %2127 = vmatmul.mubr.bf16.gmra.mxu1 %v9700_v55 }
 0x154   : > { %7689 = vmatprep.mubr.msk.bf16.mxu0 %vm985_vm0, %v9701_v57  ;;  %7759 = vmatprep.mubr.msk.bf16.mxu1 %vm985_vm0, %v9703_v58 }
 0x155   : > { %2421 = vmatpush2.bf16.msra.mxu0 %v10089_v62  ;;  %v9765_v62 = vld [vmem:[%s13111_s6 + $0x380] ss:$8 sps:$4 sm:$0xff]  }
 0x156   : > { %2422 = vmatprep.subr.bf16.mxu0 %v13049_v0 }
 0x159   : > { %2423 = vmatpush2.bf16.msra.mxu0 %v10090_v2 }
 0x15a   : > { %2424 = vmatprep.subr.bf16.mxu0 %v13049_v0 }
 0x15b   : > { %1793 = vmatmul.mubr.bf16.gmra.mxu0 %v9705_v60  ;;  %2135 = vmatmul.mubr.bf16.gmra.mxu1 %v9706_v61 }
 0x15c   : > { %7690 = vmatprep.mubr.msk.bf16.mxu0 %vm985_vm0, %v9707_v63  ;;  %7760 = vmatprep.mubr.msk.bf16.mxu1 %vm985_vm0, %v9709_v1  ;;  %v9768_v63 = vld [vmem:[%s13111_s6 + $0x394] ss:$8 sps:$4 sm:$0xff]  }
 0x15d   : > { %2425 = vmatpush2.bf16.msra.mxu0 %v10091_v5  ;;  %v9800_v5 = vld [vmem:[%s13112_s29 + $0xf0] sm:$0xff]  }
 0x15e   : > { %2426 = vmatprep.subr.bf16.mxu0 %v13049_v0 }
 0x161   : > { %2427 = vmatpush2.bf16.msra.mxu0 %v10092_v8 }
 0x162   : > { %8275 = vmatprep.subr.bf16.mxu0 %v9798_v13 }
 0x163   : > { %1801 = vmatmul.mubr.bf16.gmra.mxu0 %v9711_v3  ;;  %2143 = vmatmul.mubr.bf16.gmra.mxu1 %v9712_v4  ;;  %v9799_v3 = vld [vmem:[%s13112_s29 + $0xb8] sm:$0xff]  }
 0x164   : > { %7691 = vmatprep.mubr.msk.bf16.mxu0 %vm985_vm0, %v9713_v6  ;;  %7761 = vmatprep.mubr.msk.bf16.mxu1 %vm985_vm0, %v9715_v7 }
 0x16b   : > { %1809 = vmatmul.mubr.bf16.gmra.mxu0 %v9717_v9  ;;  %2151 = vmatmul.mubr.bf16.gmra.mxu1 %v9718_v10 }
 0x16c   : > { %7692 = vmatprep.mubr.msk.bf16.mxu0 %vm985_vm0, %v9719_v11  ;;  %7762 = vmatprep.mubr.msk.bf16.mxu1 %vm985_vm0, %v9721_v12  ;;  %v9801_v11 = vld [vmem:[%s13112_s29 + $0xb0] sm:$0xff]   ;;  %v9805_v12 = vld [vmem:[%s13112_s29 + $0xe8] sm:$0xff]  }
 0x173   : > { %1817 = vmatmul.mubr.bf16.gmra.mxu0 %v9723_v14  ;;  %2159 = vmatmul.mubr.bf16.gmra.mxu1 %v9724_v15  ;;  %v9770_v15 = vld [vmem:[%s13111_s6 + $0x390] ss:$8 sps:$4 sm:$0xff]  }
 0x174   : > { %7693 = vmatprep.mubr.msk.bf16.mxu0 %vm985_vm0, %v9725_v16  ;;  %7763 = vmatprep.mubr.msk.bf16.mxu1 %vm985_vm0, %v9727_v17  ;;  %v9771_v16 = vld [vmem:[%s13111_s6 + $0x3a4] ss:$8 sps:$4 sm:$0xff]  }
 0x17b   : > { %v11183_v22 = vpop.f32.mrf.mxu0  ;;  %v1404_v23 = vpop.f32.mrf.mxu1  ;;  %1825 = vmatmul.mubr.bf16.gmra.mxu0 %v9729_v18  ;;  %2167 = vmatmul.mubr.bf16.gmra.mxu1 %v9730_v19  ;;  %v9806_v19 = vld [vmem:[%s13112_s29 + $0xa8] sm:$0xff]  }
 0x17c   : > { %7694 = vmatprep.mubr.msk.bf16.mxu0 %vm985_vm0, %v9735_v20  ;;  %7764 = vmatprep.mubr.msk.bf16.mxu1 %vm985_vm0, %v9737_v21  ;;  %v9807_v21 = vld [vmem:[%s13112_s29 + $0xe0] sm:$0xff]  }
 0x17d   : > { %v1064_v24 = vpop.f32.mrf.mxu0  ;;  %v1406_v25 = vpop.f32.mrf.mxu1 }
 0x17f   : > { %v1065_v29 = vpop.f32.mrf.mxu0  ;;  %v1407_v30 = vpop.f32.mrf.mxu1 }
 0x180   : > { %v11230_v55 = vpack.c.bf16 %v1407_v30, %v1404_v23  ;;  %v11253_v6 = vpack.c.bf16 %v1065_v29, %v11183_v22  ;;  %v9808_v29 = vld [vmem:[%s13112_s29 + $0xa0] sm:$0xff]   ;;  %v9812_v30 = vld [vmem:[%s13112_s29 + $0xd8] sm:$0xff]  }
 0x181   : > { %v1067_v32 = vpop.f32.mrf.mxu0  ;;  %v1409_v33 = vpop.f32.mrf.mxu1 }
 0x182   : > { %v9773_v33 = vld [vmem:[%s13111_s6 + $0x3a0] ss:$8 sps:$4 sm:$0xff]  }
 0x183   : > { %v11199_v34 = vpop.f32.mrf.mxu0  ;;  %v1412_v35 = vpop.f32.mrf.mxu1  ;;  %1833 = vmatmul.mubr.bf16.gmra.mxu0 %v9739_v26  ;;  %2175 = vmatmul.mubr.bf16.gmra.mxu1 %v9740_v27 }
 0x184   : > { %7695 = vmatprep.mubr.msk.bf16.mxu0 %vm985_vm0, %v9745_v28  ;;  %7765 = vmatprep.mubr.msk.bf16.mxu1 %vm985_vm0, %v9747_v31 }
 0x185   : > { %v1072_v36 = vpop.f32.mrf.mxu0  ;;  %v1414_v37 = vpop.f32.mrf.mxu1 }
 0x187   : > { %v1073_v42 = vpop.f32.mrf.mxu0  ;;  %v1415_v43 = vpop.f32.mrf.mxu1 }
 0x188   : > { %v11247_v4 = vpack.c.bf16 %v1415_v43, %v1412_v35  ;;  %v11283_v22 = vpack.c.bf16 %v1073_v42, %v11199_v34  ;;  %v9774_v35 = vld [vmem:[%s13111_s6 + $0x3b4] ss:$8 sps:$4 sm:$0xff]  }
 0x189   : > { %v1075_v44 = vpop.f32.mrf.mxu0  ;;  %v1417_v45 = vpop.f32.mrf.mxu1 }
 0x18a   : > { %v9815_v45 = vld [vmem:[%s13112_s29 + $0x90] sm:$0xff]  }
 0x18b   : > { %v11215_v46 = vpop.f32.mrf.mxu0  ;;  %v1420_v47 = vpop.f32.mrf.mxu1  ;;  %1841 = vmatmul.mubr.bf16.gmra.mxu0 %v9749_v38  ;;  %2183 = vmatmul.mubr.bf16.gmra.mxu1 %v9750_v39  ;;  %v9813_v39 = vld [vmem:[%s13112_s29 + $0x98] sm:$0xff]  }
 0x18c   : > { %7696 = vmatprep.mubr.msk.bf16.mxu0 %vm985_vm0, %v9755_v40  ;;  %7766 = vmatprep.mubr.msk.bf16.mxu1 %vm985_vm0, %v9757_v41  ;;  %v9814_v40 = vld [vmem:[%s13112_s29 + $0xd0] sm:$0xff]  }
 0x18d   : > { %v1080_v48 = vpop.f32.mrf.mxu0  ;;  %v1422_v49 = vpop.f32.mrf.mxu1 }
 0x18e   : > { %v9776_v49 = vld [vmem:[%s13111_s6 + $0x3b0] ss:$8 sps:$4 sm:$0xff]  }
 0x18f   : > { %v11228_v53 = vpop.f32.mrf.mxu0  ;;  %v1423_v54 = vpop.f32.mrf.mxu1 }
 0x190   : > { %v11277_v20 = vpack.c.bf16 %v1423_v54, %v1420_v47  ;;  %v11308_v36 = vpack.c.bf16 %v11228_v53, %v11215_v46  ;;  %v9819_v46 = vld [vmem:[%s13112_s29 + $0xc8] sm:$0xff]  }
 0x191   : > { %v1083_v56 = vpop.f32.mrf.mxu0  ;;  %v1425_v57 = vpop.f32.mrf.mxu1 }
 0x192   : > { %v9820_v56 = vld [vmem:[%s13112_s29 + $0x88] sm:$0xff]   ;;  %v9821_v57 = vld [vmem:[%s13112_s29 + $0xc0] sm:$0xff]  }
 0x193   : > { %v11232_v58 = vpop.f32.mrf.mxu0  ;;  %v1428_v59 = vpop.f32.mrf.mxu1  ;;  %1849 = vmatmul.mubr.bf16.gmra.mxu0 %v9759_v50  ;;  %2191 = vmatmul.mubr.bf16.gmra.mxu1 %v9760_v51  ;;  %v9777_v51 = vld [vmem:[%s13111_s6 + $0x3c4] ss:$8 sps:$4 sm:$0xff]  }
 0x194   : > { %7823 = vmatprep.mubr.msk.bf16.mxu0 %vm985_vm0, %v9767_v52  ;;  %2970 = vmatprep.mubr.bf16.mxu1 %v11230_v55 }
 0x195   : > { %v1088_v60 = vpop.f32.mrf.mxu0  ;;  %v1430_v61 = vpop.f32.mrf.mxu1 }
 0x197   : > { %v11242_v1 = vpop.f32.mrf.mxu0  ;;  %v1431_v2 = vpop.f32.mrf.mxu1 }
 0x198   : > { %v11301_v34 = vpack.c.bf16 %v1431_v2, %v1428_v59  ;;  %v11337_v52 = vpack.c.bf16 %v11242_v1, %v11232_v58  ;;  %v9779_v2 = vld [vmem:[%s13111_s6 + $0x3c0] ss:$8 sps:$4 sm:$0xff]  }
 0x199   : > { %v1091_v7 = vpop.f32.mrf.mxu0  ;;  %v1433_v8 = vpop.f32.mrf.mxu1 }
 0x19b   : > { %v11255_v9 = vpop.f32.mrf.mxu0  ;;  %v1436_v10 = vpop.f32.mrf.mxu1  ;;  %2429 = vmatmul.mubr.bf16.vlgmr.msra.gmra.mxu0 %v9765_v62  ;;  %2971 = vmatmul.mubr.bf16.vlgmr.msra.gmra.mxu1 %v11253_v6  ;;  %v9822_v62 = vld [vmem:[%s13112_s29 + $0x80] sm:$0xff]  }
 0x19c   : > { %7824 = vmatprep.mubr.msk.bf16.mxu0 %vm985_vm0, %v9768_v63  ;;  %2978 = vmatprep.mubr.bf16.mxu1 %v11247_v4 }
 0x19d   : > { %v1096_v13 = vpop.f32.mrf.mxu0  ;;  %v1438_v14 = vpop.f32.mrf.mxu1  ;;  %8276 = vmatpush3.bf16.msra.mxu0 %v9799_v3 }
 0x19e   : > { %8277 = vmatprep.subr.bf16.mxu0 %v9800_v5  ;;  %v9780_v5 = vld [vmem:[%s13111_s6 + $0x3d4] ss:$8 sps:$4 sm:$0xff]  }
 0x19f   : > { %v11272_v17 = vpop.f32.mrf.mxu0  ;;  %v1439_v18 = vpop.f32.mrf.mxu1 }
 0x1a0   : > { %v11330_v50 = vpack.c.bf16 %v1439_v18, %v1436_v10  ;;  %v11363_v7 = vpack.c.bf16 %v11272_v17, %v11255_v9  ;;  %v9782_v9 = vld [vmem:[%s13111_s6 + $0x3d0] ss:$8 sps:$4 sm:$0xff]   ;;  %v9783_v18 = vld [vmem:[%s13111_s6 + $0x3e4] ss:$8 sps:$4 sm:$0xff]  }
 0x1a1   : > { %v1099_v23 = vpop.f32.mrf.mxu0  ;;  %v1441_v24 = vpop.f32.mrf.mxu1  ;;  %8278 = vmatpush3.bf16.msra.mxu0 %v9801_v11 }
 0x1a2   : > { %8279 = vmatprep.subr.bf16.mxu0 %v9805_v12 }
 0x1a3   : > { %v11285_v25 = vpop.f32.mrf.mxu0  ;;  %v1444_v26 = vpop.f32.mrf.mxu1  ;;  %2437 = vmatmul.mubr.bf16.gmra.mxu0 %v9770_v15  ;;  %2979 = vmatmul.mubr.bf16.gmra.mxu1 %v11283_v22 }
 0x1a4   : > { %7825 = vmatprep.mubr.msk.bf16.mxu0 %vm985_vm0, %v9771_v16  ;;  %2986 = vmatprep.mubr.bf16.mxu1 %v11277_v20 }
 0x1a5   : > { %v1104_v27 = vpop.f32.mrf.mxu0  ;;  %v1446_v28 = vpop.f32.mrf.mxu1  ;;  %8280 = vmatpush3.bf16.msra.mxu0 %v9806_v19 }
 0x1a6   : > { %8281 = vmatprep.subr.bf16.mxu0 %v9807_v21 }
 0x1a7   : > { %v11296_v31 = vpop.f32.mrf.mxu0  ;;  %v1447_v32 = vpop.f32.mrf.mxu1 }
 0x1a8   : > { %v11356_v3 = vpack.c.bf16 %v1447_v32, %v1444_v26  ;;  %v11382_v19 = vpack.c.bf16 %v11296_v31, %v11285_v25  ;;  %v9785_v25 = vld [vmem:[%s13111_s6 + $0x3e0] ss:$8 sps:$4 sm:$0xff]   ;;  %v9786_v32 = vld [vmem:[%s13111_s6 + $0x3f4] ss:$8 sps:$4 sm:$0xff]  }
 0x1a9   : > { %v1107_v37 = vpop.f32.mrf.mxu0  ;;  %v1449_v38 = vpop.f32.mrf.mxu1  ;;  %8282 = vmatpush3.bf16.msra.mxu0 %v9808_v29 }
 0x1aa   : > { %8283 = vmatprep.subr.bf16.mxu0 %v9812_v30  ;;  %13114 = vst [vmem:[#allocation26_spill] sm:$0xff] %v11382_v19 }
 0x1ab   : > { %v11316_v41 = vpop.f32.mrf.mxu0  ;;  %v1452_v42 = vpop.f32.mrf.mxu1  ;;  %2445 = vmatmul.mubr.bf16.gmra.mxu0 %v9773_v33  ;;  %2987 = vmatmul.mubr.bf16.gmra.mxu1 %v11308_v36  ;;  %v9823_v33 = vld [vmem:[%s13112_s29 + $0x138] sm:$0xff]  }
 0x1ac   : > { %7826 = vmatprep.mubr.msk.bf16.mxu0 %vm985_vm0, %v9774_v35  ;;  %2994 = vmatprep.mubr.bf16.mxu1 %v11301_v34 }
 0x1ad   : > { %v1112_v43 = vpop.f32.mrf.mxu0  ;;  %v1454_v44 = vpop.f32.mrf.mxu1  ;;  %8284 = vmatpush3.bf16.msra.mxu0 %v9813_v39  ;;  %8990 = vmatprep.subr.bf16.mxu1 %v9823_v33 }
 0x1ae   : > { %8285 = vmatprep.subr.bf16.mxu0 %v9814_v40  ;;  %8991 = vmatpush3.bf16.msra.mxu1 %v9823_v33 }
 0x1af   : > { %v1113_v47 = vpop.f32.mrf.mxu0  ;;  %v1455_v48 = vpop.f32.mrf.mxu1 }
 0x1b0   : > { %v11375_v17 = vpack.c.bf16 %v1455_v48, %v1452_v42  ;;  %v11403_v35 = vpack.c.bf16 %v1113_v47, %v11316_v41  ;;  %v9824_v42 = vld [vmem:[%s13112_s29 + $0x130] sm:$0xff]   ;;  %v9789_v48 = vld [vmem:[%s13111_s6 + $0x404] ss:$8 sps:$4 sm:$0xff]  }
 0x1b1   : > { %v1115_v53 = vpop.f32.mrf.mxu0  ;;  %v1457_v54 = vpop.f32.mrf.mxu1  ;;  %8286 = vmatpush3.bf16.msra.mxu0 %v9815_v45  ;;  %8992 = vmatprep.subr.bf16.mxu1 %v9824_v42 }
 0x1b2   : > { %8287 = vmatprep.subr.bf16.mxu0 %v9819_v46  ;;  %13113 = vst [vmem:[#allocation25_spill] sm:$0xff] %v11375_v17  ;;  %13116 = vst [vmem:[#allocation28_spill] sm:$0xff] %v11403_v35  ;;  %v9788_v46 = vld [vmem:[%s13111_s6 + $0x3f0] ss:$8 sps:$4 sm:$0xff]   ;;  %8993 = vmatpush3.bf16.msra.mxu1 %v9824_v42 }
 0x1b3   : > { %v11345_v59 = vpop.f32.mrf.mxu0  ;;  %v1460_v60 = vpop.f32.mrf.mxu1  ;;  %2453 = vmatmul.mubr.bf16.gmra.mxu0 %v9776_v49  ;;  %2995 = vmatmul.mubr.bf16.gmra.mxu1 %v11337_v52  ;;  %v9825_v49 = vld [vmem:[%s13112_s29 + $0x128] sm:$0xff]  }
 0x1b4   : > { %7827 = vmatprep.mubr.msk.bf16.mxu0 %vm985_vm0, %v9777_v51  ;;  %3002 = vmatprep.mubr.bf16.mxu1 %v11330_v50 }
 0x1b5   : > { %v1120_v58 = vpop.f32.mrf.mxu0  ;;  %v1462_v61 = vpop.f32.mrf.mxu1  ;;  %8288 = vmatpush3.bf16.msra.mxu0 %v9820_v56  ;;  %8994 = vmatprep.subr.bf16.mxu1 %v9825_v49 }
 0x1b6   : > { %8289 = vmatprep.subr.bf16.mxu0 %v9821_v57  ;;  %8995 = vmatpush3.bf16.msra.mxu1 %v9825_v49 }
 0x1b7   : > { %v1121_v63 = vpop.f32.mrf.mxu0  ;;  %v1463_v1 = vpop.f32.mrf.mxu1 }
 0x1b8   : > { %v11394_v31 = vpack.c.bf16 %v1463_v1, %v1460_v60  ;;  %v11427_v51 = vpack.c.bf16 %v1121_v63, %v11345_v59  ;;  %v9826_v60 = vld [vmem:[%s13112_s29 + $0x120] sm:$0xff]  }
 0x1b9   : > { %v1123_v8 = vpop.f32.mrf.mxu0  ;;  %v1465_v10 = vpop.f32.mrf.mxu1  ;;  %8290 = vmatpush3.bf16.msra.mxu0 %v9822_v62  ;;  %8996 = vmatprep.subr.bf16.mxu1 %v9826_v60  ;;  %v9791_v63 = vld [vmem:[%s13111_s6 + $0x400] ss:$8 sps:$4 sm:$0xff]  }
 0x1ba   : > { %13115 = vst [vmem:[#allocation27_spill] sm:$0xff] %v11394_v31  ;;  %13118 = vst [vmem:[#allocation30_spill] sm:$0xff] %v11427_v51  ;;  %8997 = vmatpush3.bf16.msra.mxu1 %v9826_v60 }
 0x1bb   : > { %v11365_v11 = vpop.f32.mrf.mxu0  ;;  %v1468_v12 = vpop.f32.mrf.mxu1  ;;  %2461 = vmatmul.mubr.bf16.gmra.mxu0 %v9779_v2  ;;  %3003 = vmatmul.mubr.bf16.gmra.mxu1 %v11363_v7  ;;  %v9792_v2 = vld [vmem:[%s13111_s6 + $0x414] ss:$8 sps:$4 sm:$0xff]  }
 0x1bc   : > { %7828 = vmatprep.mubr.msk.bf16.mxu0 %vm985_vm0, %v9780_v5  ;;  %3010 = vmatprep.mubr.bf16.mxu1 %v11356_v3  ;;  %v9827_v5 = vld [vmem:[%s13112_s29 + $0x118] sm:$0xff]  }
 0x1bd   : > { %v1128_v13 = vpop.f32.mrf.mxu0  ;;  %v1470_v14 = vpop.f32.mrf.mxu1  ;;  %8998 = vmatprep.subr.bf16.mxu1 %v9827_v5 }
 0x1be   : > { %v9828_v13 = vld [vmem:[#allocation2 + $0xf8] sm:$0xff]   ;;  %8999 = vmatpush3.bf16.msra.mxu1 %v9827_v5 }
 0x1bf   : > { %v11370_v15 = vpop.f32.mrf.mxu0  ;;  %v1471_v16 = vpop.f32.mrf.mxu1  ;;  %8497 = vmatprep.subr.bf16.mxu0 %v9828_v13 }
 0x1c0   : > { %v11418_v47 = vpack.c.bf16 %v1471_v16, %v1468_v12  ;;  %v11452_v8 = vpack.c.bf16 %v11370_v15, %v11365_v11  ;;  %v9830_v11 = vld [vmem:[%s13112_s29 + $0x110] sm:$0xff]  }
 0x1c1   : > { %v1131_v21 = vpop.f32.mrf.mxu0  ;;  %v1473_v23 = vpop.f32.mrf.mxu1  ;;  %9000 = vmatprep.subr.bf16.mxu1 %v9830_v11 }
 0x1c2   : > { %13117 = vst [vmem:[#allocation29_spill] sm:$0xff] %v11418_v47  ;;  %13120 = vst [vmem:[#allocation32_spill] sm:$0xff] %v11452_v8  ;;  %v9794_v23 = vld [vmem:[%s13111_s6 + $0x410] ss:$8 sps:$4 sm:$0xff]   ;;  %9001 = vmatpush3.bf16.msra.mxu1 %v9830_v11 }
 0x1c3   : > { %v11384_v24 = vpop.f32.mrf.mxu0  ;;  %v1476_v26 = vpop.f32.mrf.mxu1  ;;  %2469 = vmatmul.mubr.bf16.gmra.mxu0 %v9782_v9  ;;  %3011 = vmatmul.mubr.bf16.gmra.mxu1 %v11382_v19  ;;  %v9861_v19 = vld [vmem:[#allocation2 + $0x40] sm:$0xff]  }
 0x1c4   : > { %7829 = vmatprep.mubr.msk.bf16.mxu0 %vm985_vm0, %v9783_v18  ;;  %3018 = vmatprep.mubr.bf16.mxu1 %v11375_v17 }
 0x1c5   : > { %v1136_v27 = vpop.f32.mrf.mxu0  ;;  %v1478_v28 = vpop.f32.mrf.mxu1 }
 0x1c6   : > { %v9795_v27 = vld [vmem:[%s13111_s6 + $0x424] ss:$8 sps:$4 sm:$0xff]  }
 0x1c7   : > { %v11389_v29 = vpop.f32.mrf.mxu0  ;;  %v1479_v30 = vpop.f32.mrf.mxu1  ;;  %v9833_v28 = vld [vmem:[%s13112_s29 + $0x108] sm:$0xff]  }
 0x1c8   : > { %v11442_v1 = vpack.c.bf16 %v1479_v30, %v1476_v26  ;;  %v11475_v30 = vpack.c.bf16 %v11389_v29, %v11384_v24  ;;  %9002 = vmatprep.subr.bf16.mxu1 %v9833_v28 }
 0x1c9   : > { %v1139_v37 = vpop.f32.mrf.mxu0  ;;  %v1481_v38 = vpop.f32.mrf.mxu1  ;;  %9003 = vmatpush3.bf16.msra.mxu1 %v9833_v28 }
 0x1ca   : > { %13119 = vst [vmem:[#allocation31_spill] sm:$0xff] %v11442_v1  ;;  %13122 = vst [vmem:[#allocation34_spill] sm:$0xff] %v11475_v30  ;;  %v9836_v38 = vld [vmem:[%s13112_s29 + $0x100] sm:$0xff]  }
 0x1cb   : > { %v11405_v39 = vpop.f32.mrf.mxu0  ;;  %v1484_v40 = vpop.f32.mrf.mxu1  ;;  %2477 = vmatmul.mubr.bf16.gmra.mxu0 %v9785_v25  ;;  %3019 = vmatmul.mubr.bf16.gmra.mxu1 %v11403_v35 }
 0x1cc   : > { %7830 = vmatprep.mubr.msk.bf16.mxu0 %vm985_vm0, %v9786_v32  ;;  %3026 = vmatprep.mubr.bf16.mxu1 %v11394_v31 }
 0x1cd   : > { %v1144_v43 = vpop.f32.mrf.mxu0  ;;  %v1486_v41 = vpop.f32.mrf.mxu1  ;;  %9004 = vmatprep.subr.bf16.mxu1 %v9836_v38 }
 0x1ce   : > { %v9797_v43 = vld [vmem:[%s13111_s6 + $0x420] ss:$8 sps:$4 sm:$0xff]   ;;  %9005 = vmatpush3.bf16.msra.mxu1 %v9836_v38 }
 0x1cf   : > { %v11413_v44 = vpop.f32.mrf.mxu0  ;;  %v1487_v45 = vpop.f32.mrf.mxu1 }
 0x1d0   : > { %v11465_v26 = vpack.c.bf16 %v1487_v45, %v1484_v40  ;;  %v9802_v45 = vld [vmem:[%s13111_s6 + $0x434] ss:$8 sps:$4 sm:$0xff]  }
 0x1d1   : > { %v1147_v53 = vpop.f32.mrf.mxu0  ;;  %v1489_v54 = vpop.f32.mrf.mxu1 }
 0x1d2   : > { %13121 = vst [vmem:[#allocation33_spill] sm:$0xff] %v11465_v26 }
 0x1d3   : > { %v11429_v56 = vpop.f32.mrf.mxu0  ;;  %v1492_v57 = vpop.f32.mrf.mxu1  ;;  %2485 = vmatmul.mubr.bf16.gmra.mxu0 %v9788_v46  ;;  %3027 = vmatmul.mubr.bf16.gmra.mxu1 %v11427_v51  ;;  %v11495_v46 = vpack.c.bf16 %v11413_v44, %v11405_v39  ;;  %v9804_v39 = vld [vmem:[%s13111_s6 + $0x430] ss:$8 sps:$4 sm:$0xff]  }
 0x1d4   : > { %7831 = vmatprep.mubr.msk.bf16.mxu0 %vm985_vm0, %v9789_v48  ;;  %3034 = vmatprep.mubr.bf16.mxu1 %v11418_v47 }
 0x1d5   : > { %v1152_v59 = vpop.f32.mrf.mxu0  ;;  %v1494_v58 = vpop.f32.mrf.mxu1  ;;  %13124 = vst [vmem:[#allocation36_spill] sm:$0xff] %v11495_v46 }
 0x1d7   : > { %v11437_v61 = vpop.f32.mrf.mxu0  ;;  %v1495_v62 = vpop.f32.mrf.mxu1 }
 0x1d8   : > { %v11488_v41 = vpack.c.bf16 %v1495_v62, %v1492_v57  ;;  %v9809_v62 = vld [vmem:[%s13111_s6 + $0x444] ss:$8 sps:$4 sm:$0xff]  }
 0x1d9   : > { %v1155_v10 = vpop.f32.mrf.mxu0  ;;  %v1497_v12 = vpop.f32.mrf.mxu1 }
 0x1da   : > { %13123 = vst [vmem:[#allocation35_spill] sm:$0xff] %v11488_v41 }
 0x1db   : > { %v11454_v14 = vpop.f32.mrf.mxu0  ;;  %v1500_v16 = vpop.f32.mrf.mxu1  ;;  %2493 = vmatmul.mubr.bf16.gmra.mxu0 %v9791_v63  ;;  %3035 = vmatmul.mubr.bf16.gmra.mxu1 %v11452_v8  ;;  %v11510_v63 = vpack.c.bf16 %v11437_v61, %v11429_v56  ;;  %v9811_v56 = vld [vmem:[%s13111_s6 + $0x440] ss:$8 sps:$4 sm:$0xff]  }
 0x1dc   : > { %7832 = vmatprep.mubr.msk.bf16.mxu0 %vm985_vm0, %v9792_v2  ;;  %3042 = vmatprep.mubr.bf16.mxu1 %v11442_v1 }
 0x1dd   : > { %v1160_v15 = vpop.f32.mrf.mxu0  ;;  %v1502_v9 = vpop.f32.mrf.mxu1  ;;  %13126 = vst [vmem:[#allocation38_spill] sm:$0xff] %v11510_v63 }
 0x1de   : > { %v9816_v9 = vld [vmem:[%s13111_s6 + $0x454] ss:$8 sps:$4 sm:$0xff]  }
 0x1df   : > { %v1161_v18 = vpop.f32.mrf.mxu0  ;;  %v1503_v21 = vpop.f32.mrf.mxu1 }
 0x1e0   : > { %v11503_v44 = vpack.c.bf16 %v1503_v21, %v1500_v16  ;;  %v11524_v21 = vpack.c.bf16 %v1161_v18, %v11454_v14  ;;  %v9818_v14 = vld [vmem:[%s13111_s6 + $0x450] ss:$8 sps:$4 sm:$0xff]  }
 0x1e1   : > { %v1163_v25 = vpop.f32.mrf.mxu0  ;;  %v1505_v32 = vpop.f32.mrf.mxu1 }
 0x1e2   : > { %13125 = vst [vmem:[#allocation37_spill] sm:$0xff] %v11503_v44  ;;  %13128 = vst [vmem:[#allocation40_spill] sm:$0xff] %v11524_v21 }
 0x1e3   : > { %v11477_v33 = vpop.f32.mrf.mxu0  ;;  %v1508_v37 = vpop.f32.mrf.mxu1  ;;  %2501 = vmatmul.mubr.bf16.gmra.mxu0 %v9794_v23  ;;  %3043 = vmatmul.mubr.bf16.gmra.mxu1 %v11475_v30 }
 0x1e4   : > { %7833 = vmatprep.mubr.msk.bf16.mxu0 %vm985_vm0, %v9795_v27  ;;  %3050 = vmatprep.mubr.bf16.mxu1 %v11465_v26 }
 0x1e5   : > { %v1168_v24 = vpop.f32.mrf.mxu0  ;;  %v1510_v29 = vpop.f32.mrf.mxu1 }
 0x1e7   : > { %v1169_v40 = vpop.f32.mrf.mxu0  ;;  %v1511_v42 = vpop.f32.mrf.mxu1 }
 0x1e8   : > { %v11518_v61 = vpack.c.bf16 %v1511_v42, %v1508_v37  ;;  %v11537_v29 = vpack.c.bf16 %v1169_v40, %v11477_v33 }
 0x1e9   : > { %v1171_v48 = vpop.f32.mrf.mxu0  ;;  %v1513_v49 = vpop.f32.mrf.mxu1 }
 0x1ea   : > { %13127 = vst [vmem:[#allocation39_spill] sm:$0xff] %v11518_v61  ;;  %13129 = vst [vmem:[#allocation41_spill] sm:$0xff] %v11537_v29 }
 0x1eb   : > { %v1746_v53 = vpop.f32.mrf.mxu0  ;;  %v2088_v54 = vpop.f32.mrf.mxu1  ;;  %2509 = vmatmul.mubr.bf16.gmra.mxu0 %v9797_v43  ;;  %3051 = vmatmul.mubr.bf16.gmra.mxu1 %v11495_v46 }
 0x1ec   : > { %7834 = vmatprep.mubr.msk.bf16.mxu0 %vm985_vm0, %v9802_v45  ;;  %3058 = vmatprep.mubr.bf16.mxu1 %v11488_v41 }
 0x1ed   : > { %v1748_v57 = vpop.f32.mrf.mxu0  ;;  %v2090_v60 = vpop.f32.mrf.mxu1 }
 0x1ef   : > { %v1749_v59 = vpop.f32.mrf.mxu0  ;;  %v2091_v58 = vpop.f32.mrf.mxu1 }
 0x1f0   : > { %v11534_v18 = vpack.c.bf16 %v2091_v58, %v2088_v54  ;;  %v9829_v58 = vld [vmem:[#allocation2 + $0xb8] sm:$0xff]   ;;  %v11547_v33 = vpack.c.bf16 %v1749_v59, %v1746_v53 }
 0x1f1   : > { %v1751_v2 = vpop.f32.mrf.mxu0  ;;  %v2093_v5 = vpop.f32.mrf.mxu1 }
 0x1f2   : > { %v9831_v2 = vld [vmem:[#allocation2 + $0xf0] sm:$0xff]  }
 0x1f3   : > { %v1754_v10 = vpop.f32.mrf.mxu0  ;;  %v2096_v12 = vpop.f32.mrf.mxu1  ;;  %2517 = vmatmul.mubr.bf16.gmra.mxu0 %v9804_v39  ;;  %3059 = vmatmul.mubr.bf16.gmra.mxu1 %v11510_v63 }
 0x1f4   : > { %7835 = vmatprep.mubr.msk.bf16.mxu0 %vm985_vm0, %v9809_v62  ;;  %3066 = vmatprep.mubr.bf16.mxu1 %v11503_v44 }
 0x1f5   : > { %v1756_v13 = vpop.f32.mrf.mxu0  ;;  %v2098_v16 = vpop.f32.mrf.mxu1 }
 0x1f6   : > { %v9832_v16 = vld [vmem:[#allocation2 + $0xb0] sm:$0xff]  }
 0x1f7   : > { %v1757_v11 = vpop.f32.mrf.mxu0  ;;  %v2099_v15 = vpop.f32.mrf.mxu1 }
 0x1f8   : > { %v11545_v54 = vpack.c.bf16 %v2099_v15, %v2096_v12  ;;  %v9834_v12 = vld [vmem:[#allocation2 + $0xe8] sm:$0xff]  }
 0x1f9   : > { %v1759_v23 = vpop.f32.mrf.mxu0  ;;  %v2101_v27 = vpop.f32.mrf.mxu1 }
 0x1fa   : > { %v9835_v23 = vld [vmem:[#allocation2 + $0xa8] sm:$0xff]   ;;  %v11557_v27 = vpack.c.bf16 %v1757_v11, %v1754_v10 }
 0x1fb   : > { %v11526_v28 = vpop.f32.mrf.mxu0  ;;  %v2104_v25 = vpop.f32.mrf.mxu1  ;;  %2525 = vmatmul.mubr.bf16.gmra.mxu0 %v9811_v56  ;;  %3067 = vmatmul.mubr.bf16.gmra.mxu1 %v11524_v21 }
 0x1fc   : > { %7836 = vmatprep.mubr.msk.bf16.mxu0 %vm985_vm0, %v9816_v9  ;;  %3074 = vmatprep.mubr.bf16.mxu1 %v11518_v61 }
 0x1fd   : > { %v1764_v32 = vpop.f32.mrf.mxu0  ;;  %v2106_v37 = vpop.f32.mrf.mxu1 }
 0x1ff   : > { %v1765_v38 = vpop.f32.mrf.mxu0  ;;  %v2107_v24 = vpop.f32.mrf.mxu1 }
 0x200   : > { %v11555_v59 = vpack.c.bf16 %v2107_v24, %v2104_v25  ;;  %v9839_v24 = vld [vmem:[#allocation2 + $0xd8] sm:$0xff]  }
 0x201   : > { %v1767_v42 = vpop.f32.mrf.mxu0  ;;  %v2109_v43 = vpop.f32.mrf.mxu1 }
 0x203   : > { %v11539_v45 = vpop.f32.mrf.mxu0  ;;  %v2112_v48 = vpop.f32.mrf.mxu1  ;;  %2533 = vmatmul.mubr.bf16.gmra.mxu0 %v9818_v14  ;;  %3075 = vmatmul.mubr.bf16.gmra.mxu1 %v11537_v29  ;;  %v9837_v14 = vld [vmem:[#allocation2 + $0xe0] sm:$0xff]  }
 0x204   : > { %3115 = vmatprep.mubr.bf16.mxu0 %v11534_v18 }
 0x205   : > { %v1772_v49 = vpop.f32.mrf.mxu0  ;;  %v2114_v57 = vpop.f32.mrf.mxu1 }
 0x206   : > { %v9838_v49 = vld [vmem:[#allocation2 + $0xa0] sm:$0xff]  }
 0x207   : > { %v11543_v60 = vpop.f32.mrf.mxu0  ;;  %v2115_v39 = vpop.f32.mrf.mxu1 }
 0x208   : > { %v11563_v11 = vpack.c.bf16 %v2115_v39, %v2112_v48  ;;  %v9843_v39 = vld [vmem:[#allocation2 + $0xc8] sm:$0xff]  }
 0x209   : > { %v1775_v40 = vpop.f32.mrf.mxu0  ;;  %v2117_v62 = vpop.f32.mrf.mxu1 }
 0x20a   : > { %v9840_v40 = vld [vmem:[#allocation2 + $0x98] sm:$0xff]   ;;  %v11566_v62 = vpack.c.bf16 %v1765_v38, %v11526_v28  ;;  %v9844_v38 = vld [vmem:[#allocation2 + $0x88] sm:$0xff]  }
 0x20b   : > { %v11549_v5 = vpop.f32.mrf.mxu0  ;;  %v2120_v13 = vpop.f32.mrf.mxu1  ;;  %3116 = vmatmul.mubr.bf16.vlgmr.msra.gmra.mxu0 %v11547_v33 }
 0x20c   : > { %3123 = vmatprep.mubr.bf16.mxu0 %v11545_v54  ;;  %8498 = vmatpush3.bf16.msra.mxu0 %v9829_v58 }
 0x20d   : > { %v1780_v56 = vpop.f32.mrf.mxu0  ;;  %v2122_v9 = vpop.f32.mrf.mxu1  ;;  %8499 = vmatprep.subr.bf16.mxu0 %v9831_v2 }
 0x20e   : > { %v9841_v56 = vld [vmem:[#allocation2 + $0xd0] sm:$0xff]  }
 0x20f   : > { %v11553_v15 = vpop.f32.mrf.mxu0  ;;  %v2123_v53 = vpop.f32.mrf.mxu1 }
 0x210   : > { %8500 = vmatpush3.bf16.msra.mxu0 %v9832_v16  ;;  %v11570_v28 = vpack.c.bf16 %v2123_v53, %v2120_v13 }
 0x211   : > { %v1783_v32 = vpop.f32.mrf.mxu0  ;;  %v2125_v37 = vpop.f32.mrf.mxu1  ;;  %8501 = vmatprep.subr.bf16.mxu0 %v9834_v12 }
 0x213   : > { %v11559_v42 = vpop.f32.mrf.mxu0  ;;  %v2128_v43 = vpop.f32.mrf.mxu1  ;;  %3124 = vmatmul.mubr.bf16.gmra.mxu0 %v11557_v27 }
 0x214   : > { %3131 = vmatprep.mubr.bf16.mxu0 %v11555_v59  ;;  %8502 = vmatpush3.bf16.msra.mxu0 %v9835_v23  ;;  %v9842_v23 = vld [vmem:[#allocation2 + $0x90] sm:$0xff]  }
 0x215   : > { %v1788_v57 = vpop.f32.mrf.mxu0  ;;  %v2130_v25 = vpop.f32.mrf.mxu1  ;;  %8503 = vmatprep.subr.bf16.mxu0 %v9837_v14 }
 0x217   : > { %v1789_v58 = vpop.f32.mrf.mxu0  ;;  %v2131_v10 = vpop.f32.mrf.mxu1 }
 0x218   : > { %8504 = vmatpush3.bf16.msra.mxu0 %v9838_v49  ;;  %v11574_v49 = vpack.c.bf16 %v11543_v60, %v11539_v45  ;;  %v11582_v45 = vpack.c.bf16 %v11553_v15, %v11549_v5  ;;  %v11590_v5 = vpack.c.bf16 %v1789_v58, %v11559_v42 }
 0x219   : > { %v1791_v2 = vpop.f32.mrf.mxu0  ;;  %v2133_v16 = vpop.f32.mrf.mxu1  ;;  %8505 = vmatprep.subr.bf16.mxu0 %v9839_v24  ;;  %v9845_v24 = vld [vmem:[#allocation2 + $0xc0] sm:$0xff]  }
 0x21a   : > { %v9846_v16 = vld [vmem:[#allocation2 + $0x80] sm:$0xff]  }
 0x21b   : > { %v1794_v9 = vpop.f32.mrf.mxu0  ;;  %v2136_v12 = vpop.f32.mrf.mxu1  ;;  %3132 = vmatmul.mubr.bf16.gmra.mxu0 %v11566_v62 }
 0x21c   : > { %3139 = vmatprep.mubr.bf16.mxu0 %v11563_v11  ;;  %8506 = vmatpush3.bf16.msra.mxu0 %v9840_v40 }
 0x21d   : > { %v1796_v32 = vpop.f32.mrf.mxu0  ;;  %v2138_v48 = vpop.f32.mrf.mxu1  ;;  %8507 = vmatprep.subr.bf16.mxu0 %v9841_v56 }
 0x21e   : > { %v11578_v32 = vpack.c.bf16 %v2131_v10, %v2128_v43 }
 0x21f   : > { %v1797_v37 = vpop.f32.mrf.mxu0  ;;  %v2139_v14 = vpop.f32.mrf.mxu1 }
 0x220   : > { %8508 = vmatpush3.bf16.msra.mxu0 %v9842_v23  ;;  %v11587_v10 = vpack.c.bf16 %v2139_v14, %v2136_v12  ;;  %v11596_v12 = vpack.c.bf16 %v1797_v37, %v1794_v9 }
 0x221   : > { %v1799_v57 = vpop.f32.mrf.mxu0  ;;  %v2141_v25 = vpop.f32.mrf.mxu1  ;;  %8509 = vmatprep.subr.bf16.mxu0 %v9843_v39 }
 0x223   : > { %v1802_v40 = vpop.f32.mrf.mxu0  ;;  %v2144_v2 = vpop.f32.mrf.mxu1  ;;  %3140 = vmatmul.mubr.bf16.gmra.mxu0 %v11574_v49 }
 0x224   : > { %3147 = vmatprep.mubr.bf16.mxu0 %v11570_v28  ;;  %8510 = vmatpush3.bf16.msra.mxu0 %v9844_v38 }
 0x225   : > { %v1804_v13 = vpop.f32.mrf.mxu0  ;;  %v2146_v53 = vpop.f32.mrf.mxu1  ;;  %8511 = vmatprep.subr.bf16.mxu0 %v9845_v24 }
 0x227   : > { %v1805_v56 = vpop.f32.mrf.mxu0  ;;  %v2147_v23 = vpop.f32.mrf.mxu1 }
 0x228   : > { %8512 = vmatpush3.bf16.msra.mxu0 %v9846_v16  ;;  %v9847_v16 = vld [vmem:[#allocation2 + $0x78] sm:$0xff]   ;;  %v11594_v29 = vpack.c.bf16 %v2147_v23, %v2144_v2 }
 0x229   : > { %v1807_v60 = vpop.f32.mrf.mxu0  ;;  %v2149_v48 = vpop.f32.mrf.mxu1  ;;  %4373 = vmatprep.subr.bf16.mxu0 %v13049_v0  ;;  %8397 = vmatprep.subr.bf16.mxu1 %v9847_v16 }
 0x22b   : > { %v1810_v39 = vpop.f32.mrf.mxu0  ;;  %v2152_v57 = vpop.f32.mrf.mxu1  ;;  %3148 = vmatmul.mubr.bf16.gmra.mxu0 %v11582_v45 }
 0x22c   : > { %3155 = vmatprep.mubr.bf16.mxu0 %v11578_v32 }
 0x22d   : > { %v1812_v38 = vpop.f32.mrf.mxu0  ;;  %v2154_v25 = vpop.f32.mrf.mxu1 }
 0x22f   : > { %v1813_v24 = vpop.f32.mrf.mxu0  ;;  %v2155_v43 = vpop.f32.mrf.mxu1 }
 0x231   : > { %v1815_v15 = vpop.f32.mrf.mxu0  ;;  %v2157_v13 = vpop.f32.mrf.mxu1 }
 0x233   : > { %v1818_v53 = vpop.f32.mrf.mxu0  ;;  %v2160_v60 = vpop.f32.mrf.mxu1  ;;  %3156 = vmatmul.mubr.bf16.gmra.mxu0 %v11590_v5 }
 0x234   : > { %3163 = vmatprep.mubr.bf16.mxu0 %v11587_v10 }
 0x235   : > { %v1820_v48 = vpop.f32.mrf.mxu0  ;;  %v2162_v38 = vpop.f32.mrf.mxu1 }
 0x236   : > { %v11600_v48 = vpack.c.bf16 %v2155_v43, %v2152_v57  ;;  %v11602_v38 = vpack.c.bf16 %v1805_v56, %v1802_v40 }
 0x237   : > { %v1821_v25 = vpop.f32.mrf.mxu0  ;;  %v2163_v0 = vpop.f32.mrf.mxu1 }
 0x239   : > { %v1823_v14 = vpop.f32.mrf.mxu0  ;;  %v2165_v42 = vpop.f32.mrf.mxu1 }
 0x23b   : > { %v1826_v58 = vpop.f32.mrf.mxu0  ;;  %v2168_v15 = vpop.f32.mrf.mxu1  ;;  %3164 = vmatmul.mubr.bf16.gmra.mxu0 %v11596_v12 }
 0x23c   : > { %3171 = vmatprep.mubr.bf16.mxu0 %v11594_v29 }
 0x23d   : > { %v1828_v16 = vpop.f32.mrf.mxu0  ;;  %v2170_v13 = vpop.f32.mrf.mxu1 }
 0x23e   : > { %v11606_v16 = vpack.c.bf16 %v2163_v0, %v2160_v60  ;;  %v11608_v13 = vpack.c.bf16 %v1813_v24, %v1810_v39 }
 0x23f   : > { %v1829_v61 = vpop.f32.mrf.mxu0  ;;  %v2171_v21 = vpop.f32.mrf.mxu1 }
 0x241   : > { %v1831_v2 = vpop.f32.mrf.mxu0  ;;  %v2173_v23 = vpop.f32.mrf.mxu1 }
 0x243   : > { %v1834_v9 = vpop.f32.mrf.mxu0  ;;  %v2176_v37 = vpop.f32.mrf.mxu1  ;;  %3172 = vmatmul.mubr.bf16.gmra.mxu0 %v11602_v38 }
 0x244   : > { %3179 = vmatprep.mubr.bf16.mxu0 %v11600_v48 }
 0x245   : > { %v1836_v14 = vpop.f32.mrf.mxu0  ;;  %v2178_v42 = vpop.f32.mrf.mxu1 }
 0x246   : > { %v11612_v14 = vpack.c.bf16 %v2171_v21, %v2168_v15  ;;  %v11614_v42 = vpack.c.bf16 %v1821_v25, %v1818_v53 }
 0x247   : > { %v1837_v44 = vpop.f32.mrf.mxu0  ;;  %v2179_v63 = vpop.f32.mrf.mxu1 }
 0x249   : > { %v1839_v57 = vpop.f32.mrf.mxu0  ;;  %v2181_v43 = vpop.f32.mrf.mxu1 }
 0x24b   : > { %v1842_v40 = vpop.f32.mrf.mxu0  ;;  %v2184_v56 = vpop.f32.mrf.mxu1  ;;  %3180 = vmatmul.mubr.bf16.gmra.mxu0 %v11608_v13 }
 0x24c   : > { %3187 = vmatprep.mubr.bf16.mxu0 %v11606_v16 }
 0x24d   : > { %v1844_v2 = vpop.f32.mrf.mxu0  ;;  %v2186_v23 = vpop.f32.mrf.mxu1 }
 0x24e   : > { %v11618_v2 = vpack.c.bf16 %v2179_v63, %v2176_v37  ;;  %v11620_v23 = vpack.c.bf16 %v1829_v61, %v1826_v58  ;;  %v11632_v61 = vpack.c.bf16 %v1837_v44, %v1834_v9  ;;  %v9848_v44 = vld [vmem:[#allocation2 + $0x38] sm:$0xff]  }
 0x24f   : > { %v1845_v41 = vpop.f32.mrf.mxu0  ;;  %v2187_v46 = vpop.f32.mrf.mxu1 }
 0x250   : > { %v11628_v8 = vpack.c.bf16 %v2187_v46, %v2184_v56 }
 0x251   : > { %v1847_v0 = vpop.f32.mrf.mxu0  ;;  %v2189_v60 = vpop.f32.mrf.mxu1 }
 0x253   : > { %v1850_v39 = vpop.f32.mrf.mxu0  ;;  %v2192_v24 = vpop.f32.mrf.mxu1  ;;  %3188 = vmatmul.mubr.bf16.gmra.mxu0 %v11614_v42 }
 0x254   : > { %3195 = vmatprep.mubr.bf16.mxu0 %v11612_v14 }
 0x255   : > { %v1852_v57 = vpop.f32.mrf.mxu0  ;;  %v2194_v43 = vpop.f32.mrf.mxu1 }
 0x257   : > { %v1853_v26 = vpop.f32.mrf.mxu0  ;;  %v2195_v30 = vpop.f32.mrf.mxu1 }
 0x258   : > { %v11643_v9 = vpack.c.bf16 %v2195_v30, %v2192_v24  ;;  %v9851_v30 = vld [vmem:[#allocation2 + $0x68] sm:$0xff]   ;;  %v11660_v31 = vpack.c.bf16 %v1853_v26, %v1850_v39 }
 0x259   : > { %v1855_v21 = vpop.f32.mrf.mxu0  ;;  %v2197_v15 = vpop.f32.mrf.mxu1 }
 0x25b   : > { %v2430_v53 = vpop.f32.mrf.mxu0  ;;  %v8191_v25 = vpop.f32.mrf.mxu1  ;;  %3196 = vmatmul.mubr.bf16.gmra.mxu0 %v11620_v23 }
 0x25c   : > { %3203 = vmatprep.mubr.bf16.mxu0 %v11618_v2 }
 0x25d   : > { %v2432_v0 = vpop.f32.mrf.mxu0  ;;  %v8192_v60 = vpop.f32.mrf.mxu1 }
 0x25e   : > { %v11624_v1 = vadd.f32 %v8192_v60, %v8191_v25 }
 0x25f   : > { %v2433_v57 = vpop.f32.mrf.mxu0  ;;  %v11626_v43 = vpop.f32.mrf.mxu1 }
 0x260   : > { %v11630_v63 = vpack.c.bf16 %v2433_v57, %v2430_v53  ;;  %v9849_v57 = vld [vmem:[#allocation2 + $0x70] sm:$0xff]  }
 0x261   : > { %v2435_v58 = vpop.f32.mrf.mxu0  ;;  %v11634_v37 = vpop.f32.mrf.mxu1 }
 0x262   : > { %13130 = vst [vmem:[#allocation42_spill] sm:$0xff] %v11630_v63  ;;  %9006 = vmatprep.mubr.bf16.mxu1 %v11630_v63  ;;  %v11647_v58 = vpack.c.bf16 %v1845_v41, %v1842_v40 }
 0x263   : > { %v2438_v21 = vpop.f32.mrf.mxu0  ;;  %v8197_v15 = vpop.f32.mrf.mxu1  ;;  %3204 = vmatmul.mubr.bf16.gmra.mxu0 %v11632_v61 }
 0x264   : > { %3211 = vmatprep.mubr.bf16.mxu0 %v11628_v8 }
 0x265   : > { %v2440_v25 = vpop.f32.mrf.mxu0  ;;  %v8198_v0 = vpop.f32.mrf.mxu1 }
 0x266   : > { %v11639_v60 = vadd.f32 %v8198_v0, %v8197_v15  ;;  %v9850_v15 = vld [vmem:[#allocation2 + $0x30] sm:$0xff]  }
 0x267   : > { %v2441_v46 = vpop.f32.mrf.mxu0  ;;  %v11641_v56 = vpop.f32.mrf.mxu1 }
 0x268   : > { %v11645_v53 = vpack.c.bf16 %v2441_v46, %v2438_v21 }
 0x269   : > { %v2443_v63 = vpop.f32.mrf.mxu0  ;;  %v11649_v47 = vpop.f32.mrf.mxu1 }
 0x26a   : > { %13131 = vst [vmem:[#allocation43_spill] sm:$0xff] %v11645_v53  ;;  %9007 = vmatmul.mubr.bf16.vlgmr.msra.gmra.mxu1 %v11645_v53  ;;  %v9852_v63 = vld [vmem:[#allocation2 + $0x28] sm:$0xff]   ;;  %v9853_v53 = vld [vmem:[#allocation2 + $0x60] sm:$0xff]  }
 0x26b   : > { %v2446_v25 = vpop.f32.mrf.mxu0  ;;  %v8203_v51 = vpop.f32.mrf.mxu1  ;;  %3212 = vmatmul.mubr.bf16.gmra.mxu0 %v11647_v58  ;;  %8398 = vmatpush3.bf16.msra.mxu1 %v9848_v44 }
 0x26c   : > { %3219 = vmatprep.mubr.bf16.mxu0 %v11643_v9  ;;  %8399 = vmatprep.subr.bf16.mxu1 %v9849_v57 }
 0x26d   : > { %v2448_v24 = vpop.f32.mrf.mxu0  ;;  %v8204_v21 = vpop.f32.mrf.mxu1 }
 0x26e   : > { %v11654_v0 = vadd.f32 %v8204_v21, %v8203_v51  ;;  %v9854_v51 = vld [vmem:[#allocation2 + $0x20] sm:$0xff]  }
 0x26f   : > { %v2449_v41 = vpop.f32.mrf.mxu0  ;;  %v11656_v40 = vpop.f32.mrf.mxu1  ;;  %8400 = vmatpush3.bf16.msra.mxu1 %v9850_v15 }
 0x270   : > { %v11658_v46 = vpack.c.bf16 %v2449_v41, %v2446_v25  ;;  %8401 = vmatprep.subr.bf16.mxu1 %v9851_v30  ;;  %v9855_v25 = vld [vmem:[#allocation2 + $0x58] sm:$0xff]  }
 0x271   : > { %v2451_v44 = vpop.f32.mrf.mxu0  ;;  %v11662_v35 = vpop.f32.mrf.mxu1  ;;  %v9856_v41 = vld [vmem:[#allocation2 + $0x18] sm:$0xff]  }
 0x272   : > { %13132 = vst [vmem:[#allocation44_spill] sm:$0xff] %v11658_v46  ;;  %9010 = vmatprep.mubr.bf16.mxu1 %v11658_v46  ;;  %v9857_v46 = vld [vmem:[#allocation2 + $0x50] sm:$0xff]  }
 0x273   : > { %v2454_v57 = vpop.f32.mrf.mxu0  ;;  %v8209_v24 = vpop.f32.mrf.mxu1  ;;  %3220 = vmatmul.mubr.bf16.gmra.mxu0 %v11660_v31  ;;  %8402 = vmatpush3.bf16.msra.mxu1 %v9852_v63 }
 0x274   : > { %3877 = vmatprep.mubr.bf16.mxu0 %v11534_v18  ;;  %8403 = vmatprep.subr.bf16.mxu1 %v9853_v53 }
 0x275   : > { %v2456_v15 = vpop.f32.mrf.mxu0  ;;  %v8210_v30 = vpop.f32.mrf.mxu1 }
 0x276   : > { %v11667_v21 = vadd.f32 %v8210_v30, %v8209_v24  ;;  %v9858_v24 = vld [vmem:[#allocation2 + $0x10] sm:$0xff]  }
 0x277   : > { %v2457_v26 = vpop.f32.mrf.mxu0  ;;  %v11669_v39 = vpop.f32.mrf.mxu1  ;;  %8404 = vmatpush3.bf16.msra.mxu1 %v9854_v51  ;;  %v9859_v51 = vld [vmem:[#allocation2 + $0x48] sm:$0xff]  }
 0x278   : > { %v11671_v44 = vpack.c.bf16 %v2457_v26, %v2454_v57  ;;  %8405 = vmatprep.subr.bf16.mxu1 %v9855_v25  ;;  %v9860_v26 = vld [vmem:[#allocation2 + $0x8] sm:$0xff]  }
 0x279   : > { %v2459_v17 = vpop.f32.mrf.mxu0  ;;  %v11673_v63 = vpop.f32.mrf.mxu1 }
 0x27a   : > { %13133 = vst [vmem:[#allocation45_spill] sm:$0xff] %v11671_v44  ;;  %9011 = vmatmul.mubr.bf16.gmra.mxu1 %v11671_v44 }
 0x27b   : > { %v2462_v18 = vpop.f32.mrf.mxu0  ;;  %v8215_v53 = vpop.f32.mrf.mxu1  ;;  %3878 = vmatmul.mubr.bf16.vlgmr.msra.gmra.mxu0 %v11547_v33  ;;  %8406 = vmatpush3.bf16.msra.mxu1 %v9856_v41 }
 0x27c   : > { %3885 = vmatprep.mubr.bf16.mxu0 %v11545_v54  ;;  %8407 = vmatprep.subr.bf16.mxu1 %v9857_v46 }
 0x27d   : > { %v2464_v15 = vpop.f32.mrf.mxu0  ;;  %v8216_v57 = vpop.f32.mrf.mxu1 }
 0x27e   : > { %v11678_v30 = vadd.f32 %v8216_v57, %v8215_v53  ;;  %v9862_v53 = vld [vmem:[#allocation2] sm:$0xff]  }
 0x27f   : > { %v2465_v25 = vpop.f32.mrf.mxu0  ;;  %v11680_v17 = vpop.f32.mrf.mxu1  ;;  %8408 = vmatpush3.bf16.msra.mxu1 %v9858_v24 }
 0x280   : > { %v11682_v44 = vpack.c.bf16 %v2465_v25, %v2462_v18  ;;  %8409 = vmatprep.subr.bf16.mxu1 %v9859_v51 }
 0x281   : > { %v2467_v33 = vpop.f32.mrf.mxu0  ;;  %v11684_v41 = vpop.f32.mrf.mxu1 }
 0x282   : > { %13134 = vst [vmem:[#allocation46_spill] sm:$0xff] %v11682_v44  ;;  %9014 = vmatprep.mubr.bf16.mxu1 %v11682_v44 }
 0x283   : > { %v2470_v54 = vpop.f32.mrf.mxu0  ;;  %v8221_v46 = vpop.f32.mrf.mxu1  ;;  %3886 = vmatmul.mubr.bf16.gmra.mxu0 %v11557_v27  ;;  %8410 = vmatpush3.bf16.msra.mxu1 %v9860_v26  ;;  %v11698_v27 = vld [vmem:[#allocation2 + $0x138] sm:$0xff]  }
 0x284   : > { %3893 = vmatprep.mubr.bf16.mxu0 %v11555_v59  ;;  %8411 = vmatprep.subr.bf16.mxu1 %v9861_v19 }
 0x285   : > { %v2472_v24 = vpop.f32.mrf.mxu0  ;;  %v8222_v15 = vpop.f32.mrf.mxu1 }
 0x286   : > { %v11689_v18 = vadd.f32 %v8222_v15, %v8221_v46 }
 0x287   : > { %v2473_v51 = vpop.f32.mrf.mxu0  ;;  %v11691_v57 = vpop.f32.mrf.mxu1  ;;  %8412 = vmatpush3.bf16.msra.mxu1 %v9862_v53 }
 0x288   : > { %v11693_v25 = vpack.c.bf16 %v2473_v51, %v2470_v54  ;;  %9034 = vmatprep.subr.bf16.mxu1 %v11698_v27 }
 0x289   : > { %v2475_v33 = vpop.f32.mrf.mxu0  ;;  %v11695_v44 = vpop.f32.mrf.mxu1 }
 0x28a   : > { %13135 = vst [vmem:[#allocation47_spill] sm:$0xff] %v11693_v25  ;;  %9015 = vmatmul.mubr.bf16.gmra.mxu1 %v11693_v25 }
 0x28b   : > { %v2478_v26 = vpop.f32.mrf.mxu0  ;;  %v8227_v59 = vpop.f32.mrf.mxu1  ;;  %3894 = vmatmul.mubr.bf16.gmra.mxu0 %v11566_v62 }
 0x28c   : > { %3901 = vmatprep.mubr.bf16.mxu0 %v11563_v11 }
 0x28d   : > { %v2480_v19 = vpop.f32.mrf.mxu0  ;;  %v8228_v46 = vpop.f32.mrf.mxu1 }
 0x28e   : > { %v11703_v53 = vadd.f32 %v8228_v46, %v8227_v59 }
 0x28f   : > { %v2481_v54 = vpop.f32.mrf.mxu0  ;;  %v11705_v24 = vpop.f32.mrf.mxu1 }
 0x290   : > { %13136 = vst [vmem:[#allocation48_spill] sm:$0xff] %v11703_v53  ;;  %v11707_v15 = vpack.c.bf16 %v2481_v54, %v2478_v26 }
 0x291   : > { %v2483_v51 = vpop.f32.mrf.mxu0  ;;  %v11709_v33 = vpop.f32.mrf.mxu1 }
 0x292   : > { %13137 = vst [vmem:[#allocation49_spill] sm:$0xff] %v11707_v15  ;;  %13138 = vst [vmem:[#allocation50_spill] sm:$0xff] %v11709_v33  ;;  %9018 = vmatprep.mubr.bf16.mxu1 %v11707_v15 }
 0x293   : > { %v2486_v25 = vpop.f32.mrf.mxu0  ;;  %v8233_v62 = vpop.f32.mrf.mxu1  ;;  %3902 = vmatmul.mubr.bf16.gmra.mxu0 %v11574_v49 }
 0x294   : > { %3909 = vmatprep.mubr.bf16.mxu0 %v11570_v28 }
 0x295   : > { %v2488_v11 = vpop.f32.mrf.mxu0  ;;  %v8234_v19 = vpop.f32.mrf.mxu1 }
 0x296   : > { %v11714_v59 = vadd.f32 %v8234_v19, %v8233_v62 }
 0x297   : > { %v2489_v46 = vpop.f32.mrf.mxu0  ;;  %v11716_v53 = vpop.f32.mrf.mxu1 }
 0x298   : > { %v11718_v26 = vpack.c.bf16 %v2489_v46, %v2486_v25 }
 0x299   : > { %v2491_v54 = vpop.f32.mrf.mxu0  ;;  %v11720_v51 = vpop.f32.mrf.mxu1 }
 0x29a   : > { %13139 = vst [vmem:[#allocation51_spill] sm:$0xff] %v11718_v26  ;;  %13140 = vst [vmem:[#allocation52_spill] sm:$0xff] %v11720_v51  ;;  %9019 = vmatmul.mubr.bf16.gmra.mxu1 %v11718_v26 }
 0x29b   : > { %v2494_v15 = vpop.f32.mrf.mxu0  ;;  %v8239_v33 = vpop.f32.mrf.mxu1  ;;  %3910 = vmatmul.mubr.bf16.gmra.mxu0 %v11582_v45 }
 0x29c   : > { %3917 = vmatprep.mubr.bf16.mxu0 %v11578_v32 }
 0x29d   : > { %v2496_v28 = vpop.f32.mrf.mxu0  ;;  %v8240_v49 = vpop.f32.mrf.mxu1 }
 0x29e   : > { %v11725_v62 = vadd.f32 %v8240_v49, %v8239_v33 }
 0x29f   : > { %v2497_v11 = vpop.f32.mrf.mxu0  ;;  %v11727_v19 = vpop.f32.mrf.mxu1 }
 0x2a0   : > { %v11729_v25 = vpack.c.bf16 %v2497_v11, %v2494_v15 }
 0x2a1   : > { %v2499_v46 = vpop.f32.mrf.mxu0  ;;  %v11731_v54 = vpop.f32.mrf.mxu1 }
 0x2a2   : > { %13141 = vst [vmem:[#allocation53_spill] sm:$0xff] %v11729_v25  ;;  %13142 = vst [vmem:[#allocation54_spill] sm:$0xff] %v11731_v54  ;;  %9022 = vmatprep.mubr.bf16.mxu1 %v11729_v25 }
 0x2a3   : > { %v2502_v26 = vpop.f32.mrf.mxu0  ;;  %v8245_v51 = vpop.f32.mrf.mxu1  ;;  %3918 = vmatmul.mubr.bf16.gmra.mxu0 %v11590_v5 }
 0x2a4   : > { %3925 = vmatprep.mubr.bf16.mxu0 %v11587_v10 }
 0x2a5   : > { %v2504_v32 = vpop.f32.mrf.mxu0  ;;  %v8246_v45 = vpop.f32.mrf.mxu1 }
 0x2a6   : > { %v11736_v33 = vadd.f32 %v8246_v45, %v8245_v51 }
 0x2a7   : > { %v2505_v28 = vpop.f32.mrf.mxu0  ;;  %v11738_v49 = vpop.f32.mrf.mxu1 }
 0x2a8   : > { %v11740_v15 = vpack.c.bf16 %v2505_v28, %v2502_v26 }
 0x2a9   : > { %v2507_v11 = vpop.f32.mrf.mxu0  ;;  %v11742_v46 = vpop.f32.mrf.mxu1 }
 0x2aa   : > { %13143 = vst [vmem:[#allocation55_spill] sm:$0xff] %v11740_v15  ;;  %13144 = vst [vmem:[#allocation56_spill] sm:$0xff] %v11742_v46  ;;  %9023 = vmatmul.mubr.bf16.gmra.mxu1 %v11740_v15 }
 0x2ab   : > { %v2510_v25 = vpop.f32.mrf.mxu0  ;;  %v8251_v54 = vpop.f32.mrf.mxu1  ;;  %3926 = vmatmul.mubr.bf16.gmra.mxu0 %v11596_v12 }
 0x2ac   : > { %3933 = vmatprep.mubr.bf16.mxu0 %v11594_v29 }
 0x2ad   : > { %v2512_v10 = vpop.f32.mrf.mxu0  ;;  %v8252_v5 = vpop.f32.mrf.mxu1 }
 0x2ae   : > { %v11747_v51 = vadd.f32 %v8252_v5, %v8251_v54 }
 0x2af   : > { %v2513_v32 = vpop.f32.mrf.mxu0  ;;  %v11749_v45 = vpop.f32.mrf.mxu1 }
 0x2b0   : > { %v11751_v26 = vpack.c.bf16 %v2513_v32, %v2510_v25 }
 0x2b1   : > { %v2515_v28 = vpop.f32.mrf.mxu0  ;;  %v11753_v11 = vpop.f32.mrf.mxu1 }
 0x2b2   : > { %13145 = vst [vmem:[#allocation57_spill] sm:$0xff] %v11751_v26  ;;  %13146 = vst [vmem:[#allocation58_spill] sm:$0xff] %v11753_v11  ;;  %9026 = vmatprep.mubr.bf16.mxu1 %v11751_v26 }
 0x2b3   : > { %v2518_v15 = vpop.f32.mrf.mxu0  ;;  %v8257_v46 = vpop.f32.mrf.mxu1  ;;  %3934 = vmatmul.mubr.bf16.gmra.mxu0 %v11602_v38 }
 0x2b4   : > { %3941 = vmatprep.mubr.bf16.mxu0 %v11600_v48 }
 0x2b5   : > { %v2520_v29 = vpop.f32.mrf.mxu0  ;;  %v8258_v12 = vpop.f32.mrf.mxu1 }
 0x2b6   : > { %v11758_v54 = vadd.f32 %v8258_v12, %v8257_v46 }
 0x2b7   : > { %v2521_v10 = vpop.f32.mrf.mxu0  ;;  %v11760_v5 = vpop.f32.mrf.mxu1 }
 0x2b8   : > { %v11762_v25 = vpack.c.bf16 %v2521_v10, %v2518_v15 }
 0x2b9   : > { %v2523_v32 = vpop.f32.mrf.mxu0  ;;  %v11764_v28 = vpop.f32.mrf.mxu1 }
 0x2ba   : > { %13147 = vst [vmem:[#allocation59_spill] sm:$0xff] %v11762_v25  ;;  %13148 = vst [vmem:[#allocation60_spill] sm:$0xff] %v11764_v28  ;;  %9027 = vmatmul.mubr.bf16.gmra.mxu1 %v11762_v25 }
 0x2bb   : > { %v2526_v26 = vpop.f32.mrf.mxu0  ;;  %v8263_v11 = vpop.f32.mrf.mxu1  ;;  %3942 = vmatmul.mubr.bf16.gmra.mxu0 %v11608_v13 }
 0x2bc   : > { %3949 = vmatprep.mubr.bf16.mxu0 %v11606_v16 }
 0x2bd   : > { %v2528_v48 = vpop.f32.mrf.mxu0  ;;  %v8264_v38 = vpop.f32.mrf.mxu1 }
 0x2be   : > { %v11769_v46 = vadd.f32 %v8264_v38, %v8263_v11 }
 0x2bf   : > { %v2529_v29 = vpop.f32.mrf.mxu0  ;;  %v11771_v12 = vpop.f32.mrf.mxu1 }
 0x2c0   : > { %v11773_v15 = vpack.c.bf16 %v2529_v29, %v2526_v26  ;;  %v11788_v29 = vld [vmem:[%s13150_s28] ss:$0 sm:$0xff]  ;;  %s10249_s28 = scalar_lea.vmem %s12979_s21, 128 }
 0x2c1   : > { %v2531_v10 = vpop.f32.mrf.mxu0  ;;  %v11775_v32 = vpop.f32.mrf.mxu1  ;;  %p10250_p7 = scmp.ne.s32.totalorder %s12979_s21, %s10249_s28  ;;  %p10257_p11 = scmp.lt.s32.totalorder %s10255_s30, %s10249_s28 }
 0x2c2   : > { %9030 = vmatprep.mubr.bf16.mxu1 %v11773_v15 }
 0x2c3   : > { %v2534_v25 = vpop.f32.mrf.mxu0  ;;  %v8269_v28 = vpop.f32.mrf.mxu1  ;;  %3950 = vmatmul.mubr.bf16.gmra.mxu0 %v11614_v42  ;;  %v2973_v42 = vadd.f32 %v11624_v1, %v11788_v29  ;;  %p10251_p8 = pnand %p10250_p7, %p10484_p5  ;;  %p10258_p1 = por %p10257_p11, %p10256_p13 }
 0x2c4   : > { %3957 = vmatprep.mubr.bf16.mxu0 %v11612_v14 }
 0x2c5   : > { %v2536_v16 = vpop.f32.mrf.mxu0  ;;  %v8270_v13 = vpop.f32.mrf.mxu1  ;;  %p10252_p0 = pneg %p10251_p8 }
 0x2c6   : > { %v11780_v11 = vadd.f32 %v8270_v13, %v8269_v28 }
 0x2c7   : > { %v2537_v48 = vpop.f32.mrf.mxu0  ;;  %p10259_p3 = pnand %p10258_p1, %p10252_p0 }
 0x2c8   : > { %v11782_v38 = vpack.c.bf16 %v2537_v48, %v2534_v25  ;;  %v8196_v25 = vadd.f32 %v11634_v37, %v11626_v43  ;;  %v9865_v43 = vld [vmem:[#allocation2 + $0x128] sm:$0xff]   ;;  %v2981_v37 = vadd.f32 %v11639_v60, %v11788_v29 }
 0x2c9   : > { %v2539_v26 = vpop.f32.mrf.mxu0 }
 0x2ca   : > { %13149 = vst [vmem:[#allocation61_spill] sm:$0xff] %v11782_v38  ;;  %9031 = vmatmul.mubr.bf16.gmra.mxu1 %v11782_v38  ;;  %v9864_v26 = vld [vmem:[#allocation2 + $0x130] sm:$0xff]   ;;  %v2976_v38 = vadd.f32 %v8196_v25, %v11788_v29  ;;  %v2989_v25 = vadd.f32 %v11654_v0, %v11788_v29 }
 0x2cb   : > { %v8291_v10 = vpop.f32.mrf.mxu0  ;;  %3732 = vmatprep.mubr.bf16.mxu1 %v11230_v55  ;;  %3958 = vmatmul.mubr.bf16.gmra.mxu0 %v11620_v23 }
 0x2cc   : > { %3965 = vmatprep.mubr.bf16.mxu0 %v11618_v2 }
 0x2cd   : > { %v8292_v14 = vpop.f32.mrf.mxu0 }
 0x2ce   : > { %v8293_v28 = vadd.f32 %v8292_v14, %v8291_v10 }
 0x2cf   : > { %v8294_v16 = vpop.f32.mrf.mxu0 }
 0x2d0   : > { %v11797_v13 = vadd.f32 %v8293_v28, %v2973_v42  ;;  %v8208_v28 = vadd.f32 %v11662_v35, %v11656_v40  ;;  %v9869_v40 = vld [vmem:[#allocation2 + $0x108] sm:$0xff]  }
 0x2d1   : > { %v8295_v48 = vpop.f32.mrf.mxu0 }
 0x2d2   : > { %v8296_v55 = vadd.f32 %v8295_v48, %v8294_v16  ;;  %3733 = vmatmul.mubr.bf16.vlgmr.msra.gmra.mxu1 %v11253_v6  ;;  %v8202_v6 = vadd.f32 %v11649_v47, %v11641_v56  ;;  %v9867_v56 = vld [vmem:[#allocation2 + $0x118] sm:$0xff]   ;;  %v2992_v48 = vadd.f32 %v8208_v28, %v11788_v29 }
 0x2d3   : > { %v8297_v23 = vpop.f32.mrf.mxu0  ;;  %3740 = vmatprep.mubr.bf16.mxu1 %v11247_v4  ;;  %3966 = vmatmul.mubr.bf16.gmra.mxu0 %v11632_v61 }
 0x2d4   : > { %3973 = vmatprep.mubr.bf16.mxu0 %v11628_v8  ;;  %9035 = vmatpush3.bf16.msra.mxu1 %v11698_v27  ;;  %v11805_v1 = vadd.f32 %v8296_v55, %v2976_v38  ;;  %v9866_v8 = vld [vmem:[#allocation2 + $0x120] sm:$0xff]   ;;  %v2984_v27 = vadd.f32 %v8202_v6, %v11788_v29 }
 0x2d5   : > { %v8298_v2 = vpop.f32.mrf.mxu0  ;;  %9036 = vmatprep.subr.bf16.mxu1 %v9864_v26 }
 0x2d6   : > { %v8299_v10 = vadd.f32 %v8298_v2, %v8297_v23  ;;  %v2997_v23 = vadd.f32 %v11667_v21, %v11788_v29  ;;  %v8214_v2 = vadd.f32 %v11673_v63, %v11669_v39  ;;  %v3005_v63 = vadd.f32 %v11678_v30, %v11788_v29 }
 0x2d7   : > { %v8300_v14 = vpop.f32.mrf.mxu0 }
 0x2d8   : > { %9037 = vmatpush3.bf16.msra.mxu1 %v9864_v26  ;;  %v11811_v4 = vadd.f32 %v8299_v10, %v2981_v37  ;;  %v3000_v6 = vadd.f32 %v8214_v2, %v11788_v29 }
 0x2d9   : > { %v8301_v61 = vpop.f32.mrf.mxu0  ;;  %9038 = vmatprep.subr.bf16.mxu1 %v9865_v43 }
 0x2da   : > { %v8302_v38 = vadd.f32 %v8301_v61, %v8300_v14  ;;  %3741 = vmatmul.mubr.bf16.gmra.mxu1 %v11283_v22  ;;  %v8220_v61 = vadd.f32 %v11684_v41, %v11680_v17  ;;  %v3013_v17 = vadd.f32 %v11689_v18, %v11788_v29  ;;  %v8226_v41 = vadd.f32 %v11695_v44, %v11691_v57  ;;  %v13153_v18 = vld [vmem:[#allocation48_spill] sm:$0xff]  ;;  %v13154_v44 = vld [vmem:[#allocation50_spill] sm:$0xff] }
 0x2db   : > { %v8303_v42 = vpop.f32.mrf.mxu0  ;;  %3748 = vmatprep.mubr.bf16.mxu1 %v11277_v20  ;;  %3974 = vmatmul.mubr.bf16.gmra.mxu0 %v11647_v58  ;;  %v8232_v57 = vadd.f32 %v13154_v44, %v11705_v24  ;;  %v13158_v24 = vld [vmem:[#allocation52_spill] sm:$0xff]  ;;  %v13163_v44 = vld [vmem:[#allocation31_spill] sm:$0xff] }
 0x2dc   : > { %3981 = vmatprep.mubr.bf16.mxu0 %v11643_v9  ;;  %9039 = vmatpush3.bf16.msra.mxu1 %v9865_v43  ;;  %v11818_v47 = vadd.f32 %v8302_v38, %v2984_v27  ;;  %v9868_v9 = vld [vmem:[#allocation2 + $0x110] sm:$0xff]  }
 0x2dd   : > { %v8304_v60 = vpop.f32.mrf.mxu0  ;;  %9040 = vmatprep.subr.bf16.mxu1 %v9866_v8 }
 0x2de   : > { %v8305_v22 = vadd.f32 %v8304_v60, %v8303_v42  ;;  %v3008_v42 = vadd.f32 %v8220_v61, %v11788_v29  ;;  %v8238_v61 = vadd.f32 %v13158_v24, %v11716_v53  ;;  %v13161_v53 = vld [vmem:[#allocation54_spill] sm:$0xff]  ;;  %v13167_v24 = vld [vmem:[#allocation33_spill] sm:$0xff] }
 0x2df   : > { %v8306_v16 = vpop.f32.mrf.mxu0 }
 0x2e0   : > { %9041 = vmatpush3.bf16.msra.mxu1 %v9866_v8  ;;  %v11824_v20 = vadd.f32 %v8305_v22, %v2989_v25 }
 0x2e1   : > { %v8307_v58 = vpop.f32.mrf.mxu0  ;;  %9042 = vmatprep.subr.bf16.mxu1 %v9867_v56 }
 0x2e2   : > { %v8308_v26 = vadd.f32 %v8307_v58, %v8306_v16  ;;  %3749 = vmatmul.mubr.bf16.gmra.mxu1 %v11308_v36  ;;  %v3016_v58 = vadd.f32 %v8226_v41, %v11788_v29  ;;  %v13160_v41 = vld [vmem:[#allocation29_spill] sm:$0xff] }
 0x2e3   : > { %v8309_v55 = vpop.f32.mrf.mxu0  ;;  %3756 = vmatprep.mubr.bf16.mxu1 %v11301_v34  ;;  %3982 = vmatmul.mubr.bf16.gmra.mxu0 %v11660_v31  ;;  %v9870_v31 = vld [vmem:[#allocation2 + $0x100] sm:$0xff]  }
 0x2e4   : > { %9043 = vmatpush3.bf16.msra.mxu1 %v9867_v56  ;;  %v11830_v35 = vadd.f32 %v8308_v26, %v2992_v48  ;;  %v13152_v48 = vld [vmem:[#allocation25_spill] sm:$0xff] }
 0x2e5   : > { %v8310_v0 = vpop.f32.mrf.mxu0  ;;  %9044 = vmatprep.subr.bf16.mxu1 %v9868_v9 }
 0x2e6   : > { %v8311_v43 = vadd.f32 %v8310_v0, %v8309_v55  ;;  %v3021_v0 = vadd.f32 %v13153_v18, %v11788_v29  ;;  %v13162_v18 = vld [vmem:[#allocation32_spill] sm:$0xff] }
 0x2e7   : > { %v8312_v37 = vpop.f32.mrf.mxu0 }
 0x2e8   : > { %9045 = vmatpush3.bf16.msra.mxu1 %v9868_v9  ;;  %v11836_v36 = vadd.f32 %v8311_v43, %v2997_v23  ;;  %v13151_v9 = vld [vmem:[#allocation26_spill] sm:$0xff] }
 0x2e9   : > { %v8313_v34 = vpop.f32.mrf.mxu0  ;;  %9046 = vmatprep.subr.bf16.mxu1 %v9869_v40 }
 0x2ea   : > { %v8314_v10 = vadd.f32 %v8313_v34, %v8312_v37  ;;  %3757 = vmatmul.mubr.bf16.gmra.mxu1 %v11337_v52  ;;  %v3024_v37 = vadd.f32 %v8232_v57, %v11788_v29 }
 0x2eb   : > { %v8315_v14 = vpop.f32.mrf.mxu0  ;;  %3764 = vmatprep.mubr.bf16.mxu1 %v11330_v50 }
 0x2ec   : > { %9047 = vmatpush3.bf16.msra.mxu1 %v9869_v40  ;;  %v11841_v21 = vadd.f32 %v8314_v10, %v3000_v6  ;;  %v13156_v10 = vld [vmem:[#allocation27_spill] sm:$0xff] }
 0x2ed   : > { %v8316_v39 = vpop.f32.mrf.mxu0  ;;  %9048 = vmatprep.subr.bf16.mxu1 %v9870_v31 }
 0x2ee   : > { %v8317_v8 = vadd.f32 %v8316_v39, %v8315_v14 }
 0x2ef   : > { %v8318_v27 = vpop.f32.mrf.mxu0 }
 0x2f0   : > { %9049 = vmatpush3.bf16.msra.mxu1 %v9870_v31  ;;  %v11847_v38 = vadd.f32 %v8317_v8, %v3005_v63  ;;  %v13155_v31 = vld [vmem:[#allocation28_spill] sm:$0xff]  ;;  %v3029_v63 = vadd.f32 %v11714_v59, %v11788_v29  ;;  %v3037_v59 = vadd.f32 %v11725_v62, %v11788_v29  ;;  %v3045_v62 = vadd.f32 %v11736_v33, %v11788_v29 }
 0x2f1   : > { %v8319_v52 = vpop.f32.mrf.mxu0  ;;  %v3053_v33 = vadd.f32 %v11747_v51, %v11788_v29 }
 0x2f2   : > { %v8320_v50 = vadd.f32 %v8319_v52, %v8318_v27  ;;  %3765 = vmatmul.mubr.bf16.gmra.mxu1 %v11363_v7 }
 0x2f3   : > { %v8321_v60 = vpop.f32.mrf.mxu0  ;;  %3772 = vmatprep.mubr.bf16.mxu1 %v11356_v3 }
 0x2f4   : > { %v11852_v56 = vadd.f32 %v8320_v50, %v3008_v42  ;;  %v3032_v50 = vadd.f32 %v8238_v61, %v11788_v29 }
 0x2f5   : > { %v8322_v30 = vpop.f32.mrf.mxu0 }
 0x2f6   : > { %v8323_v25 = vadd.f32 %v8322_v30, %v8321_v60  ;;  %v13159_v30 = vld [vmem:[#allocation30_spill] sm:$0xff] }
 0x2f7   : > { %v8324_v28 = vpop.f32.mrf.mxu0 }
 0x2f8   : > { %v11858_v22 = vadd.f32 %v8323_v25, %v3013_v17 }
 0x2f9   : > { %v8325_v16 = vpop.f32.mrf.mxu0 }
 0x2fa   : > { %v8326_v7 = vadd.f32 %v8325_v16, %v8324_v28  ;;  %3773 = vmatmul.mubr.bf16.gmra.mxu1 %v13151_v9  ;;  %v8244_v16 = vadd.f32 %v13161_v53, %v11727_v19  ;;  %v13165_v19 = vld [vmem:[#allocation56_spill] sm:$0xff]  ;;  %v13170_v53 = vld [vmem:[#allocation35_spill] sm:$0xff] }
 0x2fb   : > { %v8327_v3 = vpop.f32.mrf.mxu0  ;;  %3780 = vmatprep.mubr.bf16.mxu1 %v13152_v48 }
 0x2fc   : > { %v11863_v26 = vadd.f32 %v8326_v7, %v3016_v58  ;;  %v3040_v48 = vadd.f32 %v8244_v16, %v11788_v29  ;;  %v8272_v16 = vpop.f32.mrf.mxu1 }
 0x2fd   : > { %v8328_v55 = vpop.f32.mrf.mxu0 }
 0x2fe   : > { %v8329_v40 = vadd.f32 %v8328_v55, %v8327_v3 }
 0x2ff   : > { %v8330_v23 = vpop.f32.mrf.mxu0 }
 0x300   : > { %v11869_v2 = vadd.f32 %v8329_v40, %v3021_v0 }
 0x301   : > { %v8331_v43 = vpop.f32.mrf.mxu0 }
 0x302   : > { %v8332_v34 = vadd.f32 %v8331_v43, %v8330_v23  ;;  %3781 = vmatmul.mubr.bf16.gmra.mxu1 %v13155_v31  ;;  %v8250_v23 = vadd.f32 %v13165_v19, %v11738_v49  ;;  %v13168_v49 = vld [vmem:[#allocation58_spill] sm:$0xff] }
 0x303   : > { %v8333_v6 = vpop.f32.mrf.mxu0  ;;  %3788 = vmatprep.mubr.bf16.mxu1 %v13156_v10 }
 0x304   : > { %v11874_v14 = vadd.f32 %v8332_v34, %v3024_v37 }
 0x305   : > { %v8334_v39 = vpop.f32.mrf.mxu0 }
 0x306   : > { %13157 = vst [vmem:[#allocation26_spill] sm:$0xff] %v11874_v14  ;;  %v8335_v8 = vadd.f32 %v8334_v39, %v8333_v6  ;;  %v3048_v6 = vadd.f32 %v8250_v23, %v11788_v29  ;;  %v13166_v39 = vld [vmem:[#allocation34_spill] sm:$0xff] }
 0x307   : > { %v8336_v27 = vpop.f32.mrf.mxu0  ;;  %v13173_v23 = vld [vmem:[#allocation38_spill] sm:$0xff] }
 0x308   : > { %v11880_v52 = vadd.f32 %v8335_v8, %v3029_v63 }
 0x309   : > { %v8337_v42 = vpop.f32.mrf.mxu0 }
 0x30a   : > { %v8338_v60 = vadd.f32 %v8337_v42, %v8336_v27  ;;  %3789 = vmatmul.mubr.bf16.gmra.mxu1 %v13159_v30  ;;  %v8256_v27 = vadd.f32 %v13168_v49, %v11749_v45  ;;  %v3061_v45 = vadd.f32 %v11758_v54, %v11788_v29  ;;  %v13174_v54 = vld [vmem:[#allocation37_spill] sm:$0xff] }
 0x30b   : > { %v8339_v17 = vpop.f32.mrf.mxu0  ;;  %3796 = vmatprep.mubr.bf16.mxu1 %v13160_v41 }
 0x30c   : > { %v11885_v25 = vadd.f32 %v8338_v60, %v3032_v50 }
 0x30d   : > { %v8340_v28 = vpop.f32.mrf.mxu0 }
 0x30e   : > { %v8341_v58 = vadd.f32 %v8340_v28, %v8339_v17  ;;  %v3056_v17 = vadd.f32 %v8256_v27, %v11788_v29  ;;  %v13169_v28 = vld [vmem:[#allocation36_spill] sm:$0xff] }
 0x30f   : > { %v8342_v7 = vpop.f32.mrf.mxu0 }
 0x310   : > { %v11891_v9 = vadd.f32 %v8341_v58, %v3037_v59 }
 0x311   : > { %v8343_v3 = vpop.f32.mrf.mxu0 }
 0x312   : > { %v8344_v55 = vadd.f32 %v8343_v3, %v8342_v7  ;;  %3797 = vmatmul.mubr.bf16.gmra.mxu1 %v13162_v18  ;;  %v13172_v7 = vld [vmem:[#allocation60_spill] sm:$0xff]  ;;  %v8273_v18 = vpop.f32.mrf.mxu1 }
 0x313   : > { %v8345_v0 = vpop.f32.mrf.mxu0  ;;  %3804 = vmatprep.mubr.bf16.mxu1 %v13163_v44  ;;  %v8262_v3 = vadd.f32 %v13172_v7, %v11760_v5 }
 0x314   : > { %v11896_v57 = vadd.f32 %v8344_v55, %v3040_v48 }
 0x315   : > { %v8346_v40 = vpop.f32.mrf.mxu0 }
 0x316   : > { %13164 = vst [vmem:[#allocation25_spill] sm:$0xff] %v11896_v57  ;;  %v8347_v43 = vadd.f32 %v8346_v40, %v8345_v0  ;;  %v3064_v40 = vadd.f32 %v8262_v3, %v11788_v29 }
 0x317   : > { %v8348_v37 = vpop.f32.mrf.mxu0 }
 0x318   : > { %v11902_v34 = vadd.f32 %v8347_v43, %v3045_v62 }
 0x319   : > { %v8349_v31 = vpop.f32.mrf.mxu0 }
 0x31a   : > { %v8350_v10 = vadd.f32 %v8349_v31, %v8348_v37  ;;  %3805 = vmatmul.mubr.bf16.gmra.mxu1 %v13166_v39  ;;  %v3069_v39 = vadd.f32 %v11769_v46, %v11788_v29 }
 0x31b   : > { %v8351_v63 = vpop.f32.mrf.mxu0  ;;  %3812 = vmatprep.mubr.bf16.mxu1 %v13167_v24 }
 0x31c   : > { %v11907_v61 = vadd.f32 %v8350_v10, %v3048_v6 }
 0x31d   : > { %v8352_v8 = vpop.f32.mrf.mxu0 }
 0x31e   : > { %v8353_v42 = vadd.f32 %v8352_v8, %v8351_v63  ;;  %v8268_v63 = vadd.f32 %v11775_v32, %v11771_v12  ;;  %v3077_v32 = vadd.f32 %v11780_v11, %v11788_v29 }
 0x31f   : > { %v8354_v50 = vpop.f32.mrf.mxu0 }
 0x320   : > { %v11913_v60 = vadd.f32 %v8353_v42, %v3053_v33  ;;  %v3072_v42 = vadd.f32 %v8268_v63, %v11788_v29 }
 0x321   : > { %v8355_v30 = vpop.f32.mrf.mxu0 }
 0x322   : > { %v8356_v41 = vadd.f32 %v8355_v30, %v8354_v50  ;;  %3813 = vmatmul.mubr.bf16.gmra.mxu1 %v13169_v28  ;;  %v13175_v50 = vld [vmem:[#allocation40_spill] sm:$0xff] }
 0x323   : > { %v8357_v59 = vpop.f32.mrf.mxu0  ;;  %3820 = vmatprep.mubr.bf16.mxu1 %v13170_v53 }
 0x324   : > { %v11918_v58 = vadd.f32 %v8356_v41, %v3056_v17  ;;  %v13176_v17 = vld [vmem:[#allocation39_spill] sm:$0xff] }
 0x325   : > { %v8358_v51 = vpop.f32.mrf.mxu0 }
 0x326   : > { %13171 = vst [vmem:[#allocation48_spill] sm:$0xff] %v11918_v58  ;;  %v8359_v48 = vadd.f32 %v8358_v51, %v8357_v59 }
 0x327   : > { %v8360_v55 = vpop.f32.mrf.mxu0 }
 0x328   : > { %v11924_v0 = vadd.f32 %v8359_v48, %v3061_v45  ;;  %v13178_v48 = vld [vmem:[#allocation41_spill] sm:$0xff] }
 0x329   : > { %v8361_v44 = vpop.f32.mrf.mxu0 }
 0x32a   : > { %v8362_v62 = vadd.f32 %v8361_v44, %v8360_v55  ;;  %v9008_v19 = vpop.f32.mrf.mxu1  ;;  %3821 = vmatmul.mubr.bf16.gmra.mxu1 %v13173_v23 }
 0x32b   : > { %v11929_v43 = vadd.f32 %v9008_v19, %v11811_v4  ;;  %v8363_v37 = vpop.f32.mrf.mxu0  ;;  %3828 = vmatprep.mubr.bf16.mxu1 %v13174_v54  ;;  %v13180_v54 = vld [vmem:[#allocation43_spill] sm:$0xff] }
 0x32c   : > { %v3262_v31 = vpop.f32.mrf.mxu1  ;;  %v11932_v5 = vadd.f32 %v8362_v62, %v3064_v40  ;;  %v13179_v40 = vld [vmem:[#allocation42_spill] sm:$0xff] }
 0x32d   : > { %v11935_v6 = vadd.f32 %v3262_v31, %v11797_v13  ;;  %v8364_v10 = vpop.f32.mrf.mxu0 }
 0x32e   : > { %v8365_v24 = vadd.f32 %v8364_v10, %v8363_v37  ;;  %v9009_v8 = vpop.f32.mrf.mxu1  ;;  %v13181_v10 = vld [vmem:[#allocation44_spill] sm:$0xff] }
 0x32f   : > { %v11942_v4 = vadd.f32 %v9009_v8, %v11818_v47  ;;  %v8366_v33 = vpop.f32.mrf.mxu0  ;;  %v8274_v47 = vadd.f32 %v8273_v18, %v8272_v16 }
 0x330   : > { %v11944_v49 = vadd.f32 %v8365_v24, %v3069_v39  ;;  %v11953_v59 = vpop.f32.mrf.mxu1 }
 0x331   : > { %v8367_v27 = vpop.f32.mrf.mxu0  ;;  %v3080_v45 = vadd.f32 %v8274_v47, %v11788_v29 }
 0x332   : > { %v8368_v13 = vadd.f32 %v8367_v27, %v8366_v33  ;;  %3829 = vmatmul.mubr.bf16.gmra.mxu1 %v13175_v50  ;;  %v13182_v33 = vld [vmem:[#allocation45_spill] sm:$0xff] }
 0x333   : > { %v8369_v30 = vpop.f32.mrf.mxu0  ;;  %3836 = vmatprep.mubr.bf16.mxu1 %v13176_v17 }
 0x334   : > { %v11949_v46 = vadd.f32 %v8368_v13, %v3072_v42  ;;  %v13183_v13 = vld [vmem:[#allocation46_spill] sm:$0xff] }
 0x335   : > { %v8370_v12 = vpop.f32.mrf.mxu0 }
 0x336   : > { %13177 = vst [vmem:[#allocation50_spill] sm:$0xff] %v11949_v46  ;;  %v8371_v41 = vadd.f32 %v8370_v12, %v8369_v30 }
 0x337   : > { %v8372_v28 = vpop.f32.mrf.mxu0 }
 0x338   : > { %v11955_v53 = vadd.f32 %v8371_v41, %v3077_v32 }
 0x339   : > { %v8373_v51 = vpop.f32.mrf.mxu0 }
 0x33a   : > { %v8374_v7 = vadd.f32 %v8373_v51, %v8372_v28  ;;  %v9012_v3 = vpop.f32.mrf.mxu1  ;;  %3837 = vmatmul.mubr.bf16.gmra.mxu1 %v13178_v48 }
 0x33b   : > { %v11960_v55 = vadd.f32 %v9012_v3, %v11836_v36  ;;  %v8513_v44 = vpop.f32.mrf.mxu0  ;;  %9050 = vmatprep.mubr.bf16.mxu1 %v13179_v40  ;;  %v13186_v40 = vld [vmem:[#allocation51_spill] sm:$0xff] }
 0x33c   : > { %v3278_v11 = vpop.f32.mrf.mxu1  ;;  %v11963_v16 = vadd.f32 %v8374_v7, %v3080_v45  ;;  %v13185_v45 = vld [vmem:[#allocation49_spill] sm:$0xff] }
 0x33d   : > { %v11966_v18 = vadd.f32 %v3278_v11, %v11824_v20  ;;  %v8514_v62 = vpop.f32.mrf.mxu0 }
 0x33e   : > { %v11968_v19 = vadd.f32 %v8514_v62, %v8513_v44  ;;  %v9013_v29 = vpop.f32.mrf.mxu1 }
 0x33f   : > { %v11971_v23 = vadd.f32 %v9013_v29, %v11841_v21  ;;  %v11973_v37 = vpop.f32.mrf.mxu0  ;;  %v13188_v29 = vld [vmem:[#allocation53_spill] sm:$0xff] }
 0x340   : > { %v11983_v24 = vpop.f32.mrf.mxu1 }
 0x341   : > { %v11975_v36 = vpop.f32.mrf.mxu0 }
 0x342   : > { %9051 = vmatmul.mubr.bf16.vlgmr.msra.gmra.mxu1 %v13180_v54 }
 0x343   : > { %v8519_v31 = vpop.f32.mrf.mxu0  ;;  %9054 = vmatprep.mubr.bf16.mxu1 %v13181_v10 }
 0x345   : > { %v8520_v39 = vpop.f32.mrf.mxu0 }
 0x346   : > { %v11979_v63 = vadd.f32 %v8520_v39, %v8519_v31 }
 0x347   : > { %v11981_v20 = vpop.f32.mrf.mxu0 }
 0x349   : > { %v11985_v8 = vpop.f32.mrf.mxu0 }
 0x34a   : > { %v9016_v21 = vpop.f32.mrf.mxu1  ;;  %9055 = vmatmul.mubr.bf16.gmra.mxu1 %v13182_v33 }
 0x34b   : > { %v11989_v27 = vadd.f32 %v9016_v21, %v11858_v22  ;;  %v8525_v42 = vpop.f32.mrf.mxu0  ;;  %9058 = vmatprep.mubr.bf16.mxu1 %v13183_v13  ;;  %v13184_v22 = vld [vmem:[#allocation47_spill] sm:$0xff] }
 0x34c   : > { %v3294_v50 = vpop.f32.mrf.mxu1 }
 0x34d   : > { %v11993_v30 = vadd.f32 %v3294_v50, %v11847_v38  ;;  %v8526_v17 = vpop.f32.mrf.mxu0  ;;  %v13192_v50 = vld [vmem:[#allocation57_spill] sm:$0xff] }
 0x34e   : > { %v11995_v12 = vadd.f32 %v8526_v17, %v8525_v42  ;;  %v9017_v32 = vpop.f32.mrf.mxu1 }
 0x34f   : > { %v11998_v47 = vadd.f32 %v9017_v32, %v11863_v26  ;;  %v12000_v41 = vpop.f32.mrf.mxu0 }
 0x350   : > { %v12010_v48 = vpop.f32.mrf.mxu1 }
 0x351   : > { %v12002_v28 = vpop.f32.mrf.mxu0 }
 0x352   : > { %9059 = vmatmul.mubr.bf16.gmra.mxu1 %v13184_v22 }
 0x353   : > { %v8531_v51 = vpop.f32.mrf.mxu0  ;;  %9062 = vmatprep.mubr.bf16.mxu1 %v13185_v45 }
 0x355   : > { %v8532_v7 = vpop.f32.mrf.mxu0 }
 0x356   : > { %v12006_v3 = vadd.f32 %v8532_v7, %v8531_v51  ;;  %v13194_v51 = vld [vmem:[#allocation59_spill] sm:$0xff] }
 0x357   : > { %v12008_v38 = vpop.f32.mrf.mxu0 }
 0x359   : > { %v12012_v44 = vpop.f32.mrf.mxu0 }
 0x35a   : > { %v9020_v26 = vpop.f32.mrf.mxu1  ;;  %9063 = vmatmul.mubr.bf16.gmra.mxu1 %v13186_v40 }
 0x35b   : > { %v12016_v11 = vadd.f32 %v9020_v26, %v11880_v52  ;;  %v12018_v62 = vpop.f32.mrf.mxu0  ;;  %9066 = vmatprep.mubr.bf16.mxu1 %v13188_v29  ;;  %v13191_v52 = vld [vmem:[#allocation55_spill] sm:$0xff] }
 0x35c   : > { %v3310_v54 = vpop.f32.mrf.mxu1 }
 0x35d   : > { %13187 = vst [vmem:[#allocation28_spill] sm:$0xff] %v12016_v11  ;;  %v12022_v31 = vadd.f32 %v3310_v54, %v11869_v2  ;;  %v12024_v10 = vpop.f32.mrf.mxu0 }
 0x35e   : > { %v9021_v39 = vpop.f32.mrf.mxu1 }
 0x35f   : > { %13189 = vst [vmem:[#allocation27_spill] sm:$0xff] %v12022_v31  ;;  %v12027_v21 = vadd.f32 %v9021_v39, %v11885_v25  ;;  %v12029_v33 = vpop.f32.mrf.mxu0  ;;  %v9873_v31 = vld [vmem:[#allocation5 + $0x4] ss:$8 sps:$4 sm:$0xff]  }
 0x360   : > { %v12041_v32 = vpop.f32.mrf.mxu1  ;;  %7947 = vmatprep.mubr.msk.bf16.mxu0 %vm985_vm0, %v9873_v31 }
 0x361   : > { %13190 = vst [vmem:[#allocation52_spill] sm:$0xff] %v12027_v21  ;;  %v12031_v42 = vpop.f32.mrf.mxu0  ;;  %13193 = vst [vmem:[#allocation30_spill] sm:$0xff] %v12041_v32 }
 0x362   : > { %9067 = vmatmul.mubr.bf16.gmra.mxu1 %v13191_v52 }
 0x363   : > { %v12034_v13 = vpop.f32.mrf.mxu0  ;;  %9070 = vmatprep.mubr.bf16.mxu1 %v13192_v50 }
 0x365   : > { %v12037_v17 = vpop.f32.mrf.mxu0 }
 0x367   : > { %v12039_v2 = vpop.f32.mrf.mxu0 }
 0x369   : > { %v12043_v22 = vpop.f32.mrf.mxu0 }
 0x36a   : > { %v9024_v25 = vpop.f32.mrf.mxu1  ;;  %9071 = vmatmul.mubr.bf16.gmra.mxu1 %v13194_v51 }
 0x36b   : > { %v12047_v45 = vadd.f32 %v9024_v25, %v11902_v34  ;;  %v12049_v7 = vpop.f32.mrf.mxu0  ;;  %9074 = vmatprep.mubr.bf16.mxu1 %v11773_v15  ;;  %v13200_v34 = vld [vmem:[#allocation61_spill] sm:$0xff] }
 0x36c   : > { %v3326_v26 = vpop.f32.mrf.mxu1 }
 0x36d   : > { %13195 = vst [vmem:[#allocation29_spill] sm:$0xff] %v12047_v45  ;;  %v12053_v40 = vadd.f32 %v3326_v26, %v11891_v9  ;;  %v12055_v29 = vpop.f32.mrf.mxu0 }
 0x36e   : > { %v9025_v54 = vpop.f32.mrf.mxu1 }
 0x36f   : > { %13196 = vst [vmem:[#allocation54_spill] sm:$0xff] %v12053_v40  ;;  %v12058_v39 = vadd.f32 %v9025_v54, %v11907_v61  ;;  %v12060_v52 = vpop.f32.mrf.mxu0 }
 0x370   : > { %13198 = vst [vmem:[#allocation31_spill] sm:$0xff] %v12060_v52  ;;  %v12071_v9 = vpop.f32.mrf.mxu1 }
 0x371   : > { %13197 = vst [vmem:[#allocation32_spill] sm:$0xff] %v12058_v39  ;;  %v12062_v50 = vpop.f32.mrf.mxu0  ;;  %13201 = vst [vmem:[#allocation34_spill] sm:$0xff] %v12071_v9 }
 0x372   : > { %13199 = vst [vmem:[#allocation56_spill] sm:$0xff] %v12062_v50  ;;  %9075 = vmatmul.mubr.bf16.gmra.mxu1 %v13200_v34 }
 0x373   : > { %v12065_v25 = vpop.f32.mrf.mxu0 }
 0x375   : > { %v12067_v51 = vpop.f32.mrf.mxu0 }
 0x377   : > { %v12069_v15 = vpop.f32.mrf.mxu0 }
 0x379   : > { %v12073_v26 = vpop.f32.mrf.mxu0 }
 0x37a   : > { %v9028_v46 = vpop.f32.mrf.mxu1 }
 0x37b   : > { %v12076_v61 = vadd.f32 %v9028_v46, %v11924_v0  ;;  %v8561_v54 = vpop.f32.mrf.mxu0 }
 0x37c   : > { %v3342_v58 = vpop.f32.mrf.mxu1 }
 0x37d   : > { %13202 = vst [vmem:[#allocation33_spill] sm:$0xff] %v12076_v61  ;;  %v12079_v39 = vadd.f32 %v3342_v58, %v11913_v60  ;;  %v8562_v34 = vpop.f32.mrf.mxu0 }
 0x37e   : > { %v12081_v57 = vadd.f32 %v8562_v34, %v8561_v54  ;;  %v9029_v40 = vpop.f32.mrf.mxu1 }
 0x37f   : > { %13203 = vst [vmem:[#allocation58_spill] sm:$0xff] %v12079_v39  ;;  %v12084_v45 = vadd.f32 %v9029_v40, %v11932_v5  ;;  %v12102_v5 = vld [vmem:[%s13023_s5] ss:$0 sm:$0xff] }
 0x380   : > { %v12086_v21 = vpop.f32.mrf.mxu1 }
 0x381   : > { %13204 = vst [vmem:[#allocation36_spill] sm:$0xff] %v12084_v45  ;;  %13205 = vst [vmem:[#allocation35_spill] sm:$0xff] %v12086_v21 }
 0x38a   : > { %v9032_v9 = vpop.f32.mrf.mxu1 }
 0x38b   : > { %v12089_v32 = vadd.f32 %v9032_v9, %v11955_v53 }
 0x38c   : > { %v3358_v0 = vpop.f32.mrf.mxu1 }
 0x38d   : > { %13206 = vst [vmem:[#allocation60_spill] sm:$0xff] %v12089_v32  ;;  %v12092_v46 = vadd.f32 %v3358_v0, %v11944_v49 }
 0x38e   : > { %v9033_v61 = vpop.f32.mrf.mxu1 }
 0x38f   : > { %13207 = vst [vmem:[#allocation38_spill] sm:$0xff] %v12092_v46  ;;  %v12095_v60 = vadd.f32 %v9033_v61, %v11963_v16  ;;  %v8518_v61 = vadd.f32 %v11975_v36, %v11973_v37 }
 0x390   : > { %v12097_v58 = vpop.f32.mrf.mxu1 }
 0x391   : > { %13208 = vst [vmem:[#allocation37_spill] sm:$0xff] %v12095_v60  ;;  %13209 = vst [vmem:[#allocation40_spill] sm:$0xff] %v12097_v58 }
 0x392   : > { %v8413_v54 = vpop.f32.mrf.mxu1 }
 0x394   : > { %v8414_v40 = vpop.f32.mrf.mxu1 }
 0x395   : > { %v8415_v34 = vadd.f32 %v8414_v40, %v8413_v54 }
 0x396   : > { %v8416_v53 = vpop.f32.mrf.mxu1 }
 0x397   : > { %v3735_v9 = vadd.f32 %v8415_v34, %v12102_v5 }
 0x398   : > { %v8417_v32 = vpop.f32.mrf.mxu1 }
 0x399   : > { %v8418_v49 = vadd.f32 %v8417_v32, %v8416_v53  ;;  %v12106_v0 = vadd.f32 %v11968_v19, %v3735_v9  ;;  %v8524_v53 = vadd.f32 %v11985_v8, %v11981_v20 }
 0x39a   : > { %v8419_v16 = vpop.f32.mrf.mxu1 }
 0x39b   : > { %v3738_v60 = vadd.f32 %v8418_v49, %v12102_v5 }
 0x39c   : > { %v8420_v58 = vpop.f32.mrf.mxu1 }
 0x39d   : > { %v8421_v46 = vadd.f32 %v8420_v58, %v8419_v16  ;;  %v12111_v45 = vadd.f32 %v8518_v61, %v3738_v60  ;;  %v8530_v61 = vadd.f32 %v12002_v28, %v12000_v41 }
 0x39e   : > { %v8422_v21 = vpop.f32.mrf.mxu1 }
 0x39f   : > { %v3743_v54 = vadd.f32 %v8421_v46, %v12102_v5 }
 0x3a0   : > { %v8423_v40 = vpop.f32.mrf.mxu1 }
 0x3a1   : > { %v8424_v34 = vadd.f32 %v8423_v40, %v8422_v21  ;;  %v12115_v32 = vadd.f32 %v11979_v63, %v3743_v54 }
 0x3a2   : > { %v8425_v19 = vpop.f32.mrf.mxu1 }
 0x3a3   : > { %v3746_v37 = vadd.f32 %v8424_v34, %v12102_v5 }
 0x3a4   : > { %v8426_v36 = vpop.f32.mrf.mxu1 }
 0x3a5   : > { %v8427_v9 = vadd.f32 %v8426_v36, %v8425_v19  ;;  %v12120_v49 = vadd.f32 %v8524_v53, %v3746_v37 }
 0x3a6   : > { %v8428_v60 = vpop.f32.mrf.mxu1 }
 0x3a7   : > { %v3751_v58 = vadd.f32 %v8427_v9, %v12102_v5  ;;  %v8536_v9 = vadd.f32 %v12012_v44, %v12008_v38 }
 0x3a8   : > { %v8429_v16 = vpop.f32.mrf.mxu1 }
 0x3a9   : > { %v8430_v46 = vadd.f32 %v8429_v16, %v8428_v60  ;;  %v12124_v21 = vadd.f32 %v11995_v12, %v3751_v58 }
 0x3aa   : > { %v8431_v63 = vpop.f32.mrf.mxu1 }
 0x3ab   : > { %v3754_v20 = vadd.f32 %v8430_v46, %v12102_v5 }
 0x3ac   : > { %v8432_v8 = vpop.f32.mrf.mxu1 }
 0x3ad   : > { %v8433_v54 = vadd.f32 %v8432_v8, %v8431_v63  ;;  %v12129_v40 = vadd.f32 %v8530_v61, %v3754_v20 }
 0x3ae   : > { %v8434_v34 = vpop.f32.mrf.mxu1 }
 0x3af   : > { %v3759_v19 = vadd.f32 %v8433_v54, %v12102_v5 }
 0x3b0   : > { %v8435_v53 = vpop.f32.mrf.mxu1 }
 0x3b1   : > { %v8436_v37 = vadd.f32 %v8435_v53, %v8434_v34  ;;  %v12133_v36 = vadd.f32 %v12006_v3, %v3759_v19 }
 0x3b2   : > { %v8437_v12 = vpop.f32.mrf.mxu1 }
 0x3b3   : > { %v3762_v41 = vadd.f32 %v8436_v37, %v12102_v5 }
 0x3b4   : > { %v8438_v28 = vpop.f32.mrf.mxu1 }
 0x3b5   : > { %v12138_v60 = vadd.f32 %v8438_v28, %v8437_v12  ;;  %v12140_v58 = vadd.f32 %v8536_v9, %v3762_v41 }
 0x3b6   : > { %v12142_v16 = vpop.f32.mrf.mxu1 }
 0x3b8   : > { %v12144_v46 = vpop.f32.mrf.mxu1 }
 0x3ba   : > { %v8443_v63 = vpop.f32.mrf.mxu1 }
 0x3bc   : > { %v8444_v61 = vpop.f32.mrf.mxu1 }
 0x3bd   : > { %v12146_v20 = vadd.f32 %v8444_v61, %v8443_v63 }
 0x3be   : > { %v12148_v3 = vpop.f32.mrf.mxu1 }
 0x3c0   : > { %v12150_v8 = vpop.f32.mrf.mxu1 }
 0x3c2   : > { %v8449_v38 = vpop.f32.mrf.mxu1 }
 0x3c4   : > { %v8450_v44 = vpop.f32.mrf.mxu1 }
 0x3c5   : > { %v12152_v54 = vadd.f32 %v8450_v44, %v8449_v38 }
 0x3c6   : > { %v12154_v34 = vpop.f32.mrf.mxu1 }
 0x3c8   : > { %v12156_v19 = vpop.f32.mrf.mxu1 }
 0x3ca   : > { %v8455_v53 = vpop.f32.mrf.mxu1 }
 0x3cc   : > { %v8456_v37 = vpop.f32.mrf.mxu1 }
 0x3cd   : > { %v12158_v12 = vadd.f32 %v8456_v37, %v8455_v53  ;;  %v12172_v53 = vpop.f32.mrf.mxu0 }
 0x3ce   : > { %v12160_v9 = vpop.f32.mrf.mxu1  ;;  %13213 = vst [vmem:[#allocation43_spill] sm:$0xff] %v12172_v53 }
 0x3d0   : > { %v12162_v41 = vpop.f32.mrf.mxu1 }
 0x3d2   : > { %v8461_v28 = vpop.f32.mrf.mxu1 }
 0x3d4   : > { %v8462_v63 = vpop.f32.mrf.mxu1 }
 0x3d5   : > { %v8463_v61 = vadd.f32 %v8462_v63, %v8461_v28  ;;  %v12179_v28 = vpop.f32.mrf.mxu0 }
 0x3d6   : > { %v12164_v39 = vpop.f32.mrf.mxu1  ;;  %13215 = vst [vmem:[#allocation45_spill] sm:$0xff] %v12179_v28 }
 0x3d7   : > { %13210 = vst [vmem:[#allocation39_spill] sm:$0xff] %v12164_v39  ;;  %v3799_v38 = vadd.f32 %v8463_v61, %v12102_v5 }
 0x3d8   : > { %v12167_v44 = vpop.f32.mrf.mxu1 }
 0x3d9   : > { %13211 = vst [vmem:[#allocation41_spill] sm:$0xff] %v12167_v44  ;;  %v12170_v14 = vadd.f32 %v12081_v57, %v3799_v38  ;;  %v12183_v44 = vpop.f32.mrf.mxu0 }
 0x3da   : > { %v8467_v11 = vpop.f32.mrf.mxu1  ;;  %13217 = vst [vmem:[#allocation47_spill] sm:$0xff] %v12183_v44 }
 0x3db   : > { %13212 = vst [vmem:[#allocation42_spill] sm:$0xff] %v12170_v14  ;;  %v12189_v53 = vpop.f32.mrf.mxu0 }
 0x3dc   : > { %v8468_v37 = vpop.f32.mrf.mxu1  ;;  %13220 = vst [vmem:[#allocation53_spill] sm:$0xff] %v12189_v53 }
 0x3dd   : > { %v12175_v50 = vadd.f32 %v8468_v37, %v8467_v11  ;;  %v12193_v37 = vpop.f32.mrf.mxu0 }
 0x3de   : > { %v12177_v52 = vpop.f32.mrf.mxu1  ;;  %13222 = vst [vmem:[#allocation57_spill] sm:$0xff] %v12193_v37 }
 0x3df   : > { %13214 = vst [vmem:[#allocation44_spill] sm:$0xff] %v12175_v50 }
 0x3e0   : > { %v12181_v63 = vpop.f32.mrf.mxu1 }
 0x3e1   : > { %13216 = vst [vmem:[#allocation46_spill] sm:$0xff] %v12181_v63  ;;  %v12199_v63 = vpop.f32.mrf.mxu0 }
 0x3e2   : > { %v8473_v61 = vpop.f32.mrf.mxu1  ;;  %13225 = vst [vmem:[#allocation62_spill] sm:$0xff] %v12199_v63 }
 0x3e4   : > { %v8474_v57 = vpop.f32.mrf.mxu1 }
 0x3e5   : > { %v12185_v38 = vadd.f32 %v8474_v57, %v8473_v61  ;;  %v12203_v57 = vpop.f32.mrf.mxu0 }
 0x3e6   : > { %v12187_v14 = vpop.f32.mrf.mxu1  ;;  %13227 = vst [vmem:[#allocation64_spill] sm:$0xff] %v12203_v57 }
 0x3e7   : > { %13218 = vst [vmem:[#allocation49_spill] sm:$0xff] %v12185_v38  ;;  %13219 = vst [vmem:[#allocation51_spill] sm:$0xff] %v12187_v14 }
 0x3e8   : > { %v12191_v31 = vpop.f32.mrf.mxu1 }
 0x3e9   : > { %13221 = vst [vmem:[#allocation55_spill] sm:$0xff] %v12191_v31  ;;  %v12209_v31 = vpop.f32.mrf.mxu0 }
 0x3ea   : > { %v8479_v11 = vpop.f32.mrf.mxu1  ;;  %13230 = vst [vmem:[#allocation67_spill] sm:$0xff] %v12209_v31 }
 0x3ec   : > { %v8480_v39 = vpop.f32.mrf.mxu1 }
 0x3ed   : > { %v12195_v50 = vadd.f32 %v8480_v39, %v8479_v11  ;;  %v12215_v11 = vpop.f32.mrf.mxu0 }
 0x3ee   : > { %v12197_v28 = vpop.f32.mrf.mxu1  ;;  %13233 = vst [vmem:[#allocation70_spill] sm:$0xff] %v12215_v11 }
 0x3ef   : > { %13223 = vst [vmem:[#allocation59_spill] sm:$0xff] %v12195_v50  ;;  %13224 = vst [vmem:[#allocation61_spill] sm:$0xff] %v12197_v28 }
 0x3f0   : > { %v12201_v44 = vpop.f32.mrf.mxu1 }
 0x3f1   : > { %13226 = vst [vmem:[#allocation63_spill] sm:$0xff] %v12201_v44  ;;  %v12221_v44 = vpop.f32.mrf.mxu0 }
 0x3f2   : > { %v8485_v61 = vpop.f32.mrf.mxu1  ;;  %13236 = vst [vmem:[#allocation73_spill] sm:$0xff] %v12221_v44 }
 0x3f4   : > { %v8486_v14 = vpop.f32.mrf.mxu1 }
 0x3f5   : > { %v12205_v38 = vadd.f32 %v8486_v14, %v8485_v61  ;;  %v12225_v61 = vpop.f32.mrf.mxu0 }
 0x3f6   : > { %v12207_v53 = vpop.f32.mrf.mxu1  ;;  %13238 = vst [vmem:[#allocation75_spill] sm:$0xff] %v12225_v61 }
 0x3f7   : > { %13228 = vst [vmem:[#allocation65_spill] sm:$0xff] %v12205_v38  ;;  %13229 = vst [vmem:[#allocation66_spill] sm:$0xff] %v12207_v53  ;;  %v12230_v11 = vpop.f32.mrf.mxu0 }
 0x3f8   : > { %v12211_v37 = vpop.f32.mrf.mxu1 }
 0x3f9   : > { %13231 = vst [vmem:[#allocation68_spill] sm:$0xff] %v12211_v37  ;;  %v12238_v63 = vpop.f32.mrf.mxu0 }
 0x3fa   : > { %v12213_v39 = vpop.f32.mrf.mxu1 }
 0x3fb   : > { %13232 = vst [vmem:[#allocation69_spill] sm:$0xff] %v12213_v39 }
 0x3fc   : > { %v12217_v50 = vpop.f32.mrf.mxu1 }
 0x3fd   : > { %13234 = vst [vmem:[#allocation71_spill] sm:$0xff] %v12217_v50 }
 0x3fe   : > { %v12219_v28 = vpop.f32.mrf.mxu1 }
 0x3ff   : > { %13235 = vst [vmem:[#allocation72_spill] sm:$0xff] %v12219_v28 }
 0x400   : > { %v12223_v57 = vpop.f32.mrf.mxu1 }
 0x401   : > { %13237 = vst [vmem:[#allocation74_spill] sm:$0xff] %v12223_v57  ;;  %v3266_v57 = vadd.f32 %v11953_v59, %v11805_v1 }
 0x402   : > { %v9052_v14 = vpop.f32.mrf.mxu1 }
 0x403   : > { %v4033_v53 = vadd.f32 %v9052_v14, %v12115_v32 }
 0x404   : > { %v4024_v38 = vpop.f32.mrf.mxu1 }
 0x405   : > { %v4137_v37 = vmax.f32 %v11929_v43, %v4033_v53  ;;  %v4025_v39 = vadd.f32 %v4024_v38, %v12106_v0  ;;  %v3775_v38 = vadd.f32 %v12146_v20, %v12102_v5 }
 0x406   : > { %v9053_v31 = vpop.f32.mrf.mxu1 }
 0x407   : > { %v4135_v50 = vmax.f32 %v11935_v6, %v4025_v39  ;;  %v4036_v28 = vadd.f32 %v9053_v31, %v12120_v49  ;;  %v8448_v6 = vadd.f32 %v12150_v8, %v12148_v3  ;;  %v8442_v3 = vadd.f32 %v12144_v46, %v12142_v16 }
 0x408   : > { %v4027_v44 = vpop.f32.mrf.mxu1  ;;  %v8548_v16 = vadd.f32 %v12043_v22, %v12039_v2  ;;  %v3791_v2 = vadd.f32 %v12158_v12, %v12102_v5 }
 0x409   : > { %v4138_v61 = vmax.f32 %v11942_v4, %v4036_v28  ;;  %v4028_v32 = vadd.f32 %v4027_v44, %v12111_v45  ;;  %v3767_v45 = vadd.f32 %v12138_v60, %v12102_v5  ;;  %v12255_v28 = vpop.f32.mrf.mxu0  ;;  %v3282_v60 = vadd.f32 %v11983_v24, %v11830_v35 }
 0x40a   : > { %v9056_v14 = vpop.f32.mrf.mxu1  ;;  %v8542_v35 = vadd.f32 %v12031_v42, %v12029_v33 }
 0x40b   : > { %v12240_v43 = vpack.c.bf16 %v4138_v61, %v4137_v37  ;;  %v4136_v0 = vmax.f32 %v3266_v57, %v4028_v32  ;;  %v4049_v53 = vadd.f32 %v9056_v14, %v12133_v36  ;;  %v8545_v36 = vadd.f32 %v12037_v17, %v12034_v13 }
 0x40c   : > { %v4040_v49 = vpop.f32.mrf.mxu1  ;;  %v8557_v32 = vadd.f32 %v12067_v51, %v12065_v25  ;;  %v3783_v14 = vadd.f32 %v12152_v54, %v12102_v5  ;;  %v3298_v25 = vadd.f32 %v12010_v48, %v11852_v56 }
 0x40d   : > { %v12247_v1 = vpack.c.bf16 %v4136_v0, %v4135_v50  ;;  %v4141_v4 = vmax.f32 %v11960_v55, %v4049_v53  ;;  %v4041_v59 = vadd.f32 %v4040_v49, %v12124_v21  ;;  %v8539_v55 = vadd.f32 %v12024_v10, %v12018_v62 }
 0x40e   : > { %v9057_v44 = vpop.f32.mrf.mxu1  ;;  %v3778_v21 = vadd.f32 %v8448_v6, %v12102_v5  ;;  %v3920_v31 = vadd.f32 %v8545_v36, %v3775_v38  ;;  %v3770_v62 = vadd.f32 %v8442_v3, %v12102_v5  ;;  %v3936_v49 = vadd.f32 %v8557_v32, %v3791_v2 }
 0x40f   : > { %v4139_v20 = vmax.f32 %v11966_v18, %v4041_v59  ;;  %v4052_v50 = vadd.f32 %v9057_v44, %v12140_v58  ;;  %v3912_v46 = vadd.f32 %v8539_v55, %v3767_v45  ;;  %v12270_v58 = vpop.f32.mrf.mxu0  ;;  %v13239_v45 = vld [vmem:[#allocation31_spill] sm:$0xff]  ;;  %v13240_v44 = vld [vmem:[#allocation56_spill] sm:$0xff] }
 0x410   : > { %v4043_v8 = vpop.f32.mrf.mxu1  ;;  %v3915_v0 = vadd.f32 %v8542_v35, %v3770_v62  ;;  %v8554_v56 = vadd.f32 %v13240_v44, %v13239_v45 }
 0x411   : > { %v4142_v13 = vmax.f32 %v11971_v23, %v4052_v50  ;;  %v4044_v17 = vadd.f32 %v4043_v8, %v12129_v40  ;;  %v8460_v23 = vadd.f32 %v12162_v41, %v12160_v9  ;;  %v3923_v40 = vadd.f32 %v8548_v16, %v3778_v21  ;;  %v12288_v42 = vpop.f32.mrf.mxu0  ;;  %v13243_v50 = vld [vmem:[#allocation28_spill] sm:$0xff]  ;;  %v13244_v8 = vld [vmem:[#allocation47_spill] sm:$0xff] }
 0x412   : > { %v9060_v18 = vpop.f32.mrf.mxu1  ;;  %v8454_v9 = vadd.f32 %v12156_v19, %v12154_v34  ;;  %v8560_v34 = vadd.f32 %v12073_v26, %v12069_v15  ;;  %v13242_v15 = vld [vmem:[#allocation44_spill] sm:$0xff]  ;;  %v13246_v16 = vld [vmem:[#allocation39_spill] sm:$0xff] }
 0x413   : > { %v12273_v10 = vpack.c.bf16 %v4142_v13, %v4141_v4  ;;  %v4140_v37 = vmax.f32 %v3282_v60, %v4044_v17  ;;  %v4065_v57 = vadd.f32 %v9060_v18, %v3920_v31  ;;  %v3794_v53 = vadd.f32 %v8460_v23, %v12102_v5  ;;  %v12301_v38 = vpop.f32.mrf.mxu0  ;;  %v13245_v60 = vld [vmem:[#allocation53_spill] sm:$0xff] }
 0x414   : > { %v4056_v24 = vpop.f32.mrf.mxu1  ;;  %v3786_v4 = vadd.f32 %v8454_v9, %v12102_v5  ;;  %v3807_v26 = vadd.f32 %v13242_v15, %v12102_v5  ;;  %v8569_v13 = vadd.f32 %v13245_v60, %v13244_v8  ;;  %v13247_v18 = vld [vmem:[#allocation41_spill] sm:$0xff]  ;;  %v13253_v9 = vld [vmem:[#allocation62_spill] sm:$0xff]  ;;  %v13264_v8 = vmov 0   ;;  %v13265_v60 = vld [vmem:[#allocation75_spill] sm:$0xff] }
 0x415   : > { %v12281_v22 = vpack.c.bf16 %v4140_v37, %v4139_v20  ;;  %v4145_v39 = vmax.f32 %v11989_v27, %v4065_v57  ;;  %v4057_v61 = vadd.f32 %v4056_v24, %v3912_v46  ;;  %v8551_v27 = vadd.f32 %v12055_v29, %v12049_v7  ;;  %v12317_v31 = vpop.f32.mrf.mxu0  ;;  %v13249_v24 = vld [vmem:[#allocation26_spill] sm:$0xff] }
 0x416   : > { %v9061_v33 = vpop.f32.mrf.mxu1  ;;  %v3939_v3 = vadd.f32 %v8560_v34, %v3794_v53  ;;  %v8466_v46 = vadd.f32 %v13247_v18, %v13246_v16  ;;  %v3931_v57 = vadd.f32 %v8554_v56, %v3786_v4  ;;  %v13256_v34 = vld [vmem:[#allocation61_spill] sm:$0xff]  ;;  %v13266_v16 = vld [vmem:[#allocation54_spill] sm:$0xff] }
 0x417   : > { %v4143_v41 = vmax.f32 %v11993_v30, %v4057_v61  ;;  %v4068_v12 = vadd.f32 %v9061_v33, %v3923_v40  ;;  %v3928_v30 = vadd.f32 %v8551_v27, %v3783_v14  ;;  %v13250_v40 = vld [vmem:[#allocation30_spill] sm:$0xff]  ;;  %v3952_v14 = vadd.f32 %v8569_v13, %v3807_v26  ;;  %v13252_v33 = vld [vmem:[#allocation57_spill] sm:$0xff]  ;;  %v13262_v26 = vld [vmem:[#allocation51_spill] sm:$0xff] }
 0x418   : > { %v4059_v6 = vpop.f32.mrf.mxu1  ;;  %v3314_v2 = vadd.f32 %v13250_v40, %v13249_v24  ;;  %v3802_v27 = vadd.f32 %v8466_v46, %v12102_v5  ;;  %v13259_v56 = vld [vmem:[#allocation29_spill] sm:$0xff]  ;;  %v8581_v13 = vadd.f32 %v12230_v11, %v13265_v60  ;;  %v13270_v40 = vld [vmem:[#allocation34_spill] sm:$0xff]  ;;  %v8584_v11 = vadd.f32 %v12255_v28, %v12238_v63  ;;  %v13276_v63 = vld [vmem:[#allocation72_spill] sm:$0xff] }
 0x419   : > { %v4146_v51 = vmax.f32 %v11998_v47, %v4068_v12  ;;  %v4060_v54 = vadd.f32 %v4059_v6, %v3915_v0  ;;  %v13241_v47 = vld [vmem:[#allocation46_spill] sm:$0xff]  ;;  %v8591_v0 = vpop.f32.mrf.mxu0  ;;  %v13269_v24 = vld [vmem:[#allocation25_spill] sm:$0xff] }
 0x41a   : > { %v9064_v19 = vpop.f32.mrf.mxu1  ;;  %v8472_v48 = vadd.f32 %v13241_v47, %v12177_v52  ;;  %v13248_v52 = vld [vmem:[#allocation27_spill] sm:$0xff]  ;;  %v13277_v28 = vld [vmem:[#allocation74_spill] sm:$0xff] }
 0x41b   : > { %v12304_v7 = vpack.c.bf16 %v4146_v51, %v4145_v39  ;;  %v4144_v29 = vmax.f32 %v3298_v25, %v4060_v54  ;;  %v4081_v59 = vadd.f32 %v9064_v19, %v3936_v49  ;;  %v13251_v39 = vld [vmem:[#allocation52_spill] sm:$0xff]  ;;  %v13254_v51 = vld [vmem:[#allocation43_spill] sm:$0xff]  ;;  %v13255_v54 = vld [vmem:[#allocation45_spill] sm:$0xff] }
 0x41c   : > { %v4072_v36 = vpop.f32.mrf.mxu1  ;;  %v3810_v35 = vadd.f32 %v8472_v48, %v12102_v5  ;;  %v8566_v49 = vadd.f32 %v13255_v54, %v13254_v51  ;;  %v13257_v19 = vld [vmem:[#allocation63_spill] sm:$0xff]  ;;  %v13260_v48 = vld [vmem:[#allocation42_spill] sm:$0xff] }
 0x41d   : > { %v12312_v20 = vpack.c.bf16 %v4144_v29, %v4143_v41  ;;  %v4149_v55 = vmax.f32 %v13243_v50, %v4081_v59  ;;  %v4073_v21 = vadd.f32 %v4072_v36, %v3928_v30  ;;  %v8572_v41 = vadd.f32 %v13253_v9, %v13252_v33  ;;  %v13258_v59 = vld [vmem:[#allocation59_spill] sm:$0xff]  ;;  %v13282_v60 = vld [vmem:[#allocation58_spill] sm:$0xff] }
 0x41e   : > { %v9065_v17 = vpop.f32.mrf.mxu1  ;;  %v8484_v30 = vadd.f32 %v13257_v19, %v13256_v34  ;;  %v3823_v45 = vadd.f32 %v13258_v59, %v12102_v5  ;;  %v13263_v50 = vld [vmem:[#allocation55_spill] sm:$0xff]  ;;  %v13275_v34 = vld [vmem:[#allocation73_spill] sm:$0xff] }
 0x41f   : > { %v4147_v62 = vmax.f32 %v13248_v52, %v4073_v21  ;;  %v4084_v37 = vadd.f32 %v9065_v17, %v3939_v3  ;;  %v3955_v29 = vadd.f32 %v8572_v41, %v3810_v35  ;;  %v13261_v3 = vld [vmem:[#allocation49_spill] sm:$0xff]  ;;  %v8592_v17 = vpop.f32.mrf.mxu0  ;;  %v3947_v52 = vadd.f32 %v8566_v49, %v3802_v27  ;;  %v13274_v49 = vld [vmem:[#allocation70_spill] sm:$0xff] }
 0x420   : > { %v4075_v23 = vpop.f32.mrf.mxu1  ;;  %v3815_v15 = vadd.f32 %v13261_v3, %v12102_v5  ;;  %v3826_v35 = vadd.f32 %v8484_v30, %v12102_v5  ;;  %v13272_v27 = vld [vmem:[#allocation69_spill] sm:$0xff]  ;;  %v8578_v19 = vadd.f32 %v13275_v34, %v13274_v49  ;;  %v13289_v49 = vld [vmem:[#allocation60_spill] sm:$0xff] }
 0x421   : > { %v4150_v61 = vmax.f32 %v13251_v39, %v4084_v37  ;;  %v4076_v32 = vadd.f32 %v4075_v23, %v3931_v57  ;;  %v13268_v37 = vld [vmem:[#allocation67_spill] sm:$0xff]  ;;  %v13271_v39 = vld [vmem:[#allocation32_spill] sm:$0xff] }
 0x422   : > { %v9068_v12 = vpop.f32.mrf.mxu1 }
 0x423   : > { %v4198_v53 = vpack.c.bf16 %v4150_v61, %v4149_v55  ;;  %v4148_v6 = vmax.f32 %v3314_v2, %v4076_v32  ;;  %v4097_v25 = vadd.f32 %v9068_v12, %v3952_v14  ;;  %v8478_v55 = vadd.f32 %v13263_v50, %v13262_v26  ;;  %v8594_v12 = vpop.f32.mrf.mxu0  ;;  %v13280_v26 = vld [vmem:[#allocation66_spill] sm:$0xff]  ;;  %v13281_v50 = vld [vmem:[#allocation68_spill] sm:$0xff] }
 0x424   : > { %v4088_v4 = vpop.f32.mrf.mxu1  ;;  %v3330_v2 = vadd.f32 %v13270_v40, %v13269_v24  ;;  %v3968_v14 = vadd.f32 %v8581_v13, %v3823_v45  ;;  %v13278_v45 = vld [vmem:[#allocation33_spill] sm:$0xff] }
 0x425   : > { %v4197_v44 = vpack.c.bf16 %v4148_v6, %v4147_v62  ;;  %v4153_v47 = vmax.f32 %v13259_v56, %v4097_v25  ;;  %v4089_v36 = vadd.f32 %v4088_v4, %v13260_v48  ;;  %4374 = vmatpush1.bf16.msra.mxu0 %v4198_v53  ;;  %v13267_v62 = vld [vmem:[#allocation64_spill] sm:$0xff]  ;;  %v3818_v33 = vadd.f32 %v8478_v55, %v12102_v5  ;;  %v13273_v53 = vld [vmem:[#allocation71_spill] sm:$0xff] }
 0x426   : > { %v9069_v21 = vpop.f32.mrf.mxu1  ;;  %4375 = vmatprep.subr.bf16.mxu0 %v13264_v8  ;;  %v8575_v57 = vadd.f32 %v13268_v37, %v13267_v62  ;;  %v8493_v6 = vadd.f32 %v13273_v53, %v13272_v27  ;;  %v3971_v4 = vadd.f32 %v8584_v11, %v3826_v35  ;;  %v8490_v55 = vadd.f32 %v13281_v50, %v13280_v26  ;;  %v13285_v35 = vld [vmem:[#allocation36_spill] sm:$0xff] }
 0x427   : > { %v4151_v18 = vmax.f32 %v13266_v16, %v4089_v36  ;;  %v4100_v46 = vadd.f32 %v9069_v21, %v3955_v29  ;;  %v8496_v29 = vadd.f32 %v13277_v28, %v13276_v63  ;;  %v3963_v3 = vadd.f32 %v8578_v19, %v3818_v33  ;;  %v9877_v63 = vld [vmem:[#allocation5 + $0x24] ss:$8 sps:$4 sm:$0xff]   ;;  %v9879_v28 = vld [vmem:[#allocation5 + $0x20] ss:$8 sps:$4 sm:$0xff]   ;;  %v9898_v26 = vld [vmem:[#allocation5 + $0x94] ss:$8 sps:$4 sm:$0xff]  }
 0x428   : > { %v4091_v23 = vpop.f32.mrf.mxu1  ;;  %v3960_v41 = vadd.f32 %v8575_v57, %v3815_v15  ;;  %v8595_v15 = vpop.f32.mrf.mxu0  ;;  %v3839_v21 = vadd.f32 %v8493_v6, %v12102_v5  ;;  %v8593_v37 = vadd.f32 %v8592_v17, %v8591_v0  ;;  %v13287_v6 = vld [vmem:[#allocation50_spill] sm:$0xff]  ;;  %v9900_v50 = vld [vmem:[#allocation5 + $0x90] ss:$8 sps:$4 sm:$0xff]  }
 0x429   : > { %v4154_v61 = vmax.f32 %v13271_v39, %v4100_v46  ;;  %v4092_v32 = vadd.f32 %v4091_v23, %v3947_v52  ;;  %4376 = vmatpush1.bf16.msra.mxu0 %v4197_v44  ;;  %v13284_v46 = vld [vmem:[#allocation35_spill] sm:$0xff]  ;;  %v3842_v57 = vadd.f32 %v8496_v29, %v12102_v5  ;;  %v8596_v40 = vadd.f32 %v8595_v15, %v8594_v12  ;;  %v9880_v29 = vld [vmem:[#allocation5 + $0x34] ss:$8 sps:$4 sm:$0xff]  }
 0x42a   : > { %v9072_v9 = vpop.f32.mrf.mxu1  ;;  %4377 = vmatprep.subr.bf16.mxu0 %v13264_v8  ;;  %v3984_v11 = vadd.f32 %v8593_v37, %v3839_v21  ;;  %v9897_v15 = vld [vmem:[#allocation5 + $0x80] ss:$8 sps:$4 sm:$0xff]  }
 0x42b   : > { %v12357_v25 = vpack.c.bf16 %v4154_v61, %v4153_v47  ;;  %v4152_v51 = vmax.f32 %v3330_v2, %v4092_v32  ;;  %v4113_v54 = vadd.f32 %v9072_v9, %v3968_v14  ;;  %v13279_v47 = vld [vmem:[#allocation65_spill] sm:$0xff]  ;;  %v3834_v61 = vadd.f32 %v8490_v55, %v12102_v5  ;;  %v9901_v55 = vld [vmem:[#allocation5 + $0xa4] ss:$8 sps:$4 sm:$0xff]   ;;  %v9903_v21 = vld [vmem:[#allocation5 + $0xa0] ss:$8 sps:$4 sm:$0xff]  }
 0x42c   : > { %v4104_v30 = vpop.f32.mrf.mxu1  ;;  %v3831_v48 = vadd.f32 %v13279_v47, %v12102_v5  ;;  %v9891_v47 = vld [vmem:[#allocation5 + $0x60] ss:$8 sps:$4 sm:$0xff]  }
 0x42d   : > { %v12363_v59 = vpack.c.bf16 %v4152_v51, %v4151_v18  ;;  %v4157_v44 = vmax.f32 %v13278_v45, %v4113_v54  ;;  %v4105_v56 = vadd.f32 %v4104_v30, %v3960_v41  ;;  %4378 = vmatpush1.bf16.msra.mxu0 %v12304_v7  ;;  %v13283_v18 = vld [vmem:[#allocation48_spill] sm:$0xff]  ;;  %v8587_v7 = vadd.f32 %v12288_v42, %v12270_v58  ;;  %v13286_v41 = vld [vmem:[#allocation38_spill] sm:$0xff] }
 0x42e   : > { %v9073_v36 = vpop.f32.mrf.mxu1  ;;  %4379 = vmatprep.subr.bf16.mxu0 %v13264_v8  ;;  %v3346_v52 = vadd.f32 %v13284_v46, %v13283_v18  ;;  %v8590_v58 = vadd.f32 %v12317_v31, %v12301_v38  ;;  %v13288_v51 = vld [vmem:[#allocation40_spill] sm:$0xff]  ;;  %v13290_v31 = vld [vmem:[#allocation37_spill] sm:$0xff]  ;;  %v9883_v45 = vld [vmem:[#allocation5 + $0x44] ss:$8 sps:$4 sm:$0xff]  }
 0x42f   : > { %v4155_v13 = vmax.f32 %v13282_v60, %v4105_v56  ;;  %v4116_v16 = vadd.f32 %v9073_v36, %v3971_v4  ;;  %v3976_v39 = vadd.f32 %v8587_v7, %v3831_v48  ;;  %v3362_v54 = vadd.f32 %v13288_v51, %v13287_v6  ;;  %v9889_v56 = vld [vmem:[#allocation5 + $0x64] ss:$8 sps:$4 sm:$0xff]   ;;  %v9892_v48 = vld [vmem:[#allocation5 + $0x74] ss:$8 sps:$4 sm:$0xff]   ;;  %v9894_v36 = vld [vmem:[#allocation5 + $0x70] ss:$8 sps:$4 sm:$0xff]  }
 0x430   : > { %v4107_v62 = vpop.f32.mrf.mxu1  ;;  %v3979_v5 = vadd.f32 %v8590_v58, %v3834_v61  ;;  %v9904_v60 = vld [vmem:[#allocation5 + $0xb4] ss:$8 sps:$4 sm:$0xff]   ;;  %v9909_v18 = vld [vmem:[#allocation5 + $0xc0] ss:$8 sps:$4 sm:$0xff]   ;;  %v10338_v7 = vmov 0.0  }
 0x431   : > { %v4158_v23 = vmax.f32 %v13285_v35, %v4116_v16  ;;  %v4108_v24 = vadd.f32 %v4107_v62, %v3963_v3  ;;  %4380 = vmatpush1.bf16.msra.mxu0 %v12312_v20  ;;  %v3987_v20 = vadd.f32 %v8596_v40, %v3842_v57  ;;  %v9895_v3 = vld [vmem:[#allocation5 + $0x84] ss:$8 sps:$4 sm:$0xff]   ;;  %v9910_v46 = vld [vmem:[#allocation5 + $0xd4] ss:$8 sps:$4 sm:$0xff]   ;;  %9078 = vmatprep.subr.bf16.mxu1 %v10338_v7 }
 0x432   : > { %v9076_v2 = vpop.f32.mrf.mxu1  ;;  %4381 = vmatprep.subr.bf16.mxu0 %v13264_v8  ;;  %v9907_v16 = vld [vmem:[#allocation5 + $0xc4] ss:$8 sps:$4 sm:$0xff]   ;;  %9092 = vmatprep.mubr.msk.bf16.mxu1 %vm10339_vm1, %v10338_v7 }
 0x433   : > { %v4202_v32 = vpack.c.bf16 %v4158_v23, %v4157_v44  ;;  %v4156_v14 = vmax.f32 %v3346_v52, %v4108_v24  ;;  %v4129_v17 = vadd.f32 %v9076_v2, %v3984_v11  ;;  %v9888_v44 = vld [vmem:[#allocation5 + $0x50] ss:$8 sps:$4 sm:$0xff]  }
 0x434   : > { %v4120_v42 = vpop.f32.mrf.mxu1  ;;  %v9912_v52 = vld [vmem:[#allocation5 + $0xd0] ss:$8 sps:$4 sm:$0xff]  }
 0x435   : > { %v4201_v0 = vpack.c.bf16 %v4156_v14, %v4155_v13  ;;  %v4121_v33 = vadd.f32 %v4120_v42, %v3976_v39  ;;  %4382 = vmatpush1.bf16.msra.mxu0 %v12273_v10  ;;  %v4161_v38 = vmax.f32 %v13289_v49, %v4129_v17  ;;  %v9906_v13 = vld [vmem:[#allocation5 + $0xb0] ss:$8 sps:$4 sm:$0xff]  }
 0x436   : > { %v9077_v9 = vpop.f32.mrf.mxu1  ;;  %4383 = vmatprep.subr.bf16.mxu0 %v13264_v8 }
 0x437   : > { %v4159_v12 = vmax.f32 %v13286_v41, %v4121_v33  ;;  %v4132_v27 = vadd.f32 %v9077_v9, %v3987_v20 }
 0x438   : > { %v4123_v53 = vpop.f32.mrf.mxu1 }
 0x439   : > { %v4162_v34 = vmax.f32 %v13290_v31, %v4132_v27  ;;  %v4124_v19 = vadd.f32 %v4123_v53, %v3979_v5  ;;  %4384 = vmatpush1.bf16.msra.mxu0 %v12281_v22  ;;  %v9876_v22 = vld [vmem:[#allocation5 + $0x10] ss:$8 sps:$4 sm:$0xff]  }
 0x43a   : > { %4385 = vmatprep.subr.bf16.mxu0 %v13264_v8 }
 0x43b   : > { %v4204_v10 = vpack.c.bf16 %v4162_v34, %v4161_v38  ;;  %v4160_v30 = vmax.f32 %v3362_v54, %v4124_v19 }
 0x43d   : > { %v4203_v4 = vpack.c.bf16 %v4160_v30, %v4159_v12  ;;  %4386 = vmatpush1.bf16.msra.mxu0 %v12240_v43  ;;  %v9871_v43 = vld [vmem:[#allocation5] ss:$8 sps:$4 sm:$0xff]  }
 0x43e   : > { %4387 = vmatprep.subr.bf16.mxu0 %v13264_v8 }
 0x441   : > { %4388 = vmatpush1.bf16.msra.mxu0 %v12247_v1  ;;  %v9874_v1 = vld [vmem:[#allocation5 + $0x14] ss:$8 sps:$4 sm:$0xff]  }
 0x442   : > { %4393 = vmatprep.subr.bf16.mxu0 %v13264_v8 }
 0x445   : > { %4394 = vmatpush2.bf16.msra.mxu0 %v4204_v10 }
 0x446   : > { %4395 = vmatprep.subr.bf16.mxu0 %v13264_v8 }
 0x449   : > { %4396 = vmatpush2.bf16.msra.mxu0 %v4203_v4 }
 0x44a   : > { %4397 = vmatprep.subr.bf16.mxu0 %v13264_v8 }
 0x44d   : > { %4398 = vmatpush2.bf16.msra.mxu0 %v4202_v32 }
 0x44e   : > { %4399 = vmatprep.subr.bf16.mxu0 %v13264_v8 }
 0x451   : > { %4400 = vmatpush2.bf16.msra.mxu0 %v4201_v0 }
 0x452   : > { %4401 = vmatprep.subr.bf16.mxu0 %v13264_v8 }
 0x455   : > { %4402 = vmatpush2.bf16.msra.mxu0 %v12357_v25  ;;  %v9882_v25 = vld [vmem:[#allocation5 + $0x30] ss:$8 sps:$4 sm:$0xff]  }
 0x456   : > { %4403 = vmatprep.subr.bf16.mxu0 %v13264_v8  ;;  %v9885_v8 = vld [vmem:[#allocation5 + $0x40] ss:$8 sps:$4 sm:$0xff]  }
 0x459   : > { %4404 = vmatpush2.bf16.msra.mxu0 %v12363_v59  ;;  %v9886_v59 = vld [vmem:[#allocation5 + $0x54] ss:$8 sps:$4 sm:$0xff]  }
 0x45a   : > { %9180 = vmatprep.subr.bf16.mxu0 %v10338_v7 }
 0x45c   : > { %4406 = vmatmul.mubr.bf16.vlgmr.msra.gmra.mxu0 %v9871_v43 }
 0x45d   : > { %7948 = vmatprep.mubr.msk.bf16.mxu0 %vm985_vm0, %v9874_v1 }
 0x464   : > { %4414 = vmatmul.mubr.bf16.gmra.mxu0 %v9876_v22 }
 0x465   : > { %7949 = vmatprep.mubr.msk.bf16.mxu0 %vm985_vm0, %v9877_v63 }
 0x46c   : > { %4422 = vmatmul.mubr.bf16.gmra.mxu0 %v9879_v28 }
 0x46d   : > { %7950 = vmatprep.mubr.msk.bf16.mxu0 %vm985_vm0, %v9880_v29 }
 0x474   : > { %4430 = vmatmul.mubr.bf16.gmra.mxu0 %v9882_v25 }
 0x475   : > { %7951 = vmatprep.mubr.msk.bf16.mxu0 %vm985_vm0, %v9883_v45 }
 0x47c   : > { %4438 = vmatmul.mubr.bf16.gmra.mxu0 %v9885_v8 }
 0x47d   : > { %7952 = vmatprep.mubr.msk.bf16.mxu0 %vm985_vm0, %v9886_v59 }
 0x484   : > { %4446 = vmatmul.mubr.bf16.gmra.mxu0 %v9888_v44 }
 0x485   : > { %7953 = vmatprep.mubr.msk.bf16.mxu0 %vm985_vm0, %v9889_v56 }
 0x48c   : > { %4454 = vmatmul.mubr.bf16.gmra.mxu0 %v9891_v47 }
 0x48d   : > { %7954 = vmatprep.mubr.msk.bf16.mxu0 %vm985_vm0, %v9892_v48 }
 0x494   : > { %4462 = vmatmul.mubr.bf16.gmra.mxu0 %v9894_v36 }
 0x495   : > { %7955 = vmatprep.mubr.msk.bf16.mxu0 %vm985_vm0, %v9895_v3 }
 0x49c   : > { %4470 = vmatmul.mubr.bf16.gmra.mxu0 %v9897_v15 }
 0x49d   : > { %7956 = vmatprep.mubr.msk.bf16.mxu0 %vm985_vm0, %v9898_v26 }
 0x4a4   : > { %4478 = vmatmul.mubr.bf16.gmra.mxu0 %v9900_v50 }
 0x4a5   : > { %7957 = vmatprep.mubr.msk.bf16.mxu0 %vm985_vm0, %v9901_v55 }
 0x4ac   : > { %4486 = vmatmul.mubr.bf16.gmra.mxu0 %v9903_v21 }
 0x4ad   : > { %7958 = vmatprep.mubr.msk.bf16.mxu0 %vm985_vm0, %v9904_v60 }
 0x4b4   : > { %4494 = vmatmul.mubr.bf16.gmra.mxu0 %v9906_v13 }
 0x4b5   : > { %7959 = vmatprep.mubr.msk.bf16.mxu0 %vm985_vm0, %v9907_v16 }
 0x4bc   : > { %4502 = vmatmul.mubr.bf16.gmra.mxu0 %v9909_v18 }
 0x4bd   : > { %7960 = vmatprep.mubr.msk.bf16.mxu0 %vm985_vm0, %v9910_v46 }
 0x4c4   : > { %4510 = vmatmul.mubr.bf16.gmra.mxu0 %v9912_v52 }
 0x4c5   : > { %9194 = vmatprep.mubr.msk.bf16.mxu0 %vm10339_vm1, %v10338_v7 }
 0x51c   : > { %v4407_v62 = vpop.f32.mrf.mxu0 }
 0x51e   : > { %v4409_v37 = vpop.f32.mrf.mxu0 }
 0x520   : > { %v4410_v57 = vpop.f32.mrf.mxu0 }
 0x522   : > { %v4412_v35 = vpop.f32.mrf.mxu0 }
 0x524   : > { %v4415_v23 = vpop.f32.mrf.mxu0 }
 0x526   : > { %v4417_v24 = vpop.f32.mrf.mxu0 }
 0x528   : > { %v4418_v40 = vpop.f32.mrf.mxu0 }
 0x52a   : > { %v4420_v2 = vpop.f32.mrf.mxu0 }
 0x52c   : > { %v4423_v39 = vpop.f32.mrf.mxu0 }
 0x52e   : > { %v4425_v61 = vpop.f32.mrf.mxu0 }
 0x530   : > { %v4426_v32 = vpop.f32.mrf.mxu0 }
 0x532   : > { %v4428_v14 = vpop.f32.mrf.mxu0 }
 0x534   : > { %v4431_v11 = vpop.f32.mrf.mxu0 }
 0x536   : > { %v4433_v58 = vpop.f32.mrf.mxu0 }
 0x538   : > { %v4434_v42 = vpop.f32.mrf.mxu0 }
 0x53a   : > { %v4436_v0 = vpop.f32.mrf.mxu0 }
 0x53c   : > { %v4439_v17 = vpop.f32.mrf.mxu0 }
 0x53e   : > { %v4441_v33 = vpop.f32.mrf.mxu0 }
 0x540   : > { %v4442_v20 = vpop.f32.mrf.mxu0 }
 0x542   : > { %v4444_v9 = vpop.f32.mrf.mxu0 }
 0x544   : > { %v4447_v41 = vpop.f32.mrf.mxu0 }
 0x546   : > { %v4449_v12 = vpop.f32.mrf.mxu0 }
 0x548   : > { %v4450_v27 = vpop.f32.mrf.mxu0 }
 0x54a   : > { %v4452_v5 = vpop.f32.mrf.mxu0 }
 0x54c   : > { %v12424_v53 = vpop.f32.mrf.mxu0 }
 0x54e   : > { %v4457_v6 = vpop.f32.mrf.mxu0 }
 0x550   : > { %v12426_v51 = vpop.f32.mrf.mxu0 }
 0x552   : > { %v4460_v54 = vpop.f32.mrf.mxu0 }
 0x554   : > { %v4463_v49 = vpop.f32.mrf.mxu0 }
 0x555   : > { %v4518_v38 = vmax.f32 %v4407_v62, %v4463_v49 }
 0x556   : > { %v4465_v31 = vpop.f32.mrf.mxu0 }
 0x557   : > { %v4532_v30 = vmax.f32 %v4518_v38, 0.0 }
 0x558   : > { %v4466_v34 = vpop.f32.mrf.mxu0 }
 0x559   : > { %v4519_v19 = vmax.f32 %v4410_v57, %v4466_v34 }
 0x55a   : > { %v4468_v10 = vpop.f32.mrf.mxu0 }
 0x55b   : > { %v4533_v4 = vmax.f32 %v4519_v19, 0.0  ;;  %v9915_v19 = vld [vmem:[#allocation7 + $0x10] sm:$0xff]   ;;  %v9927_v10 = vld [vmem:[#allocation7 + $0x88] sm:$0xff]  }
 0x55c   : > { %v4471_v43 = vpop.f32.mrf.mxu0 }
 0x55d   : > { %v12428_v1 = vpack.c.bf16 %v4533_v4, %v4532_v30  ;;  %v4520_v22 = vmax.f32 %v4415_v23, %v4471_v43  ;;  %v9916_v30 = vld [vmem:[#allocation7 + $0x18] sm:$0xff]   ;;  %v9929_v4 = vld [vmem:[#allocation7 + $0x90] sm:$0xff]   ;;  %v9917_v43 = vld [vmem:[#allocation7 + $0x20] sm:$0xff]  }
 0x55e   : > { %v4473_v63 = vpop.f32.mrf.mxu0 }
 0x55f   : > { %v4534_v45 = vmax.f32 %v4520_v22, 0.0  ;;  %v9931_v22 = vld [vmem:[#allocation7 + $0x98] sm:$0xff]   ;;  %v9918_v63 = vld [vmem:[#allocation7 + $0x28] sm:$0xff]  }
 0x560   : > { %v4474_v28 = vpop.f32.mrf.mxu0 }
 0x561   : > { %v4521_v29 = vmax.f32 %v4418_v40, %v4474_v28  ;;  %v9919_v28 = vld [vmem:[#allocation7 + $0x30] sm:$0xff]  }
 0x562   : > { %v4476_v25 = vpop.f32.mrf.mxu0 }
 0x563   : > { %v4535_v8 = vmax.f32 %v4521_v29, 0.0  ;;  %v9920_v29 = vld [vmem:[#allocation7 + $0x38] sm:$0xff]   ;;  %v9921_v25 = vld [vmem:[#allocation7 + $0x40] sm:$0xff]  }
 0x564   : > { %v4479_v59 = vpop.f32.mrf.mxu0 }
 0x565   : > { %v12430_v44 = vpack.c.bf16 %v4535_v8, %v4534_v45  ;;  %v4522_v47 = vmax.f32 %v4423_v39, %v4479_v59  ;;  %v9922_v45 = vld [vmem:[#allocation7 + $0x48] sm:$0xff]   ;;  %v9924_v8 = vld [vmem:[#allocation7 + $0x50] sm:$0xff]   ;;  %v9938_v59 = vld [vmem:[#allocation8 + $0x78] sm:$0xff]  }
 0x566   : > { %v4481_v56 = vpop.f32.mrf.mxu0 }
 0x567   : > { %v4536_v15 = vmax.f32 %v4522_v47, 0.0  ;;  %v9939_v56 = vld [vmem:[#allocation8 + $0x38] sm:$0xff]   ;;  %v9940_v47 = vld [vmem:[#allocation8 + $0x70] sm:$0xff]  }
 0x568   : > { %v4482_v48 = vpop.f32.mrf.mxu0 }
 0x569   : > { %v4523_v36 = vmax.f32 %v4426_v32, %v4482_v48  ;;  %v9926_v48 = vld [vmem:[#allocation7 + $0x58] sm:$0xff]  }
 0x56a   : > { %v4484_v3 = vpop.f32.mrf.mxu0 }
 0x56b   : > { %v4537_v26 = vmax.f32 %v4523_v36, 0.0  ;;  %v9941_v36 = vld [vmem:[#allocation8 + $0x30] sm:$0xff]   ;;  %v9942_v3 = vld [vmem:[#allocation8 + $0x68] sm:$0xff]  }
 0x56c   : > { %v4487_v50 = vpop.f32.mrf.mxu0 }
 0x56d   : > { %v12432_v55 = vpack.c.bf16 %v4537_v26, %v4536_v15  ;;  %v4524_v60 = vmax.f32 %v4431_v11, %v4487_v50  ;;  %v9943_v15 = vld [vmem:[#allocation8 + $0x28] sm:$0xff]   ;;  %v9944_v26 = vld [vmem:[#allocation8 + $0x60] sm:$0xff]   ;;  %v9928_v50 = vld [vmem:[#allocation7 + $0x60] sm:$0xff]  }
 0x56e   : > { %v4489_v21 = vpop.f32.mrf.mxu0 }
 0x56f   : > { %v4538_v46 = vmax.f32 %v4524_v60, 0.0  ;;  %v9945_v21 = vld [vmem:[#allocation8 + $0x20] sm:$0xff]   ;;  %v9946_v60 = vld [vmem:[#allocation8 + $0x58] sm:$0xff]  }
 0x570   : > { %v4490_v13 = vpop.f32.mrf.mxu0 }
 0x571   : > { %v4525_v16 = vmax.f32 %v4434_v42, %v4490_v13  ;;  %v9947_v13 = vld [vmem:[#allocation8 + $0x18] sm:$0xff]  }
 0x572   : > { %v4492_v18 = vpop.f32.mrf.mxu0 }
 0x573   : > { %v4539_v52 = vmax.f32 %v4525_v16, 0.0  ;;  %v9948_v16 = vld [vmem:[#allocation8 + $0x50] sm:$0xff]   ;;  %v9930_v18 = vld [vmem:[#allocation7 + $0x68] sm:$0xff]  }
 0x574   : > { %v4495_v62 = vpop.f32.mrf.mxu0 }
 0x575   : > { %v12434_v37 = vpack.c.bf16 %v4539_v52, %v4538_v46  ;;  %v4526_v35 = vmax.f32 %v4439_v17, %v4495_v62  ;;  %v9949_v46 = vld [vmem:[#allocation8 + $0x10] sm:$0xff]   ;;  %v9950_v52 = vld [vmem:[#allocation8 + $0x48] sm:$0xff]   ;;  %v9952_v62 = vld [vmem:[#allocation8 + $0x40] sm:$0xff]  }
 0x576   : > { %v4497_v57 = vpop.f32.mrf.mxu0 }
 0x577   : > { %v4540_v2 = vmax.f32 %v4526_v35, 0.0  ;;  %v9953_v57 = vld [vmem:[#allocation8] sm:$0xff]   ;;  %v9954_v35 = vld [vmem:[#allocation8 + $0xf8] sm:$0xff]  }
 0x578   : > { %v4498_v23 = vpop.f32.mrf.mxu0 }
 0x579   : > { %v4527_v24 = vmax.f32 %v4442_v20, %v4498_v23  ;;  %v9956_v23 = vld [vmem:[#allocation8 + $0xf0] sm:$0xff]  }
 0x57a   : > { %v4500_v40 = vpop.f32.mrf.mxu0 }
 0x57b   : > { %v4541_v39 = vmax.f32 %v4527_v24, 0.0  ;;  %v9957_v24 = vld [vmem:[#allocation8 + $0xb0] sm:$0xff]   ;;  %v9934_v40 = vld [vmem:[#allocation7 + $0xa8] sm:$0xff]  }
 0x57c   : > { %v4503_v61 = vpop.f32.mrf.mxu0 }
 0x57d   : > { %v12436_v32 = vpack.c.bf16 %v4541_v39, %v4540_v2  ;;  %v4528_v11 = vmax.f32 %v4447_v41, %v4503_v61  ;;  %v9913_v41 = vld [vmem:[#allocation7] sm:$0xff]   ;;  %v9958_v2 = vld [vmem:[#allocation8 + $0xe8] sm:$0xff]   ;;  %v9960_v61 = vld [vmem:[#allocation8 + $0xe0] sm:$0xff]  }
 0x57e   : > { %v4505_v14 = vpop.f32.mrf.mxu0  ;;  %v9959_v39 = vld [vmem:[#allocation8 + $0xa8] sm:$0xff]  }
 0x57f   : > { %v4542_v33 = vmax.f32 %v4528_v11, 0.0  ;;  %v9935_v14 = vld [vmem:[#allocation7 + $0xb0] sm:$0xff]   ;;  %v9962_v11 = vld [vmem:[#allocation8 + $0xd8] sm:$0xff]  }
 0x580   : > { %v4506_v58 = vpop.f32.mrf.mxu0 }
 0x581   : > { %v4529_v42 = vmax.f32 %v4450_v27, %v4506_v58  ;;  %v9923_v27 = vld [vmem:[#allocation7 + $0x78] sm:$0xff]   ;;  %v9963_v58 = vld [vmem:[#allocation8 + $0x98] sm:$0xff]  }
 0x582   : > { %v4508_v0 = vpop.f32.mrf.mxu0 }
 0x583   : > { %v4543_v9 = vmax.f32 %v4529_v42, 0.0  ;;  %v9964_v42 = vld [vmem:[#allocation8 + $0xd0] sm:$0xff]  }
 0x584   : > { %v4511_v12 = vpop.f32.mrf.mxu0  ;;  %v9965_v0 = vld [vmem:[#allocation8 + $0x90] sm:$0xff]  }
 0x585   : > { %v12438_v5 = vpack.c.bf16 %v4543_v9, %v4542_v33  ;;  %v4530_v17 = vmax.f32 %v12424_v53, %v4511_v12  ;;  %v9914_v53 = vld [vmem:[#allocation7 + $0x8] sm:$0xff]   ;;  %v9936_v33 = vld [vmem:[#allocation7 + $0xb8] sm:$0xff]   ;;  %v9966_v9 = vld [vmem:[#allocation8 + $0xc8] sm:$0xff]  }
 0x586   : > { %v4513_v6 = vpop.f32.mrf.mxu0  ;;  %v9967_v12 = vld [vmem:[#allocation8 + $0x88] sm:$0xff]  }
 0x587   : > { %v4544_v38 = vmax.f32 %v4530_v17, 0.0  ;;  %v9969_v6 = vld [vmem:[#allocation8 + $0x80] sm:$0xff]   ;;  %v9937_v17 = vld [vmem:[#allocation7 + $0xc0] sm:$0xff]  }
 0x588   : > { %v4514_v20 = vpop.f32.mrf.mxu0 }
 0x589   : > { %v4531_v54 = vmax.f32 %v12426_v51, %v4514_v20  ;;  %v9925_v51 = vld [vmem:[#allocation7 + $0x80] sm:$0xff]  }
 0x58a   : > { %v4516_v49 = vpop.f32.mrf.mxu0  ;;  %v9970_v20 = vld [vmem:[#allocation10 + $0x78] sm:$0xff]  }
 0x58b   : > { %v4545_v31 = vmax.f32 %v4531_v54, 0.0 }
 0x58d   : > { %v12442_v34 = vpack.c.bf16 %v4545_v31, %v4544_v38 }
 0x58f   : > { %9079 = vmatpush3.bf16.msra.mxu1 %v12442_v34  ;;  %9181 = vmatpush3.bf16.msra.mxu0 %v12442_v34 }
 0x590   : > { %9080 = vmatprep.subr.bf16.mxu1 %v10338_v7  ;;  %9182 = vmatprep.subr.bf16.mxu0 %v10338_v7 }
 0x593   : > { %9081 = vmatpush3.bf16.msra.mxu1 %v12438_v5  ;;  %9183 = vmatpush3.bf16.msra.mxu0 %v12438_v5 }
 0x594   : > { %9082 = vmatprep.subr.bf16.mxu1 %v10338_v7  ;;  %9184 = vmatprep.subr.bf16.mxu0 %v10338_v7 }
 0x597   : > { %9083 = vmatpush3.bf16.msra.mxu1 %v12436_v32  ;;  %9185 = vmatpush3.bf16.msra.mxu0 %v12436_v32 }
 0x598   : > { %9084 = vmatprep.subr.bf16.mxu1 %v10338_v7  ;;  %9186 = vmatprep.subr.bf16.mxu0 %v10338_v7 }
 0x59b   : > { %9085 = vmatpush3.bf16.msra.mxu1 %v12434_v37  ;;  %9187 = vmatpush3.bf16.msra.mxu0 %v12434_v37 }
 0x59c   : > { %9086 = vmatprep.subr.bf16.mxu1 %v10338_v7  ;;  %9188 = vmatprep.subr.bf16.mxu0 %v10338_v7 }
 0x59f   : > { %9087 = vmatpush3.bf16.msra.mxu1 %v12432_v55  ;;  %9189 = vmatpush3.bf16.msra.mxu0 %v12432_v55 }
 0x5a0   : > { %9088 = vmatprep.subr.bf16.mxu1 %v10338_v7  ;;  %9190 = vmatprep.subr.bf16.mxu0 %v10338_v7 }
 0x5a3   : > { %9089 = vmatpush3.bf16.msra.mxu1 %v12430_v44  ;;  %9191 = vmatpush3.bf16.msra.mxu0 %v12430_v44 }
 0x5a4   : > { %9090 = vmatprep.subr.bf16.mxu1 %v10338_v7  ;;  %9192 = vmatprep.subr.bf16.mxu0 %v10338_v7 }
 0x5a7   : > { %9091 = vmatpush3.bf16.msra.mxu1 %v12428_v1  ;;  %9193 = vmatpush3.bf16.msra.mxu0 %v12428_v1 }
 0x5a8   : > { %9112 = vmatprep.subr.bf16.mxu1 %v10338_v7  ;;  %8679 = vmatprep.subr.bf16.mxu0 %v9938_v59 }
 0x5aa   : > { %9093 = vmatmul.mubr.msk.bf16.vlgmr.msra.gmra.mxu1 %vm4588_vm2, %v9913_v41  ;;  %9195 = vmatmul.mubr.msk.bf16.vlgmr.msra.gmra.mxu0 %vm4588_vm2, %v9923_v27 }
 0x5ab   : > { %9113 = vmatpush3.bf16.msra.mxu1 %v12442_v34  ;;  %9096 = vmatprep.mubr.msk.bf16.mxu1 %vm10339_vm1, %v10338_v7 }
 0x5ac   : > { %9114 = vmatprep.subr.bf16.mxu1 %v10338_v7  ;;  %9198 = vmatprep.mubr.msk.bf16.mxu0 %vm10339_vm1, %v10338_v7 }
 0x5ad   : > { %8680 = vmatpush3.bf16.msra.mxu0 %v9939_v56 }
 0x5ae   : > { %8681 = vmatprep.subr.bf16.mxu0 %v9940_v47 }
 0x5af   : > { %9115 = vmatpush3.bf16.msra.mxu1 %v12438_v5 }
 0x5b0   : > { %9116 = vmatprep.subr.bf16.mxu1 %v10338_v7 }
 0x5b1   : > { %8682 = vmatpush3.bf16.msra.mxu0 %v9941_v36 }
 0x5b2   : > { %9097 = vmatmul.mubr.msk.bf16.gmra.mxu1 %vm4588_vm2, %v9914_v53  ;;  %9199 = vmatmul.mubr.msk.bf16.gmra.mxu0 %vm4588_vm2, %v9925_v51 }
 0x5b3   : > { %9117 = vmatpush3.bf16.msra.mxu1 %v12436_v32  ;;  %9100 = vmatprep.mubr.msk.bf16.mxu1 %vm10339_vm1, %v10338_v7 }
 0x5b4   : > { %9118 = vmatprep.subr.bf16.mxu1 %v10338_v7  ;;  %9202 = vmatprep.mubr.msk.bf16.mxu0 %vm10339_vm1, %v10338_v7 }
 0x5b5   : > { %8683 = vmatprep.subr.bf16.mxu0 %v9942_v3 }
 0x5b6   : > { %8684 = vmatpush3.bf16.msra.mxu0 %v9943_v15 }
 0x5b7   : > { %9119 = vmatpush3.bf16.msra.mxu1 %v12434_v37  ;;  %8685 = vmatprep.subr.bf16.mxu0 %v9944_v26 }
 0x5b8   : > { %9120 = vmatprep.subr.bf16.mxu1 %v10338_v7 }
 0x5ba   : > { %9101 = vmatmul.mubr.msk.bf16.gmra.mxu1 %vm4588_vm2, %v9915_v19  ;;  %9203 = vmatmul.mubr.msk.bf16.gmra.mxu0 %vm4588_vm2, %v9927_v10 }
 0x5bb   : > { %9121 = vmatpush3.bf16.msra.mxu1 %v12432_v55  ;;  %9104 = vmatprep.mubr.msk.bf16.mxu1 %vm10339_vm1, %v10338_v7 }
 0x5bc   : > { %9122 = vmatprep.subr.bf16.mxu1 %v10338_v7  ;;  %9206 = vmatprep.mubr.msk.bf16.mxu0 %vm10339_vm1, %v10338_v7 }
 0x5bd   : > { %8686 = vmatpush3.bf16.msra.mxu0 %v9945_v21 }
 0x5be   : > { %8687 = vmatprep.subr.bf16.mxu0 %v9946_v60 }
 0x5bf   : > { %9123 = vmatpush3.bf16.msra.mxu1 %v12430_v44 }
 0x5c0   : > { %9124 = vmatprep.subr.bf16.mxu1 %v10338_v7 }
 0x5c1   : > { %8688 = vmatpush3.bf16.msra.mxu0 %v9947_v13 }
 0x5c2   : > { %9105 = vmatmul.mubr.msk.bf16.gmra.mxu1 %vm4588_vm2, %v9916_v30  ;;  %9207 = vmatmul.mubr.msk.bf16.gmra.mxu0 %vm4588_vm2, %v9929_v4 }
 0x5c3   : > { %9125 = vmatpush3.bf16.msra.mxu1 %v12428_v1  ;;  %9108 = vmatprep.mubr.msk.bf16.mxu1 %vm10339_vm1, %v10338_v7 }
 0x5c4   : > { %9146 = vmatprep.subr.bf16.mxu1 %v10338_v7  ;;  %9210 = vmatprep.mubr.msk.bf16.mxu0 %vm10339_vm1, %v10338_v7 }
 0x5c5   : > { %8689 = vmatprep.subr.bf16.mxu0 %v9948_v16 }
 0x5c6   : > { %8690 = vmatpush3.bf16.msra.mxu0 %v9949_v46 }
 0x5c7   : > { %8691 = vmatprep.subr.bf16.mxu0 %v9950_v52 }
 0x5ca   : > { %9109 = vmatmul.mubr.msk.bf16.gmra.mxu1 %vm4588_vm2, %v9917_v43  ;;  %9211 = vmatmul.mubr.msk.bf16.gmra.mxu0 %vm4588_vm2, %v9931_v22 }
 0x5cb   : > { %9126 = vmatprep.mubr.msk.bf16.mxu1 %vm10339_vm1, %v10338_v7 }
 0x5d2   : > { %9127 = vmatmul.mubr.msk.bf16.vlgmr.msra.gmra.mxu1 %vm4588_vm2, %v9918_v63 }
 0x5d3   : > { %9147 = vmatpush3.bf16.msra.mxu1 %v12442_v34  ;;  %9130 = vmatprep.mubr.msk.bf16.mxu1 %vm10339_vm1, %v10338_v7 }
 0x5d4   : > { %9148 = vmatprep.subr.bf16.mxu1 %v10338_v7 }
 0x5d7   : > { %9149 = vmatpush3.bf16.msra.mxu1 %v12438_v5 }
 0x5d8   : > { %9150 = vmatprep.subr.bf16.mxu1 %v10338_v7 }
 0x5da   : > { %9131 = vmatmul.mubr.msk.bf16.gmra.mxu1 %vm4588_vm2, %v9919_v28 }
 0x5db   : > { %9151 = vmatpush3.bf16.msra.mxu1 %v12436_v32  ;;  %9134 = vmatprep.mubr.msk.bf16.mxu1 %vm10339_vm1, %v10338_v7 }
 0x5dc   : > { %9152 = vmatprep.subr.bf16.mxu1 %v10338_v7 }
 0x5df   : > { %9153 = vmatpush3.bf16.msra.mxu1 %v12434_v37 }
 0x5e0   : > { %9154 = vmatprep.subr.bf16.mxu1 %v10338_v7 }
 0x5e2   : > { %9135 = vmatmul.mubr.msk.bf16.gmra.mxu1 %vm4588_vm2, %v9920_v29 }
 0x5e3   : > { %9155 = vmatpush3.bf16.msra.mxu1 %v12432_v55  ;;  %9138 = vmatprep.mubr.msk.bf16.mxu1 %vm10339_vm1, %v10338_v7 }
 0x5e4   : > { %9156 = vmatprep.subr.bf16.mxu1 %v10338_v7 }
 0x5e7   : > { %9157 = vmatpush3.bf16.msra.mxu1 %v12430_v44 }
 0x5e8   : > { %9158 = vmatprep.subr.bf16.mxu1 %v10338_v7 }
 0x5ea   : > { %9139 = vmatmul.mubr.msk.bf16.gmra.mxu1 %vm4588_vm2, %v9921_v25 }
 0x5eb   : > { %9159 = vmatpush3.bf16.msra.mxu1 %v12428_v1  ;;  %9142 = vmatprep.mubr.msk.bf16.mxu1 %vm10339_vm1, %v10338_v7 }
 0x5ec   : > { %9214 = vmatprep.subr.bf16.mxu1 %v10338_v7 }
 0x5f2   : > { %9143 = vmatmul.mubr.msk.bf16.gmra.mxu1 %vm4588_vm2, %v9922_v45 }
 0x5f3   : > { %9160 = vmatprep.mubr.msk.bf16.mxu1 %vm10339_vm1, %v10338_v7 }
 0x5fa   : > { %9161 = vmatmul.mubr.msk.bf16.vlgmr.msra.gmra.mxu1 %vm4588_vm2, %v9924_v8 }
 0x5fb   : > { %9215 = vmatpush3.bf16.msra.mxu1 %v12442_v34  ;;  %9164 = vmatprep.mubr.msk.bf16.mxu1 %vm10339_vm1, %v10338_v7 }
 0x5fc   : > { %9216 = vmatprep.subr.bf16.mxu1 %v10338_v7 }
 0x5ff   : > { %9217 = vmatpush3.bf16.msra.mxu1 %v12438_v5  ;;  %v9968_v5 = vld [vmem:[#allocation8 + $0xc0] sm:$0xff]  }
 0x600   : > { %9218 = vmatprep.subr.bf16.mxu1 %v10338_v7 }
 0x602   : > { %9165 = vmatmul.mubr.msk.bf16.gmra.mxu1 %vm4588_vm2, %v9926_v48 }
 0x603   : > { %9219 = vmatpush3.bf16.msra.mxu1 %v12436_v32  ;;  %9168 = vmatprep.mubr.msk.bf16.mxu1 %vm10339_vm1, %v10338_v7  ;;  %v9961_v32 = vld [vmem:[#allocation8 + $0xa0] sm:$0xff]  }
 0x604   : > { %9220 = vmatprep.subr.bf16.mxu1 %v10338_v7 }
 0x607   : > { %9221 = vmatpush3.bf16.msra.mxu1 %v12434_v37  ;;  %v9932_v37 = vld [vmem:[#allocation7 + $0x70] sm:$0xff]  }
 0x608   : > { %9222 = vmatprep.subr.bf16.mxu1 %v10338_v7 }
 0x60a   : > { %9169 = vmatmul.mubr.msk.bf16.gmra.mxu1 %vm4588_vm2, %v9928_v50 }
 0x60b   : > { %9223 = vmatpush3.bf16.msra.mxu1 %v12432_v55  ;;  %9172 = vmatprep.mubr.msk.bf16.mxu1 %vm10339_vm1, %v10338_v7  ;;  %v9951_v55 = vld [vmem:[#allocation8 + $0x8] sm:$0xff]  }
 0x60c   : > { %9224 = vmatprep.subr.bf16.mxu1 %v10338_v7  ;;  %8692 = vmatpush3.bf16.msra.mxu0 %v9951_v55 }
 0x60d   : > { %8693 = vmatprep.subr.bf16.mxu0 %v9952_v62 }
 0x60f   : > { %9225 = vmatpush3.bf16.msra.mxu1 %v12430_v44  ;;  %v9933_v44 = vld [vmem:[#allocation7 + $0xa0] sm:$0xff]  }
 0x610   : > { %9226 = vmatprep.subr.bf16.mxu1 %v10338_v7  ;;  %8694 = vmatpush3.bf16.msra.mxu0 %v9953_v57 }
 0x611   : > { %9248 = vmatprep.subr.bf16.mxu0 %v10338_v7 }
 0x612   : > { %9173 = vmatmul.mubr.msk.bf16.gmra.mxu1 %vm4588_vm2, %v9930_v18 }
 0x613   : > { %9227 = vmatpush3.bf16.msra.mxu1 %v12428_v1  ;;  %9176 = vmatprep.mubr.msk.bf16.mxu1 %vm10339_vm1, %v10338_v7  ;;  %v9955_v1 = vld [vmem:[#allocation8 + $0xb8] sm:$0xff]  }
 0x614   : > { %8725 = vmatprep.subr.bf16.mxu1 %v9954_v35 }
 0x61a   : > { %9177 = vmatmul.mubr.msk.bf16.gmra.mxu1 %vm4588_vm2, %v9932_v37 }
 0x61b   : > { %9228 = vmatprep.mubr.msk.bf16.mxu1 %vm10339_vm1, %v10338_v7 }
 0x622   : > { %9229 = vmatmul.mubr.msk.bf16.vlgmr.msra.gmra.mxu1 %vm4588_vm2, %v9933_v44 }
 0x623   : > { %9232 = vmatprep.mubr.msk.bf16.mxu1 %vm10339_vm1, %v10338_v7  ;;  %8726 = vmatpush3.bf16.msra.mxu1 %v9955_v1 }
 0x624   : > { %8727 = vmatprep.subr.bf16.mxu1 %v9956_v23 }
 0x627   : > { %8728 = vmatpush3.bf16.msra.mxu1 %v9957_v24 }
 0x628   : > { %8729 = vmatprep.subr.bf16.mxu1 %v9958_v2 }
 0x62a   : > { %9233 = vmatmul.mubr.msk.bf16.gmra.mxu1 %vm4588_vm2, %v9934_v40 }
 0x62b   : > { %9236 = vmatprep.mubr.msk.bf16.mxu1 %vm10339_vm1, %v10338_v7  ;;  %8730 = vmatpush3.bf16.msra.mxu1 %v9959_v39 }
 0x62c   : > { %8731 = vmatprep.subr.bf16.mxu1 %v9960_v61  ;;  %v9971_v61 = vld [vmem:[#allocation8 + $0x138] sm:$0xff]  }
 0x62f   : > { %8732 = vmatpush3.bf16.msra.mxu1 %v9961_v32 }
 0x630   : > { %8733 = vmatprep.subr.bf16.mxu1 %v9962_v11 }
 0x632   : > { %9237 = vmatmul.mubr.msk.bf16.gmra.mxu1 %vm4588_vm2, %v9935_v14 }
 0x633   : > { %9240 = vmatprep.mubr.msk.bf16.mxu1 %vm10339_vm1, %v10338_v7  ;;  %8734 = vmatpush3.bf16.msra.mxu1 %v9963_v58  ;;  %v9974_v58 = vld [vmem:[#allocation8 + $0x130] sm:$0xff]  }
 0x634   : > { %8735 = vmatprep.subr.bf16.mxu1 %v9964_v42 }
 0x637   : > { %8736 = vmatpush3.bf16.msra.mxu1 %v9965_v0 }
 0x638   : > { %8737 = vmatprep.subr.bf16.mxu1 %v9966_v9  ;;  %v9977_v9 = vld [vmem:[#allocation8 + $0x128] sm:$0xff]  }
 0x63a   : > { %9241 = vmatmul.mubr.msk.bf16.gmra.mxu1 %vm4588_vm2, %v9936_v33 }
 0x63b   : > { %9244 = vmatprep.mubr.msk.bf16.mxu1 %vm10339_vm1, %v10338_v7  ;;  %8738 = vmatpush3.bf16.msra.mxu1 %v9967_v12 }
 0x63c   : > { %8739 = vmatprep.subr.bf16.mxu1 %v9968_v5 }
 0x63f   : > { %8740 = vmatpush3.bf16.msra.mxu1 %v9969_v6 }
 0x640   : > { %8784 = vmatprep.subr.bf16.mxu1 %v9970_v20 }
 0x642   : > { %9245 = vmatmul.mubr.msk.bf16.gmra.mxu1 %vm4588_vm2, %v9937_v17  ;;  %v9980_v17 = vld [vmem:[#allocation8 + $0x120] sm:$0xff]  }
 0x66a   : > { %v4638_v54 = vpop.f32.mrf.mxu1  ;;  %v5010_v49 = vpop.f32.mrf.mxu0 }
 0x66c   : > { %v9094_v38 = vpop.f32.mrf.mxu1  ;;  %v9196_v31 = vpop.f32.mrf.mxu0 }
 0x66d   : > { %v9983_v38 = vld [vmem:[#allocation8 + $0x118] sm:$0xff]  }
 0x66e   : > { %v4641_v34 = vpop.f32.mrf.mxu1  ;;  %v5013_v41 = vpop.f32.mrf.mxu0 }
 0x66f   : > { %v12584_v27 = vpack.c.bf16 %v5013_v41, %v5010_v49  ;;  %v12603_v32 = vpack.c.bf16 %v4641_v34, %v4638_v54 }
 0x670   : > { %v9095_v53 = vpop.f32.mrf.mxu1  ;;  %v9197_v51 = vpop.f32.mrf.mxu0 }
 0x671   : > { %5630 = vmatprep.mubr.bf16.mxu1 %v12584_v27  ;;  %v9986_v53 = vld [vmem:[#allocation8 + $0x110] sm:$0xff]  }
 0x672   : > { %v4646_v19 = vpop.f32.mrf.mxu1  ;;  %v5018_v10 = vpop.f32.mrf.mxu0 }
 0x674   : > { %v9098_v30 = vpop.f32.mrf.mxu1  ;;  %v9200_v4 = vpop.f32.mrf.mxu0 }
 0x675   : > { %v9989_v30 = vld [vmem:[#allocation8 + $0x108] sm:$0xff]  }
 0x676   : > { %v4649_v43 = vpop.f32.mrf.mxu1  ;;  %v5021_v22 = vpop.f32.mrf.mxu0 }
 0x677   : > { %v12587_v63 = vpack.c.bf16 %v5021_v22, %v5018_v10  ;;  %v12610_v12 = vpack.c.bf16 %v4649_v43, %v4646_v19 }
 0x678   : > { %v9099_v28 = vpop.f32.mrf.mxu1  ;;  %v9201_v29 = vpop.f32.mrf.mxu0 }
 0x679   : > { %v9992_v28 = vld [vmem:[#allocation8 + $0x100] sm:$0xff]  }
 0x67a   : > { %v4654_v25 = vpop.f32.mrf.mxu1  ;;  %v5026_v45 = vpop.f32.mrf.mxu0 }
 0x67c   : > { %v9102_v8 = vpop.f32.mrf.mxu1  ;;  %v9204_v59 = vpop.f32.mrf.mxu0 }
 0x67e   : > { %v4657_v56 = vpop.f32.mrf.mxu1  ;;  %v5029_v47 = vpop.f32.mrf.mxu0 }
 0x67f   : > { %v12589_v48 = vpack.c.bf16 %v5029_v47, %v5026_v45  ;;  %v12618_v31 = vpack.c.bf16 %v4657_v56, %v4654_v25  ;;  %v9994_v25 = vld [vmem:[#allocation10 + $0xf8] sm:$0xff]  }
 0x680   : > { %v9103_v36 = vpop.f32.mrf.mxu1  ;;  %v9205_v3 = vpop.f32.mrf.mxu0 }
 0x682   : > { %v12591_v15 = vpop.f32.mrf.mxu1  ;;  %v5034_v26 = vpop.f32.mrf.mxu0 }
 0x684   : > { %v9106_v50 = vpop.f32.mrf.mxu1  ;;  %v9208_v21 = vpop.f32.mrf.mxu0 }
 0x685   : > { %v9973_v50 = vld [vmem:[#allocation10 + $0x70] sm:$0xff]  }
 0x686   : > { %v4665_v60 = vpop.f32.mrf.mxu1  ;;  %v5037_v13 = vpop.f32.mrf.mxu0 }
 0x687   : > { %v12593_v16 = vpack.c.bf16 %v5037_v13, %v5034_v26  ;;  %v12627_v4 = vpack.c.bf16 %v4665_v60, %v12591_v15  ;;  %v9972_v15 = vld [vmem:[#allocation10 + $0x38] sm:$0xff]   ;;  %v9975_v13 = vld [vmem:[#allocation10 + $0x30] sm:$0xff]  }
 0x688   : > { %v9107_v18 = vpop.f32.mrf.mxu1  ;;  %v9209_v46 = vpop.f32.mrf.mxu0 }
 0x689   : > { %v9976_v18 = vld [vmem:[#allocation10 + $0x68] sm:$0xff]  }
 0x68a   : > { %v12595_v52 = vpop.f32.mrf.mxu1  ;;  %v5042_v55 = vpop.f32.mrf.mxu0 }
 0x68c   : > { %v9110_v62 = vpop.f32.mrf.mxu1  ;;  %v9212_v37 = vpop.f32.mrf.mxu0 }
 0x68d   : > { %v9979_v37 = vld [vmem:[#allocation10 + $0x60] sm:$0xff]  }
 0x68e   : > { %v12597_v57 = vpop.f32.mrf.mxu1  ;;  %v5045_v44 = vpop.f32.mrf.mxu0 }
 0x68f   : > { %v12599_v35 = vpack.c.bf16 %v5045_v44, %v5042_v55  ;;  %v12637_v59 = vpack.c.bf16 %v12597_v57, %v12595_v52  ;;  %v9978_v55 = vld [vmem:[#allocation10 + $0x28] sm:$0xff]  }
 0x690   : > { %v9111_v1 = vpop.f32.mrf.mxu1  ;;  %v9213_v23 = vpop.f32.mrf.mxu0 }
 0x691   : > { %v9981_v1 = vld [vmem:[#allocation10 + $0x20] sm:$0xff]   ;;  %v9982_v23 = vld [vmem:[#allocation10 + $0x58] sm:$0xff]  }
 0x692   : > { %v4762_v24 = vpop.f32.mrf.mxu1 }
 0x694   : > { %v9128_v40 = vpop.f32.mrf.mxu1 }
 0x696   : > { %v4765_v2 = vpop.f32.mrf.mxu1 }
 0x697   : > { %v12601_v39 = vpack.c.bf16 %v4765_v2, %v4762_v24  ;;  %v9984_v2 = vld [vmem:[#allocation10 + $0x18] sm:$0xff]  }
 0x698   : > { %v9129_v14 = vpop.f32.mrf.mxu1 }
 0x699   : > { %5557 = vmatprep.mubr.bf16.mxu0 %v12601_v39  ;;  %v9985_v14 = vld [vmem:[#allocation10 + $0x50] sm:$0xff]  }
 0x69a   : > { %v4770_v11 = vpop.f32.mrf.mxu1  ;;  %5558 = vmatmul.mubr.bf16.vlgmr.msra.gmra.mxu0 %v12603_v32 }
 0x69b   : > { %9249 = vmatpush3.bf16.msra.mxu0 %v9971_v61 }
 0x69c   : > { %v9132_v42 = vpop.f32.mrf.mxu1  ;;  %9250 = vmatprep.subr.bf16.mxu0 %v10338_v7 }
 0x69d   : > { %v9987_v42 = vld [vmem:[#allocation10 + $0x10] sm:$0xff]  }
 0x69e   : > { %v4773_v0 = vpop.f32.mrf.mxu1 }
 0x69f   : > { %v12608_v33 = vpack.c.bf16 %v4773_v0, %v4770_v11  ;;  %9251 = vmatpush3.bf16.msra.mxu0 %v9974_v58  ;;  %v9988_v0 = vld [vmem:[#allocation10 + $0x48] sm:$0xff]  }
 0x6a0   : > { %v9133_v5 = vpop.f32.mrf.mxu1  ;;  %9252 = vmatprep.subr.bf16.mxu0 %v10338_v7 }
 0x6a1   : > { %5565 = vmatprep.mubr.bf16.mxu0 %v12608_v33 }
 0x6a2   : > { %v4778_v6 = vpop.f32.mrf.mxu1  ;;  %5566 = vmatmul.mubr.bf16.gmra.mxu0 %v12610_v12 }
 0x6a3   : > { %9253 = vmatpush3.bf16.msra.mxu0 %v9977_v9 }
 0x6a4   : > { %v9136_v20 = vpop.f32.mrf.mxu1  ;;  %9254 = vmatprep.subr.bf16.mxu0 %v10338_v7 }
 0x6a5   : > { %v9991_v20 = vld [vmem:[#allocation10 + $0x40] sm:$0xff]  }
 0x6a6   : > { %v4781_v54 = vpop.f32.mrf.mxu1 }
 0x6a7   : > { %v12616_v49 = vpack.c.bf16 %v4781_v54, %v4778_v6  ;;  %9255 = vmatpush3.bf16.msra.mxu0 %v9980_v17  ;;  %v9990_v6 = vld [vmem:[#allocation10 + $0x8] sm:$0xff]  }
 0x6a8   : > { %v9137_v34 = vpop.f32.mrf.mxu1  ;;  %9256 = vmatprep.subr.bf16.mxu0 %v10338_v7 }
 0x6a9   : > { %5573 = vmatprep.mubr.bf16.mxu0 %v12616_v49  ;;  %v9993_v34 = vld [vmem:[#allocation10] sm:$0xff]  }
 0x6aa   : > { %v4786_v41 = vpop.f32.mrf.mxu1  ;;  %5574 = vmatmul.mubr.bf16.gmra.mxu0 %v12618_v31 }
 0x6ab   : > { %9257 = vmatpush3.bf16.msra.mxu0 %v9983_v38 }
 0x6ac   : > { %v9140_v51 = vpop.f32.mrf.mxu1  ;;  %9258 = vmatprep.subr.bf16.mxu0 %v10338_v7 }
 0x6ae   : > { %v4789_v19 = vpop.f32.mrf.mxu1 }
 0x6af   : > { %v12624_v10 = vpack.c.bf16 %v4789_v19, %v4786_v41  ;;  %9259 = vmatpush3.bf16.msra.mxu0 %v9986_v53 }
 0x6b0   : > { %v9141_v43 = vpop.f32.mrf.mxu1  ;;  %9260 = vmatprep.subr.bf16.mxu0 %v10338_v7 }
 0x6b1   : > { %5581 = vmatprep.mubr.bf16.mxu0 %v12624_v10 }
 0x6b2   : > { %v4794_v22 = vpop.f32.mrf.mxu1  ;;  %5582 = vmatmul.mubr.bf16.gmra.mxu0 %v12627_v4 }
 0x6b3   : > { %9261 = vmatpush3.bf16.msra.mxu0 %v9989_v30 }
 0x6b4   : > { %v9144_v29 = vpop.f32.mrf.mxu1  ;;  %9262 = vmatprep.subr.bf16.mxu0 %v10338_v7 }
 0x6b5   : > { %v9995_v29 = vld [vmem:[#allocation10 + $0xb8] sm:$0xff]  }
 0x6b6   : > { %v4797_v45 = vpop.f32.mrf.mxu1 }
 0x6b7   : > { %v12633_v8 = vpack.c.bf16 %v4797_v45, %v4794_v22  ;;  %9263 = vmatpush3.bf16.msra.mxu0 %v9992_v28 }
 0x6b8   : > { %v9145_v56 = vpop.f32.mrf.mxu1  ;;  %8830 = vmatprep.subr.bf16.mxu0 %v9994_v25  ;;  %v9996_v25 = vld [vmem:[#allocation10 + $0x138] sm:$0xff]  }
 0x6b9   : > { %5589 = vmatprep.mubr.bf16.mxu0 %v12633_v8  ;;  %v9997_v56 = vld [vmem:[#allocation10 + $0xf0] sm:$0xff]  }
 0x6ba   : > { %v4886_v47 = vpop.f32.mrf.mxu1  ;;  %5590 = vmatmul.mubr.bf16.gmra.mxu0 %v12637_v59 }
 0x6bb   : > { %9264 = vmatprep.mubr.msk.bf16.mxu0 %vm10339_vm1, %v10338_v7 }
 0x6bc   : > { %v9162_v36 = vpop.f32.mrf.mxu1 }
 0x6bd   : > { %v9999_v36 = vld [vmem:[#allocation10 + $0x130] sm:$0xff]  }
 0x6be   : > { %v4889_v3 = vpop.f32.mrf.mxu1 }
 0x6bf   : > { %v12643_v26 = vpack.c.bf16 %v4889_v3, %v4886_v47 }
 0x6c0   : > { %v9163_v21 = vpop.f32.mrf.mxu1 }
 0x6c1   : > { %5631 = vmatmul.mubr.bf16.vlgmr.msra.gmra.mxu1 %v12643_v26 }
 0x6c2   : > { %v4894_v60 = vpop.f32.mrf.mxu1  ;;  %5638 = vmatprep.mubr.bf16.mxu1 %v12587_v63  ;;  %8785 = vmatpush3.bf16.msra.mxu1 %v9972_v15  ;;  %v10000_v15 = vld [vmem:[#allocation10 + $0xe8] sm:$0xff]  }
 0x6c3   : > { %8786 = vmatprep.subr.bf16.mxu1 %v9973_v50 }
 0x6c4   : > { %v9166_v46 = vpop.f32.mrf.mxu1 }
 0x6c5   : > { %v10004_v46 = vld [vmem:[#allocation10 + $0xa0] sm:$0xff]  }
 0x6c6   : > { %v4897_v52 = vpop.f32.mrf.mxu1  ;;  %8787 = vmatpush3.bf16.msra.mxu1 %v9975_v13  ;;  %v10003_v13 = vld [vmem:[#allocation10 + $0xe0] sm:$0xff]  }
 0x6c7   : > { %v12647_v62 = vpack.c.bf16 %v4897_v52, %v4894_v60  ;;  %8788 = vmatprep.subr.bf16.mxu1 %v9976_v18  ;;  %v10002_v60 = vld [vmem:[#allocation10 + $0x128] sm:$0xff]   ;;  %v10005_v52 = vld [vmem:[#allocation10 + $0x120] sm:$0xff]  }
 0x6c8   : > { %v9167_v57 = vpop.f32.mrf.mxu1 }
 0x6c9   : > { %5639 = vmatmul.mubr.bf16.gmra.mxu1 %v12647_v62 }
 0x6ca   : > { %v4902_v44 = vpop.f32.mrf.mxu1  ;;  %5646 = vmatprep.mubr.bf16.mxu1 %v12589_v48  ;;  %8789 = vmatpush3.bf16.msra.mxu1 %v9978_v55 }
 0x6cb   : > { %8790 = vmatprep.subr.bf16.mxu1 %v9979_v37  ;;  %v10006_v37 = vld [vmem:[#allocation10 + $0xd8] sm:$0xff]  }
 0x6cc   : > { %v9170_v24 = vpop.f32.mrf.mxu1 }
 0x6ce   : > { %v4905_v40 = vpop.f32.mrf.mxu1  ;;  %8791 = vmatpush3.bf16.msra.mxu1 %v9981_v1  ;;  %v10008_v1 = vld [vmem:[#allocation10 + $0x118] sm:$0xff]  }
 0x6cf   : > { %v12651_v61 = vpack.c.bf16 %v4905_v40, %v4902_v44  ;;  %8792 = vmatprep.subr.bf16.mxu1 %v9982_v23  ;;  %v10009_v23 = vld [vmem:[#allocation10 + $0xd0] sm:$0xff]  }
 0x6d0   : > { %v9171_v11 = vpop.f32.mrf.mxu1  ;;  %v10010_v40 = vld [vmem:[#allocation10 + $0x90] sm:$0xff]  }
 0x6d1   : > { %5647 = vmatmul.mubr.bf16.gmra.mxu1 %v12651_v61  ;;  %v10012_v11 = vld [vmem:[#allocation10 + $0xc8] sm:$0xff]  }
 0x6d2   : > { %v4910_v58 = vpop.f32.mrf.mxu1  ;;  %5654 = vmatprep.mubr.bf16.mxu1 %v12593_v16  ;;  %8793 = vmatpush3.bf16.msra.mxu1 %v9984_v2  ;;  %v10011_v2 = vld [vmem:[#allocation10 + $0x110] sm:$0xff]  }
 0x6d3   : > { %8794 = vmatprep.subr.bf16.mxu1 %v9985_v14 }
 0x6d4   : > { %v9174_v9 = vpop.f32.mrf.mxu1 }
 0x6d6   : > { %v4913_v5 = vpop.f32.mrf.mxu1  ;;  %8795 = vmatpush3.bf16.msra.mxu1 %v9987_v42 }
 0x6d7   : > { %v12655_v17 = vpack.c.bf16 %v4913_v5, %v4910_v58  ;;  %8796 = vmatprep.subr.bf16.mxu1 %v9988_v0  ;;  %v10014_v0 = vld [vmem:[#allocation10 + $0x108] sm:$0xff]  }
 0x6d8   : > { %v9175_v54 = vpop.f32.mrf.mxu1 }
 0x6d9   : > { %5655 = vmatmul.mubr.bf16.gmra.mxu1 %v12655_v17 }
 0x6da   : > { %v4918_v38 = vpop.f32.mrf.mxu1  ;;  %5662 = vmatprep.mubr.bf16.mxu1 %v12599_v35  ;;  %8797 = vmatpush3.bf16.msra.mxu1 %v9990_v6  ;;  %v10016_v6 = vld [vmem:[#allocation10 + $0x80] sm:$0xff]  }
 0x6db   : > { %8798 = vmatprep.subr.bf16.mxu1 %v9991_v20  ;;  %v10017_v20 = vld [vmem:[#allocation10 + $0x100] sm:$0xff]  }
 0x6dc   : > { %v9178_v41 = vpop.f32.mrf.mxu1 }
 0x6de   : > { %v4921_v53 = vpop.f32.mrf.mxu1  ;;  %8799 = vmatpush3.bf16.msra.mxu1 %v9993_v34 }
 0x6df   : > { %v12659_v51 = vpack.c.bf16 %v4921_v53, %v4918_v38  ;;  %9284 = vmatprep.subr.bf16.mxu1 %v10338_v7 }
 0x6e0   : > { %v9179_v19 = vpop.f32.mrf.mxu1 }
 0x6e1   : > { %5663 = vmatmul.mubr.bf16.gmra.mxu1 %v12659_v51 }
 0x6e2   : > { %v5134_v30 = vpop.f32.mrf.mxu1  ;;  %6103 = vmatprep.mubr.bf16.mxu1 %v12601_v39  ;;  %v9998_v39 = vld [vmem:[#allocation10 + $0xb0] sm:$0xff]  }
 0x6e4   : > { %v9230_v43 = vpop.f32.mrf.mxu1 }
 0x6e6   : > { %v5137_v22 = vpop.f32.mrf.mxu1 }
 0x6e7   : > { %v12664_v28 = vpack.c.bf16 %v5137_v22, %v5134_v30 }
 0x6e8   : > { %v9231_v45 = vpop.f32.mrf.mxu1 }
 0x6e9   : > { %9265 = vmatmul.mubr.bf16.vlgmr.msra.gmra.mxu0 %v12664_v28  ;;  %6104 = vmatmul.mubr.bf16.vlgmr.msra.gmra.mxu1 %v12603_v32  ;;  %v10001_v32 = vld [vmem:[#allocation10 + $0xa8] sm:$0xff]  }
 0x6ea   : > { %v5142_v47 = vpop.f32.mrf.mxu1  ;;  %6111 = vmatprep.mubr.bf16.mxu1 %v12608_v33  ;;  %9268 = vmatprep.mubr.msk.bf16.mxu0 %vm10339_vm1, %v10338_v7 }
 0x6eb   : > { %8831 = vmatpush3.bf16.msra.mxu0 %v9995_v29  ;;  %9285 = vmatpush3.bf16.msra.mxu1 %v9996_v25 }
 0x6ec   : > { %v9234_v3 = vpop.f32.mrf.mxu1  ;;  %8832 = vmatprep.subr.bf16.mxu0 %v9997_v56  ;;  %9286 = vmatprep.subr.bf16.mxu1 %v10338_v7 }
 0x6ee   : > { %v5145_v50 = vpop.f32.mrf.mxu1 }
 0x6ef   : > { %v12672_v21 = vpack.c.bf16 %v5145_v50, %v5142_v47  ;;  %8833 = vmatpush3.bf16.msra.mxu0 %v9998_v39  ;;  %9287 = vmatpush3.bf16.msra.mxu1 %v9999_v36 }
 0x6f0   : > { %v9235_v33 = vpop.f32.mrf.mxu1  ;;  %8834 = vmatprep.subr.bf16.mxu0 %v10000_v15  ;;  %9288 = vmatprep.subr.bf16.mxu1 %v10338_v7 }
 0x6f1   : > { %9269 = vmatmul.mubr.bf16.gmra.mxu0 %v12672_v21  ;;  %6112 = vmatmul.mubr.bf16.gmra.mxu1 %v12610_v12  ;;  %v10007_v12 = vld [vmem:[#allocation10 + $0x98] sm:$0xff]  }
 0x6f2   : > { %v5150_v18 = vpop.f32.mrf.mxu1  ;;  %6119 = vmatprep.mubr.bf16.mxu1 %v12616_v49  ;;  %9272 = vmatprep.mubr.msk.bf16.mxu0 %vm10339_vm1, %v10338_v7 }
 0x6f3   : > { %8835 = vmatpush3.bf16.msra.mxu0 %v10001_v32  ;;  %9289 = vmatpush3.bf16.msra.mxu1 %v10002_v60 }
 0x6f4   : > { %v9238_v55 = vpop.f32.mrf.mxu1  ;;  %8836 = vmatprep.subr.bf16.mxu0 %v10003_v13  ;;  %9290 = vmatprep.subr.bf16.mxu1 %v10338_v7 }
 0x6f6   : > { %v5153_v57 = vpop.f32.mrf.mxu1 }
 0x6f7   : > { %v12681_v44 = vpack.c.bf16 %v5153_v57, %v5150_v18  ;;  %8837 = vmatpush3.bf16.msra.mxu0 %v10004_v46  ;;  %9291 = vmatpush3.bf16.msra.mxu1 %v10005_v52 }
 0x6f8   : > { %v9239_v49 = vpop.f32.mrf.mxu1  ;;  %8838 = vmatprep.subr.bf16.mxu0 %v10006_v37  ;;  %9292 = vmatprep.subr.bf16.mxu1 %v10338_v7 }
 0x6f9   : > { %9273 = vmatmul.mubr.bf16.gmra.mxu0 %v12681_v44  ;;  %6120 = vmatmul.mubr.bf16.gmra.mxu1 %v12618_v31  ;;  %v10013_v31 = vld [vmem:[#allocation10 + $0x88] sm:$0xff]  }
 0x6fa   : > { %v5158_v24 = vpop.f32.mrf.mxu1  ;;  %6127 = vmatprep.mubr.bf16.mxu1 %v12624_v10  ;;  %9276 = vmatprep.mubr.msk.bf16.mxu0 %vm10339_vm1, %v10338_v7  ;;  %v10015_v10 = vld [vmem:[#allocation10 + $0xc0] sm:$0xff]  }
 0x6fb   : > { %8839 = vmatpush3.bf16.msra.mxu0 %v10007_v12  ;;  %9293 = vmatpush3.bf16.msra.mxu1 %v10008_v1 }
 0x6fc   : > { %v9242_v14 = vpop.f32.mrf.mxu1  ;;  %8840 = vmatprep.subr.bf16.mxu0 %v10009_v23  ;;  %9294 = vmatprep.subr.bf16.mxu1 %v10338_v7 }
 0x6fe   : > { %v5161_v58 = vpop.f32.mrf.mxu1 }
 0x6ff   : > { %v5192_v42 = vpack.c.bf16 %v5161_v58, %v5158_v24  ;;  %8841 = vmatpush3.bf16.msra.mxu0 %v10010_v40  ;;  %9295 = vmatpush3.bf16.msra.mxu1 %v10011_v2 }
 0x700   : > { %v9243_v9 = vpop.f32.mrf.mxu1  ;;  %8842 = vmatprep.subr.bf16.mxu0 %v10012_v11  ;;  %9296 = vmatprep.subr.bf16.mxu1 %v10338_v7 }
 0x701   : > { %9277 = vmatmul.mubr.bf16.gmra.mxu0 %v5192_v42  ;;  %6128 = vmatmul.mubr.bf16.gmra.mxu1 %v12627_v4 }
 0x702   : > { %v5166_v5 = vpop.f32.mrf.mxu1  ;;  %6135 = vmatprep.mubr.bf16.mxu1 %v12633_v8  ;;  %9280 = vmatprep.mubr.msk.bf16.mxu0 %vm10339_vm1, %v10338_v7 }
 0x703   : > { %8843 = vmatpush3.bf16.msra.mxu0 %v10013_v31  ;;  %9297 = vmatpush3.bf16.msra.mxu1 %v10014_v0 }
 0x704   : > { %v9246_v54 = vpop.f32.mrf.mxu1  ;;  %8844 = vmatprep.subr.bf16.mxu0 %v10015_v10  ;;  %9298 = vmatprep.subr.bf16.mxu1 %v10338_v7 }
 0x706   : > { %v5169_v38 = vpop.f32.mrf.mxu1 }
 0x707   : > { %v5197_v34 = vpack.c.bf16 %v5169_v38, %v5166_v5  ;;  %8845 = vmatpush3.bf16.msra.mxu0 %v10016_v6  ;;  %9299 = vmatpush3.bf16.msra.mxu1 %v10017_v20 }
 0x708   : > { %v9247_v41 = vpop.f32.mrf.mxu1  ;;  %9320 = vmatprep.subr.bf16.mxu0 %v10338_v7  ;;  %9350 = vmatprep.subr.bf16.mxu1 %v10338_v7 }
 0x709   : > { %9281 = vmatmul.mubr.bf16.gmra.mxu0 %v5197_v34  ;;  %6136 = vmatmul.mubr.bf16.gmra.mxu1 %v12637_v59 }
 0x70a   : > { %6176 = vmatprep.mubr.bf16.mxu0 %v12584_v27  ;;  %9300 = vmatprep.mubr.msk.bf16.mxu1 %vm10339_vm1, %v10338_v7 }
 0x711   : > { %6177 = vmatmul.mubr.bf16.vlgmr.msra.gmra.mxu0 %v12643_v26  ;;  %9301 = vmatmul.mubr.bf16.vlgmr.msra.gmra.mxu1 %v12664_v28 }
 0x712   : > { %6184 = vmatprep.mubr.bf16.mxu0 %v12587_v63  ;;  %9304 = vmatprep.mubr.msk.bf16.mxu1 %vm10339_vm1, %v10338_v7 }
 0x719   : > { %6185 = vmatmul.mubr.bf16.gmra.mxu0 %v12647_v62  ;;  %9305 = vmatmul.mubr.bf16.gmra.mxu1 %v12672_v21  ;;  %v8011_v21 = vld [vmem:[%s13028_s10] ss:$0 sm:$0xff] }
 0x71a   : > { %6192 = vmatprep.mubr.bf16.mxu0 %v12589_v48  ;;  %9308 = vmatprep.mubr.msk.bf16.mxu1 %vm10339_vm1, %v10338_v7 }
 0x721   : > { %6193 = vmatmul.mubr.bf16.gmra.mxu0 %v12651_v61  ;;  %9309 = vmatmul.mubr.bf16.gmra.mxu1 %v12681_v44 }
 0x722   : > { %6200 = vmatprep.mubr.bf16.mxu0 %v12593_v16  ;;  %9312 = vmatprep.mubr.msk.bf16.mxu1 %vm10339_vm1, %v10338_v7 }
 0x729   : > { %6201 = vmatmul.mubr.bf16.gmra.mxu0 %v12655_v17  ;;  %9313 = vmatmul.mubr.bf16.gmra.mxu1 %v5192_v42 }
 0x72a   : > { %6208 = vmatprep.mubr.bf16.mxu0 %v12599_v35  ;;  %9316 = vmatprep.mubr.msk.bf16.mxu1 %vm10339_vm1, %v10338_v7 }
 0x731   : > { %6209 = vmatmul.mubr.bf16.gmra.mxu0 %v12659_v51  ;;  %9317 = vmatmul.mubr.bf16.gmra.mxu1 %v5197_v34 }
 0x732   : > { %9330 = vmatprep.mubr.msk.bf16.mxu0 %vm10339_vm1, %v10338_v7  ;;  %9356 = vmatprep.mubr.msk.bf16.mxu1 %vm10339_vm1, %v10338_v7 }
 0x75a   : > { %v8695_v27 = vpop.f32.mrf.mxu0 }
 0x75c   : > { %v8696_v63 = vpop.f32.mrf.mxu0 }
 0x75d   : > { %v8697_v48 = vadd.f32 %v8696_v63, %v8695_v27 }
 0x75e   : > { %v8698_v16 = vpop.f32.mrf.mxu0 }
 0x75f   : > { %v5560_v13 = vadd.f32 %v8697_v48, %v8011_v21 }
 0x760   : > { %v8699_v4 = vpop.f32.mrf.mxu0 }
 0x761   : > { %v8700_v8 = vadd.f32 %v8699_v4, %v8698_v16 }
 0x762   : > { %v8701_v59 = vpop.f32.mrf.mxu0 }
 0x763   : > { %v5563_v37 = vadd.f32 %v8700_v8, %v8011_v21 }
 0x764   : > { %v8702_v35 = vpop.f32.mrf.mxu0 }
 0x765   : > { %v8703_v26 = vadd.f32 %v8702_v35, %v8701_v59 }
 0x766   : > { %v8704_v62 = vpop.f32.mrf.mxu0 }
 0x767   : > { %v5568_v49 = vadd.f32 %v8703_v26, %v8011_v21 }
 0x768   : > { %v8705_v61 = vpop.f32.mrf.mxu0 }
 0x769   : > { %v8706_v17 = vadd.f32 %v8705_v61, %v8704_v62 }
 0x76a   : > { %v8707_v53 = vpop.f32.mrf.mxu0 }
 0x76b   : > { %v5571_v14 = vadd.f32 %v8706_v17, %v8011_v21 }
 0x76c   : > { %v8708_v51 = vpop.f32.mrf.mxu0 }
 0x76d   : > { %v8709_v19 = vadd.f32 %v8708_v51, %v8707_v53 }
 0x76e   : > { %v8710_v30 = vpop.f32.mrf.mxu0 }
 0x76f   : > { %v5576_v0 = vadd.f32 %v8709_v19, %v8011_v21 }
 0x770   : > { %v8711_v43 = vpop.f32.mrf.mxu0 }
 0x771   : > { %v8712_v22 = vadd.f32 %v8711_v43, %v8710_v30 }
 0x772   : > { %v8713_v28 = vpop.f32.mrf.mxu0 }
 0x773   : > { %v5579_v20 = vadd.f32 %v8712_v22, %v8011_v21 }
 0x774   : > { %v8714_v29 = vpop.f32.mrf.mxu0 }
 0x775   : > { %v8715_v25 = vadd.f32 %v8714_v29, %v8713_v28 }
 0x776   : > { %v8716_v45 = vpop.f32.mrf.mxu0 }
 0x777   : > { %v5584_v27 = vadd.f32 %v8715_v25, %v8011_v21 }
 0x778   : > { %v8717_v56 = vpop.f32.mrf.mxu0 }
 0x779   : > { %v8718_v47 = vadd.f32 %v8717_v56, %v8716_v45 }
 0x77a   : > { %v8719_v39 = vpop.f32.mrf.mxu0 }
 0x77b   : > { %v5587_v8 = vadd.f32 %v8718_v47, %v8011_v21 }
 0x77c   : > { %v8720_v36 = vpop.f32.mrf.mxu0 }
 0x77d   : > { %v8721_v3 = vadd.f32 %v8720_v36, %v8719_v39 }
 0x77e   : > { %v8722_v15 = vpop.f32.mrf.mxu0 }
 0x77f   : > { %v5592_v61 = vadd.f32 %v8721_v3, %v8011_v21 }
 0x780   : > { %v8723_v50 = vpop.f32.mrf.mxu0 }
 0x781   : > { %v8724_v32 = vadd.f32 %v8723_v50, %v8722_v15  ;;  %v8741_v60 = vpop.f32.mrf.mxu1 }
 0x783   : > { %v8742_v33 = vpop.f32.mrf.mxu1  ;;  %v5595_v30 = vadd.f32 %v8724_v32, %v8011_v21 }
 0x784   : > { %v8743_v18 = vadd.f32 %v8742_v33, %v8741_v60 }
 0x785   : > { %v8744_v46 = vpop.f32.mrf.mxu1 }
 0x786   : > { %v5633_v52 = vadd.f32 %v8743_v18, %v5560_v13 }
 0x787   : > { %v8745_v55 = vpop.f32.mrf.mxu1 }
 0x788   : > { %v8746_v57 = vadd.f32 %v8745_v55, %v8744_v46 }
 0x789   : > { %v8747_v44 = vpop.f32.mrf.mxu1 }
 0x78a   : > { %v5636_v12 = vadd.f32 %v8746_v57, %v5563_v37 }
 0x78b   : > { %v8748_v1 = vpop.f32.mrf.mxu1 }
 0x78c   : > { %v8749_v23 = vadd.f32 %v8748_v1, %v8747_v44 }
 0x78d   : > { %v8750_v24 = vpop.f32.mrf.mxu1 }
 0x78e   : > { %v5641_v40 = vadd.f32 %v8749_v23, %v5568_v49 }
 0x78f   : > { %v8751_v2 = vpop.f32.mrf.mxu1 }
 0x790   : > { %v8752_v11 = vadd.f32 %v8751_v2, %v8750_v24 }
 0x791   : > { %v8753_v58 = vpop.f32.mrf.mxu1 }
 0x792   : > { %v5644_v42 = vadd.f32 %v8752_v11, %v5571_v14 }
 0x793   : > { %v8754_v31 = vpop.f32.mrf.mxu1 }
 0x794   : > { %v8755_v9 = vadd.f32 %v8754_v31, %v8753_v58 }
 0x795   : > { %v8756_v10 = vpop.f32.mrf.mxu1 }
 0x796   : > { %v5649_v5 = vadd.f32 %v8755_v9, %v5576_v0 }
 0x797   : > { %v8757_v6 = vpop.f32.mrf.mxu1 }
 0x798   : > { %v8758_v54 = vadd.f32 %v8757_v6, %v8756_v10 }
 0x799   : > { %v8759_v38 = vpop.f32.mrf.mxu1 }
 0x79a   : > { %v5652_v34 = vadd.f32 %v8758_v54, %v5579_v20 }
 0x79b   : > { %v8760_v41 = vpop.f32.mrf.mxu1 }
 0x79c   : > { %v8761_v63 = vadd.f32 %v8760_v41, %v8759_v38 }
 0x79d   : > { %v8762_v48 = vpop.f32.mrf.mxu1 }
 0x79e   : > { %v12729_v16 = vadd.f32 %v8761_v63, %v5584_v27 }
 0x79f   : > { %v8763_v4 = vpop.f32.mrf.mxu1 }
 0x7a0   : > { %v8764_v59 = vadd.f32 %v8763_v4, %v8762_v48 }
 0x7a1   : > { %v8765_v35 = vpop.f32.mrf.mxu1 }
 0x7a2   : > { %v12731_v26 = vadd.f32 %v8764_v59, %v5587_v8 }
 0x7a3   : > { %v8766_v62 = vpop.f32.mrf.mxu1 }
 0x7a4   : > { %v8767_v17 = vadd.f32 %v8766_v62, %v8765_v35  ;;  %v12778_v35 = vld [vmem:[%s13029_s11] ss:$0 sm:$0xff] }
 0x7a5   : > { %v8768_v53 = vpop.f32.mrf.mxu1 }
 0x7a6   : > { %v12733_v51 = vadd.f32 %v8767_v17, %v5592_v61 }
 0x7a7   : > { %v8769_v19 = vpop.f32.mrf.mxu1 }
 0x7a8   : > { %v8770_v43 = vadd.f32 %v8769_v19, %v8768_v53 }
 0x7a9   : > { %v5705_v22 = vpop.f32.mrf.mxu0  ;;  %v8800_v28 = vpop.f32.mrf.mxu1 }
 0x7aa   : > { %v12735_v29 = vadd.f32 %v5705_v22, %v5633_v52  ;;  %v12737_v25 = vadd.f32 %v8770_v43, %v5595_v30 }
 0x7ab   : > { %v9266_v45 = vpop.f32.mrf.mxu0  ;;  %v8801_v56 = vpop.f32.mrf.mxu1 }
 0x7ac   : > { %v8802_v47 = vadd.f32 %v8801_v56, %v8800_v28 }
 0x7ad   : > { %v5708_v39 = vpop.f32.mrf.mxu0  ;;  %v8803_v36 = vpop.f32.mrf.mxu1 }
 0x7ae   : > { %v12739_v15 = vadd.f32 %v5708_v39, %v5636_v12  ;;  %v6106_v19 = vadd.f32 %v8802_v47, %v12778_v35 }
 0x7af   : > { %v9267_v3 = vpop.f32.mrf.mxu0  ;;  %v8804_v50 = vpop.f32.mrf.mxu1 }
 0x7b0   : > { %v8805_v60 = vadd.f32 %v8804_v50, %v8803_v36 }
 0x7b1   : > { %v5713_v33 = vpop.f32.mrf.mxu0  ;;  %v8806_v13 = vpop.f32.mrf.mxu1 }
 0x7b2   : > { %v12741_v21 = vadd.f32 %v5713_v33, %v5641_v40  ;;  %v6109_v39 = vadd.f32 %v8805_v60, %v12778_v35 }
 0x7b3   : > { %v9270_v32 = vpop.f32.mrf.mxu0  ;;  %v8807_v18 = vpop.f32.mrf.mxu1 }
 0x7b4   : > { %v8808_v46 = vadd.f32 %v8807_v18, %v8806_v13 }
 0x7b5   : > { %v5716_v52 = vpop.f32.mrf.mxu0  ;;  %v8809_v55 = vpop.f32.mrf.mxu1 }
 0x7b6   : > { %v12743_v37 = vadd.f32 %v5716_v52, %v5644_v42 }
 0x7b7   : > { %v9271_v57 = vpop.f32.mrf.mxu0  ;;  %v8810_v44 = vpop.f32.mrf.mxu1 }
 0x7b8   : > { %v8811_v1 = vadd.f32 %v8810_v44, %v8809_v55  ;;  %v6114_v55 = vadd.f32 %v8808_v46, %v12778_v35 }
 0x7b9   : > { %v5721_v49 = vpop.f32.mrf.mxu0  ;;  %v8812_v12 = vpop.f32.mrf.mxu1 }
 0x7ba   : > { %v12745_v23 = vadd.f32 %v5721_v49, %v5649_v5 }
 0x7bb   : > { %v9274_v24 = vpop.f32.mrf.mxu0  ;;  %v8813_v2 = vpop.f32.mrf.mxu1 }
 0x7bc   : > { %v12747_v14 = vadd.f32 %v8813_v2, %v8812_v12 }
 0x7bd   : > { %v5724_v40 = vpop.f32.mrf.mxu0  ;;  %v8815_v11 = vpop.f32.mrf.mxu1 }
 0x7be   : > { %v12749_v58 = vadd.f32 %v5724_v40, %v5652_v34  ;;  %v6117_v40 = vadd.f32 %v8811_v1, %v12778_v35 }
 0x7bf   : > { %v9275_v31 = vpop.f32.mrf.mxu0  ;;  %v8816_v0 = vpop.f32.mrf.mxu1 }
 0x7c1   : > { %v12751_v9 = vpop.f32.mrf.mxu0  ;;  %v12753_v42 = vpop.f32.mrf.mxu1 }
 0x7c3   : > { %v9278_v10 = vpop.f32.mrf.mxu0  ;;  %v12755_v6 = vpop.f32.mrf.mxu1 }
 0x7c5   : > { %v12757_v20 = vpop.f32.mrf.mxu0  ;;  %v12759_v5 = vpop.f32.mrf.mxu1 }
 0x7c7   : > { %v9279_v54 = vpop.f32.mrf.mxu0  ;;  %v12761_v38 = vpop.f32.mrf.mxu1 }
 0x7c9   : > { %v12763_v41 = vpop.f32.mrf.mxu0  ;;  %v12765_v34 = vpop.f32.mrf.mxu1 }
 0x7cb   : > { %v9282_v27 = vpop.f32.mrf.mxu0  ;;  %v12767_v63 = vpop.f32.mrf.mxu1 }
 0x7cd   : > { %v12769_v48 = vpop.f32.mrf.mxu0  ;;  %v12771_v4 = vpop.f32.mrf.mxu1 }
 0x7cf   : > { %v9283_v8 = vpop.f32.mrf.mxu0  ;;  %v12773_v59 = vpop.f32.mrf.mxu1 }
 0x7d1   : > { %v8846_v62 = vpop.f32.mrf.mxu0  ;;  %v6251_v61 = vpop.f32.mrf.mxu1 }
 0x7d3   : > { %v8847_v17 = vpop.f32.mrf.mxu0  ;;  %v9302_v53 = vpop.f32.mrf.mxu1 }
 0x7d4   : > { %v8848_v30 = vadd.f32 %v8847_v17, %v8846_v62  ;;  %v8817_v62 = vadd.f32 %v8816_v0, %v8815_v11 }
 0x7d5   : > { %v8849_v43 = vpop.f32.mrf.mxu0  ;;  %v6254_v22 = vpop.f32.mrf.mxu1 }
 0x7d6   : > { %v6179_v28 = vadd.f32 %v8848_v30, %v6106_v19 }
 0x7d7   : > { %v8850_v45 = vpop.f32.mrf.mxu0  ;;  %v9303_v56 = vpop.f32.mrf.mxu1 }
 0x7d8   : > { %v6252_v36 = vadd.f32 %v6251_v61, %v6179_v28  ;;  %v8851_v3 = vadd.f32 %v8850_v45, %v8849_v43  ;;  %v6125_v28 = vadd.f32 %v8817_v62, %v12778_v35 }
 0x7d9   : > { %v8852_v50 = vpop.f32.mrf.mxu0  ;;  %v6259_v33 = vpop.f32.mrf.mxu1 }
 0x7da   : > { %v6290_v13 = vmax.f32 %v12735_v29, %v6252_v36  ;;  %v6182_v32 = vadd.f32 %v8851_v3, %v6109_v39 }
 0x7db   : > { %v8853_v18 = vpop.f32.mrf.mxu0  ;;  %v9306_v52 = vpop.f32.mrf.mxu1 }
 0x7dc   : > { %v6255_v47 = vadd.f32 %v6254_v22, %v6182_v32  ;;  %v8854_v57 = vadd.f32 %v8853_v18, %v8852_v50  ;;  %v8823_v32 = vadd.f32 %v12761_v38, %v12759_v5  ;;  %v5730_v38 = vadd.f32 %v12751_v9, %v12729_v16 }
 0x7dd   : > { %v8855_v44 = vpop.f32.mrf.mxu0  ;;  %v6262_v49 = vpop.f32.mrf.mxu1 }
 0x7de   : > { %v6291_v12 = vmax.f32 %v12739_v15, %v6255_v47  ;;  %v6187_v24 = vadd.f32 %v8854_v57, %v6114_v55  ;;  %v6122_v15 = vadd.f32 %v12747_v14, %v12778_v35 }
 0x7df   : > { %v8856_v2 = vpop.f32.mrf.mxu0  ;;  %v9307_v60 = vpop.f32.mrf.mxu1 }
 0x7e0   : > { %v6260_v31 = vadd.f32 %v6259_v33, %v6187_v24  ;;  %v8857_v10 = vadd.f32 %v8856_v2, %v8855_v44  ;;  %v12786_v54 = vpack.c.bf16 %v6291_v12, %v6290_v13 }
 0x7e1   : > { %v8858_v29 = vpop.f32.mrf.mxu0  ;;  %v6267_v27 = vpop.f32.mrf.mxu1 }
 0x7e2   : > { %v6292_v8 = vmax.f32 %v12741_v21, %v6260_v31  ;;  %v6190_v46 = vadd.f32 %v8857_v10, %v6117_v40  ;;  %v8820_v21 = vadd.f32 %v12755_v6, %v12753_v42 }
 0x7e3   : > { %v8859_v61 = vpop.f32.mrf.mxu0  ;;  %v9310_v17 = vpop.f32.mrf.mxu1 }
 0x7e4   : > { %v6263_v53 = vadd.f32 %v6262_v49, %v6190_v46  ;;  %v8860_v19 = vadd.f32 %v8859_v61, %v8858_v29  ;;  %v6133_v49 = vadd.f32 %v8823_v32, %v12778_v35 }
 0x7e5   : > { %v8861_v30 = vpop.f32.mrf.mxu0  ;;  %v6270_v43 = vpop.f32.mrf.mxu1 }
 0x7e6   : > { %v6293_v1 = vmax.f32 %v12743_v37, %v6263_v53  ;;  %v6195_v22 = vadd.f32 %v8860_v19, %v6122_v15  ;;  %v6130_v37 = vadd.f32 %v8820_v21, %v12778_v35  ;;  %v10027_v21 = vld [vmem:[#allocation11 + $0x68] sm:$0xff]  }
 0x7e7   : > { %v8862_v45 = vpop.f32.mrf.mxu0  ;;  %v9311_v56 = vpop.f32.mrf.mxu1 }
 0x7e8   : > { %v6268_v11 = vadd.f32 %v6267_v27, %v6195_v22  ;;  %v8863_v0 = vadd.f32 %v8862_v45, %v8861_v30  ;;  %v6311_v39 = vpack.c.bf16 %v6293_v1, %v6292_v8  ;;  %v8829_v27 = vadd.f32 %v12773_v59, %v12771_v4  ;;  %v10025_v45 = vld [vmem:[#allocation11 + $0x70] sm:$0xff]  }
 0x7e9   : > { %v8864_v36 = vpop.f32.mrf.mxu0  ;;  %v6275_v3 = vpop.f32.mrf.mxu1  ;;  %v5738_v30 = vadd.f32 %v12763_v41, %v12733_v51  ;;  %v5741_v4 = vadd.f32 %v12769_v48, %v12737_v25  ;;  %v10018_v51 = vld [vmem:[%s13030_s12] sm:$0xff]   ;;  %v10019_v25 = vld [vmem:[%s13030_s12 + $0x8] sm:$0xff]   ;;  %v10020_v41 = vld [vmem:[%s13030_s12 + $0x10] sm:$0xff]  }
 0x7ea   : > { %v6294_v14 = vmax.f32 %v12745_v23, %v6268_v11  ;;  %v6198_v50 = vadd.f32 %v8863_v0, %v6125_v28  ;;  %v8826_v23 = vadd.f32 %v12767_v63, %v12765_v34  ;;  %v6141_v16 = vadd.f32 %v8829_v27, %v12778_v35  ;;  %v10021_v48 = vld [vmem:[%s13030_s12 + $0x18] sm:$0xff]   ;;  %v10024_v28 = vld [vmem:[#allocation11 + $0x38] sm:$0xff]   ;;  %v10028_v11 = vld [vmem:[#allocation11 + $0x28] sm:$0xff]  }
 0x7eb   : > { %v8865_v33 = vpop.f32.mrf.mxu0  ;;  %v9314_v13 = vpop.f32.mrf.mxu1  ;;  %v10026_v56 = vld [vmem:[#allocation11 + $0x30] sm:$0xff]   ;;  %v10029_v0 = vld [vmem:[#allocation11 + $0x60] sm:$0xff]  }
 0x7ec   : > { %v6271_v18 = vadd.f32 %v6270_v43, %v6198_v50  ;;  %v8866_v52 = vadd.f32 %v8865_v33, %v8864_v36  ;;  %v6138_v29 = vadd.f32 %v8826_v23, %v12778_v35  ;;  %v10022_v35 = vld [vmem:[%s13030_s12 + $0x20] sm:$0xff]  }
 0x7ed   : > { %v8867_v55 = vpop.f32.mrf.mxu0  ;;  %v6278_v47 = vpop.f32.mrf.mxu1  ;;  %v10031_v36 = vld [vmem:[#allocation11 + $0x58] sm:$0xff]  }
 0x7ee   : > { %v6295_v42 = vmax.f32 %v12749_v58, %v6271_v18  ;;  %v6203_v6 = vadd.f32 %v8866_v52, %v6130_v37  ;;  %v5733_v58 = vadd.f32 %v12757_v20, %v12731_v26 }
 0x7ef   : > { %v8868_v57 = vpop.f32.mrf.mxu0  ;;  %v9315_v44 = vpop.f32.mrf.mxu1 }
 0x7f0   : > { %v8869_v12 = vadd.f32 %v8868_v57, %v8867_v55  ;;  %v6312_v24 = vpack.c.bf16 %v6295_v42, %v6294_v14  ;;  %v6276_v40 = vadd.f32 %v6275_v3, %v6203_v6  ;;  %v10032_v3 = vld [vmem:[#allocation11 + $0x18] sm:$0xff]   ;;  %v10033_v14 = vld [vmem:[#allocation11 + $0x50] sm:$0xff]  }
 0x7f1   : > { %v8870_v2 = vpop.f32.mrf.mxu0  ;;  %v6283_v60 = vpop.f32.mrf.mxu1 }
 0x7f2   : > { %v6206_v5 = vadd.f32 %v8869_v12, %v6133_v49  ;;  %v6296_v62 = vmax.f32 %v5730_v38, %v6276_v40 }
 0x7f3   : > { %v8871_v31 = vpop.f32.mrf.mxu0  ;;  %v9318_v10 = vpop.f32.mrf.mxu1 }
 0x7f4   : > { %v6279_v34 = vadd.f32 %v6278_v47, %v6206_v5  ;;  %v8872_v63 = vadd.f32 %v8871_v31, %v8870_v2 }
 0x7f5   : > { %v8873_v8 = vpop.f32.mrf.mxu0  ;;  %v6286_v46 = vpop.f32.mrf.mxu1 }
 0x7f6   : > { %v6297_v61 = vmax.f32 %v5733_v58, %v6279_v34  ;;  %v6211_v17 = vadd.f32 %v8872_v63, %v6138_v29 }
 0x7f7   : > { %v8874_v15 = vpop.f32.mrf.mxu0  ;;  %v9319_v53 = vpop.f32.mrf.mxu1 }
 0x7f8   : > { %v8875_v9 = vadd.f32 %v8874_v15, %v8873_v8  ;;  %v6313_v26 = vpack.c.bf16 %v6297_v61, %v6296_v62  ;;  %v6284_v20 = vadd.f32 %v6283_v60, %v6211_v17  ;;  %v6442_v15 = vld [vmem:[%s13031_s13] sm:$0xf]  ;;  %v8104_v53 = vld [vmem:[%s13031_s13 + $0x4] sm:$0xf] }
 0x7fa   : > { %v6214_v19 = vadd.f32 %v8875_v9, %v6141_v16  ;;  %v6298_v43 = vmax.f32 %v5738_v30, %v6284_v20  ;;  %v8106_v16 = vld [vmem:[%s13031_s13 + $0x8] sm:$0xf]  ;;  %v8108_v9 = vld [vmem:[%s13031_s13 + $0xc] sm:$0xf]  ;;  %v10034_v20 = vld [vmem:[#allocation11 + $0x10] sm:$0xff]  }
 0x7fb   : > { %v10036_v30 = vld [vmem:[#allocation11 + $0x8] sm:$0xff]  }
 0x7fc   : > { %v6287_v59 = vadd.f32 %v6286_v46, %v6214_v19  ;;  %v10035_v19 = vld [vmem:[#allocation11 + $0x48] sm:$0xff]  }
 0x7fe   : > { %v6299_v1 = vmax.f32 %v5741_v4, %v6287_v59  ;;  %v10037_v4 = vld [vmem:[#allocation11 + $0xf8] sm:$0xff]  }
 0x7ff   : > { %v10038_v59 = vld [vmem:[#allocation11 + $0xb8] sm:$0xff]  }
 0x800   : > { %v6314_v22 = vpack.c.bf16 %v6299_v1, %v6298_v43  ;;  %v10039_v43 = vld [vmem:[#allocation11 + $0x40] sm:$0xff]   ;;  %v10041_v1 = vld [vmem:[#allocation11 + $0xf0] sm:$0xff]  }
 0x802   : > { %9321 = vmatpush3.bf16.msra.mxu0 %v6314_v22  ;;  %v10040_v22 = vld [vmem:[#allocation11] sm:$0xff]  }
 0x803   : > { %9322 = vmatprep.subr.bf16.mxu0 %v10338_v7 }
 0x806   : > { %9323 = vmatpush3.bf16.msra.mxu0 %v6313_v26  ;;  %v8110_v26 = vld [vmem:[%s13031_s13 + $0x10] sm:$0xf] }
 0x807   : > { %9324 = vmatprep.subr.bf16.mxu0 %v10338_v7 }
 0x80a   : > { %9325 = vmatpush3.bf16.msra.mxu0 %v6312_v24 }
 0x80b   : > { %9326 = vmatprep.subr.bf16.mxu0 %v10338_v7 }
 0x80e   : > { %9327 = vmatpush3.bf16.msra.mxu0 %v6311_v39  ;;  %v10030_v39 = vld [vmem:[#allocation11 + $0x20] sm:$0xff]  }
 0x80f   : > { %9328 = vmatprep.subr.bf16.mxu0 %v10338_v7 }
 0x812   : > { %9329 = vmatpush3.bf16.msra.mxu0 %v12786_v54  ;;  %v10023_v54 = vld [vmem:[#allocation11 + $0x78] sm:$0xff]  }
 0x813   : > { %8919 = vmatprep.subr.bf16.mxu0 %v10023_v54  ;;  %v10050_v54 = vld [vmem:[#allocation11 + $0xd8] sm:$0xff]  }
 0x815   : > { %9331 = vmatmul.mubr.msk.bf16.vlgmr.msra.gmra.mxu0 %vm6340_vm3, %v10018_v51  ;;  %v10042_v51 = vld [vmem:[#allocation11 + $0xb0] sm:$0xff]  }
 0x816   : > { %9334 = vmatprep.mubr.msk.bf16.mxu0 %vm10339_vm1, %v10338_v7  ;;  %8920 = vmatpush3.bf16.msra.mxu0 %v10024_v28  ;;  %v10051_v28 = vld [vmem:[#allocation11 + $0x98] sm:$0xff]  }
 0x817   : > { %8921 = vmatprep.subr.bf16.mxu0 %v10025_v45  ;;  %v10053_v45 = vld [vmem:[#allocation11 + $0xd0] sm:$0xff]  }
 0x81a   : > { %8922 = vmatpush3.bf16.msra.mxu0 %v10026_v56  ;;  %v10054_v56 = vld [vmem:[#allocation11 + $0x90] sm:$0xff]  }
 0x81b   : > { %8923 = vmatprep.subr.bf16.mxu0 %v10027_v21  ;;  %v10056_v21 = vld [vmem:[#allocation11 + $0xc8] sm:$0xff]  }
 0x81d   : > { %9335 = vmatmul.mubr.msk.bf16.gmra.mxu0 %vm6340_vm3, %v10019_v25  ;;  %v10044_v25 = vld [vmem:[#allocation11 + $0xe8] sm:$0xff]  }
 0x81e   : > { %9338 = vmatprep.mubr.msk.bf16.mxu0 %vm10339_vm1, %v10338_v7  ;;  %8924 = vmatpush3.bf16.msra.mxu0 %v10028_v11  ;;  %v10057_v11 = vld [vmem:[#allocation11 + $0x88] sm:$0xff]  }
 0x81f   : > { %8925 = vmatprep.subr.bf16.mxu0 %v10029_v0  ;;  %v10059_v0 = vld [vmem:[#allocation11 + $0xc0] sm:$0xff]  }
 0x822   : > { %8926 = vmatpush3.bf16.msra.mxu0 %v10030_v39  ;;  %v10060_v39 = vld [vmem:[#allocation11 + $0x80] sm:$0xff]  }
 0x823   : > { %8927 = vmatprep.subr.bf16.mxu0 %v10031_v36 }
 0x825   : > { %9339 = vmatmul.mubr.msk.bf16.gmra.mxu0 %vm6340_vm3, %v10020_v41  ;;  %v10045_v41 = vld [vmem:[#allocation11 + $0xa8] sm:$0xff]  }
 0x826   : > { %9342 = vmatprep.mubr.msk.bf16.mxu0 %vm10339_vm1, %v10338_v7  ;;  %8928 = vmatpush3.bf16.msra.mxu0 %v10032_v3 }
 0x827   : > { %8929 = vmatprep.subr.bf16.mxu0 %v10033_v14 }
 0x82a   : > { %8930 = vmatpush3.bf16.msra.mxu0 %v10034_v20  ;;  %v10072_v20 = vld [vmem:[%s13036_s18 + $0x30] sm:$0xff]  }
 0x82b   : > { %8931 = vmatprep.subr.bf16.mxu0 %v10035_v19  ;;  %v10073_v19 = vld [vmem:[%s13036_s18 + $0x28] sm:$0xff]  }
 0x82d   : > { %9343 = vmatmul.mubr.msk.bf16.gmra.mxu0 %vm6340_vm3, %v10021_v48  ;;  %v10047_v48 = vld [vmem:[#allocation11 + $0xe0] sm:$0xff]  }
 0x82e   : > { %9346 = vmatprep.mubr.msk.bf16.mxu0 %vm10339_vm1, %v10338_v7  ;;  %8932 = vmatpush3.bf16.msra.mxu0 %v10036_v30  ;;  %v10074_v30 = vld [vmem:[%s13036_s18 + $0x20] sm:$0xff]  }
 0x82f   : > { %8933 = vmatprep.subr.bf16.mxu0 %v10039_v43 }
 0x832   : > { %8934 = vmatpush3.bf16.msra.mxu0 %v10040_v22 }
 0x833   : > { %9400 = vmatprep.subr.bf16.mxu0 %v10338_v7 }
 0x835   : > { %9347 = vmatmul.mubr.msk.bf16.gmra.mxu0 %vm6340_vm3, %v10022_v35  ;;  %v10048_v35 = vld [vmem:[#allocation11 + $0xa0] sm:$0xff]  }
 0x8d5   : > { %v6390_v50 = vpop.f32.mrf.mxu0 }
 0x8d7   : > { %v9332_v33 = vpop.f32.mrf.mxu0 }
 0x8d9   : > { %v6393_v13 = vpop.f32.mrf.mxu0 }
 0x8db   : > { %v9333_v37 = vpop.f32.mrf.mxu0 }
 0x8dc   : > { %v10043_v37 = vld [vmem:[#allocation11 + $0x138] sm:$0xff]  }
 0x8dd   : > { %v6398_v32 = vpop.f32.mrf.mxu0 }
 0x8df   : > { %v9336_v18 = vpop.f32.mrf.mxu0 }
 0x8e1   : > { %v6401_v52 = vpop.f32.mrf.mxu0 }
 0x8e3   : > { %v9337_v55 = vpop.f32.mrf.mxu0 }
 0x8e4   : > { %v10046_v55 = vld [vmem:[#allocation11 + $0x130] sm:$0xff]  }
 0x8e5   : > { %v6406_v47 = vpop.f32.mrf.mxu0 }
 0x8e7   : > { %v9340_v42 = vpop.f32.mrf.mxu0 }
 0x8e8   : > { %v10049_v42 = vld [vmem:[#allocation11 + $0x128] sm:$0xff]  }
 0x8e9   : > { %v6409_v6 = vpop.f32.mrf.mxu0 }
 0x8ea   : > { %v6429_v63 = vmax.f32 %v6390_v50, %v6409_v6 }
 0x8eb   : > { %v9341_v57 = vpop.f32.mrf.mxu0 }
 0x8ec   : > { %v6434_v61 = vmax.f32 %v6429_v63, 0.0  ;;  %v10052_v57 = vld [vmem:[#allocation11 + $0x120] sm:$0xff]  }
 0x8ed   : > { %v6414_v44 = vpop.f32.mrf.mxu0 }
 0x8ee   : > { %v6430_v29 = vmax.f32 %v6393_v13, %v6414_v44 }
 0x8ef   : > { %v9344_v49 = vpop.f32.mrf.mxu0 }
 0x8f0   : > { %v6435_v46 = vmax.f32 %v6430_v29, 0.0  ;;  %v10064_v29 = vld [vmem:[%s13034_s16 + $0x30] sm:$0xff]  }
 0x8f1   : > { %v6417_v23 = vpop.f32.mrf.mxu0 }
 0x8f2   : > { %v6431_v31 = vmax.f32 %v6398_v32, %v6417_v23  ;;  %v6439_v17 = vpack.c.bf16 %v6435_v46, %v6434_v61  ;;  %v10055_v23 = vld [vmem:[#allocation11 + $0x118] sm:$0xff]  }
 0x8f3   : > { %v9345_v12 = vpop.f32.mrf.mxu0  ;;  %v10066_v46 = vld [vmem:[%s13034_s16 + $0x20] sm:$0xff]  }
 0x8f4   : > { %v6436_v8 = vmax.f32 %v6431_v31, 0.0 }
 0x8f5   : > { %v6422_v24 = vpop.f32.mrf.mxu0 }
 0x8f6   : > { %v6432_v5 = vmax.f32 %v6401_v52, %v6422_v24  ;;  %v10058_v24 = vld [vmem:[#allocation11 + $0x110] sm:$0xff]  }
 0x8f7   : > { %v9348_v2 = vpop.f32.mrf.mxu0 }
 0x8f8   : > { %v6437_v27 = vmax.f32 %v6432_v5, 0.0  ;;  %v10063_v5 = vld [vmem:[%s13034_s16 + $0x38] sm:$0xff]  }
 0x8f9   : > { %v6425_v60 = vpop.f32.mrf.mxu0 }
 0x8fa   : > { %v6433_v40 = vmax.f32 %v6406_v47, %v6425_v60  ;;  %v6440_v62 = vpack.c.bf16 %v6437_v27, %v6436_v8 }
 0x8fb   : > { %v9349_v38 = vpop.f32.mrf.mxu0 }
 0x8fc   : > { %v6438_v58 = vmax.f32 %v6433_v40, 0.0  ;;  %v10061_v40 = vld [vmem:[#allocation11 + $0x108] sm:$0xff]  }
 0x8fe   : > { %v6441_v10 = vpack.c.bf16 %v6438_v58, %v6438_v58 }
 0x900   : > { %v6449_v34 = vsel %vm6447_vm4, %v6441_v10, 0  ;;  %v10062_v10 = vld [vmem:[#allocation11 + $0x100] sm:$0xff]  }
 0x901   : > { %9351 = vmatpush3.bf16.msra.mxu1 %v6449_v34 }
 0x902   : > { %9352 = vmatprep.subr.bf16.mxu1 %v10338_v7 }
 0x905   : > { %9353 = vmatpush3.bf16.msra.mxu1 %v6440_v62 }
 0x906   : > { %9354 = vmatprep.subr.bf16.mxu1 %v10338_v7 }
 0x909   : > { %9355 = vmatpush3.bf16.msra.mxu1 %v6439_v17 }
 0x90a   : > { %9360 = vmatprep.subr.bf16.mxu1 %v10338_v7 }
 0x90c   : > { %9357 = vmatmul.mubr.msk.bf16.vlgmr.msra.gmra.mxu1 %vm6443_vm5, %v6442_v15  ;;  %v10067_v15 = vld [vmem:[%s13034_s16 + $0x18] sm:$0xff]  }
 0x90d   : > { %9361 = vmatpush3.bf16.msra.mxu1 %v6449_v34  ;;  %9366 = vmatprep.mubr.msk.bf16.mxu1 %vm10339_vm1, %v10338_v7 }
 0x90e   : > { %9362 = vmatprep.subr.bf16.mxu1 %v10338_v7 }
 0x911   : > { %9363 = vmatpush3.bf16.msra.mxu1 %v6440_v62 }
 0x912   : > { %9364 = vmatprep.subr.bf16.mxu1 %v10338_v7 }
 0x915   : > { %9365 = vmatpush3.bf16.msra.mxu1 %v6439_v17 }
 0x916   : > { %9370 = vmatprep.subr.bf16.mxu1 %v10338_v7 }
 0x918   : > { %9367 = vmatmul.mubr.msk.bf16.vlgmr.msra.gmra.mxu1 %vm6443_vm5, %v8104_v53  ;;  %v10068_v53 = vld [vmem:[%s13034_s16 + $0x10] sm:$0xff]  }
 0x919   : > { %9371 = vmatpush3.bf16.msra.mxu1 %v6449_v34  ;;  %9376 = vmatprep.mubr.msk.bf16.mxu1 %vm10339_vm1, %v10338_v7 }
 0x91a   : > { %9372 = vmatprep.subr.bf16.mxu1 %v10338_v7 }
 0x91d   : > { %9373 = vmatpush3.bf16.msra.mxu1 %v6440_v62 }
 0x91e   : > { %9374 = vmatprep.subr.bf16.mxu1 %v10338_v7 }
 0x921   : > { %9375 = vmatpush3.bf16.msra.mxu1 %v6439_v17 }
 0x922   : > { %9380 = vmatprep.subr.bf16.mxu1 %v10338_v7 }
 0x924   : > { %9377 = vmatmul.mubr.msk.bf16.vlgmr.msra.gmra.mxu1 %vm6443_vm5, %v8106_v16  ;;  %v10069_v16 = vld [vmem:[%s13034_s16 + $0x8] sm:$0xff]  }
 0x925   : > { %9381 = vmatpush3.bf16.msra.mxu1 %v6449_v34  ;;  %9386 = vmatprep.mubr.msk.bf16.mxu1 %vm10339_vm1, %v10338_v7 }
 0x926   : > { %9382 = vmatprep.subr.bf16.mxu1 %v10338_v7 }
 0x929   : > { %9383 = vmatpush3.bf16.msra.mxu1 %v6440_v62 }
 0x92a   : > { %9384 = vmatprep.subr.bf16.mxu1 %v10338_v7 }
 0x92d   : > { %9385 = vmatpush3.bf16.msra.mxu1 %v6439_v17 }
 0x92e   : > { %9390 = vmatprep.subr.bf16.mxu1 %v10338_v7 }
 0x930   : > { %9387 = vmatmul.mubr.msk.bf16.vlgmr.msra.gmra.mxu1 %vm6443_vm5, %v8108_v9  ;;  %v10070_v9 = vld [vmem:[%s13034_s16] sm:$0xff]  }
 0x931   : > { %9391 = vmatpush3.bf16.msra.mxu1 %v6449_v34  ;;  %9396 = vmatprep.mubr.msk.bf16.mxu1 %vm10339_vm1, %v10338_v7  ;;  %v10065_v34 = vld [vmem:[%s13034_s16 + $0x28] sm:$0xff]  }
 0x932   : > { %9392 = vmatprep.subr.bf16.mxu1 %v10338_v7 }
 0x935   : > { %9393 = vmatpush3.bf16.msra.mxu1 %v6440_v62 }
 0x936   : > { %9394 = vmatprep.subr.bf16.mxu1 %v10338_v7 }
 0x939   : > { %9395 = vmatpush3.bf16.msra.mxu1 %v6439_v17 }
 0x93a   : > { %8941 = vmatprep.subr.bf16.mxu1 %v10037_v4  ;;  %v10075_v4 = vld [vmem:[%s13036_s18 + $0x18] sm:$0xff]  }
 0x93c   : > { %9397 = vmatmul.mubr.msk.bf16.vlgmr.msra.gmra.mxu1 %vm6443_vm5, %v8110_v26  ;;  %v10071_v26 = vld [vmem:[%s13036_s18 + $0x38] sm:$0xff]  }
 0x93d   : > { %8942 = vmatpush3.bf16.msra.mxu1 %v10038_v59  ;;  %v10076_v59 = vld [vmem:[%s13036_s18 + $0x10] sm:$0xff]  }
 0x93e   : > { %8943 = vmatprep.subr.bf16.mxu1 %v10041_v1 }
 0x941   : > { %8944 = vmatpush3.bf16.msra.mxu1 %v10042_v51 }
 0x942   : > { %8945 = vmatprep.subr.bf16.mxu1 %v10044_v25 }
 0x945   : > { %8946 = vmatpush3.bf16.msra.mxu1 %v10045_v41 }
 0x946   : > { %8947 = vmatprep.subr.bf16.mxu1 %v10047_v48 }
 0x949   : > { %8948 = vmatpush3.bf16.msra.mxu1 %v10048_v35 }
 0x94a   : > { %8949 = vmatprep.subr.bf16.mxu1 %v10050_v54  ;;  %v8112_v54 = vld [vmem:[%s13033_s15] ss:$0 sm:$0xff] }
 0x94d   : > { %8950 = vmatpush3.bf16.msra.mxu1 %v10051_v28 }
 0x94e   : > { %8951 = vmatprep.subr.bf16.mxu1 %v10053_v45 }
 0x951   : > { %8952 = vmatpush3.bf16.msra.mxu1 %v10054_v56 }
 0x952   : > { %8953 = vmatprep.subr.bf16.mxu1 %v10056_v21 }
 0x955   : > { %8954 = vmatpush3.bf16.msra.mxu1 %v10057_v11 }
 0x956   : > { %8955 = vmatprep.subr.bf16.mxu1 %v10059_v0 }
 0x959   : > { %8956 = vmatpush3.bf16.msra.mxu1 %v10060_v39 }
 0x95a   : > { %9420 = vmatprep.subr.bf16.mxu1 %v10338_v7 }
 0x9cc   : > { %v6485_v36 = vpop.f32.mrf.mxu1 }
 0x9cd   : > { %v6671_v32 = vpack.c.bf16 %v6485_v36, %v6485_v36 }
 0x9ce   : > { %v9358_v3 = vpop.f32.mrf.mxu1 }
 0x9d0   : > { %v6488_v14 = vpop.f32.mrf.mxu1 }
 0x9d2   : > { %v9359_v50 = vpop.f32.mrf.mxu1 }
 0x9d8   : > { %v6530_v33 = vpop.f32.mrf.mxu1 }
 0x9d9   : > { %v6672_v13 = vpack.c.bf16 %v6530_v33, %v6530_v33  ;;  %v10077_v33 = vld [vmem:[%s13036_s18 + $0x8] sm:$0xff]  }
 0x9da   : > { %v9368_v18 = vpop.f32.mrf.mxu1 }
 0x9db   : > { %7035 = vmatprep.mubr.bf16.mxu0 %v6672_v13  ;;  %v10078_v13 = vld [vmem:[%s13036_s18] sm:$0xff]  }
 0x9dc   : > { %7036 = vmatmul.mubr.bf16.vlgmr.msra.gmra.mxu0 %v6671_v32  ;;  %v6533_v52 = vpop.f32.mrf.mxu1 }
 0x9dd   : > { %9401 = vmatpush3.bf16.msra.mxu0 %v10043_v37  ;;  %9416 = vmatprep.mubr.msk.bf16.mxu0 %vm10339_vm1, %v10338_v7  ;;  %v8153_v37 = vld [vmem:[%s13035_s17] ss:$0 sm:$0xff] }
 0x9de   : > { %9402 = vmatprep.subr.bf16.mxu0 %v10338_v7  ;;  %v9369_v47 = vpop.f32.mrf.mxu1 }
 0x9e1   : > { %9403 = vmatpush3.bf16.msra.mxu0 %v10046_v55 }
 0x9e2   : > { %9404 = vmatprep.subr.bf16.mxu0 %v10338_v7 }
 0x9e4   : > { %v6575_v6 = vpop.f32.mrf.mxu1 }
 0x9e5   : > { %9405 = vmatpush3.bf16.msra.mxu0 %v10049_v42  ;;  %v6673_v38 = vpack.c.bf16 %v6575_v6, %v6575_v6 }
 0x9e6   : > { %9406 = vmatprep.subr.bf16.mxu0 %v10338_v7  ;;  %v9378_v44 = vpop.f32.mrf.mxu1 }
 0x9e8   : > { %v6578_v49 = vpop.f32.mrf.mxu1 }
 0x9e9   : > { %9407 = vmatpush3.bf16.msra.mxu0 %v10052_v57 }
 0x9ea   : > { %9408 = vmatprep.subr.bf16.mxu0 %v10338_v7  ;;  %v9379_v12 = vpop.f32.mrf.mxu1 }
 0x9ed   : > { %9409 = vmatpush3.bf16.msra.mxu0 %v10055_v23 }
 0x9ee   : > { %9410 = vmatprep.subr.bf16.mxu0 %v10338_v7 }
 0x9f0   : > { %v6620_v2 = vpop.f32.mrf.mxu1 }
 0x9f1   : > { %v6674_v60 = vpack.c.bf16 %v6620_v2, %v6620_v2  ;;  %9411 = vmatpush3.bf16.msra.mxu0 %v10058_v24 }
 0x9f2   : > { %v9388_v58 = vpop.f32.mrf.mxu1  ;;  %9412 = vmatprep.subr.bf16.mxu0 %v10338_v7 }
 0x9f3   : > { %7075 = vmatprep.mubr.bf16.mxu1 %v6674_v60 }
 0x9f4   : > { %v6623_v31 = vpop.f32.mrf.mxu1  ;;  %7076 = vmatmul.mubr.bf16.vlgmr.msra.gmra.mxu1 %v6673_v38 }
 0x9f5   : > { %9413 = vmatpush3.bf16.msra.mxu0 %v10061_v40  ;;  %9421 = vmatpush3.bf16.msra.mxu1 %v10063_v5 }
 0x9f6   : > { %v9389_v27 = vpop.f32.mrf.mxu1  ;;  %9414 = vmatprep.subr.bf16.mxu0 %v10338_v7  ;;  %9422 = vmatprep.subr.bf16.mxu1 %v10338_v7 }
 0x9f7   : > { %9436 = vmatprep.mubr.msk.bf16.mxu1 %vm10339_vm1, %v10338_v7 }
 0x9f9   : > { %9415 = vmatpush3.bf16.msra.mxu0 %v10062_v10  ;;  %9423 = vmatpush3.bf16.msra.mxu1 %v10064_v29 }
 0x9fa   : > { %9424 = vmatprep.subr.bf16.mxu1 %v10338_v7  ;;  %9440 = vmatprep.subr.bf16.mxu0 %v10338_v7 }
 0x9fc   : > { %v6665_v63 = vpop.f32.mrf.mxu1 }
 0x9fd   : > { %v6675_v8 = vpack.c.bf16 %v6665_v63, %v6665_v63  ;;  %9425 = vmatpush3.bf16.msra.mxu1 %v10065_v34 }
 0x9fe   : > { %v9398_v62 = vpop.f32.mrf.mxu1  ;;  %9426 = vmatprep.subr.bf16.mxu1 %v10338_v7 }
 0x9ff   : > { %9417 = vmatmul.mubr.bf16.vlgmr.msra.gmra.mxu0 %v6675_v8 }
 0xa00   : > { %v6668_v61 = vpop.f32.mrf.mxu1  ;;  %9456 = vmatprep.mubr.msk.bf16.mxu0 %vm10339_vm1, %v10338_v7  ;;  %9441 = vmatpush3.bf16.msra.mxu0 %v10071_v26 }
 0xa01   : > { %9427 = vmatpush3.bf16.msra.mxu1 %v10066_v46  ;;  %9442 = vmatprep.subr.bf16.mxu0 %v10338_v7 }
 0xa02   : > { %v9399_v17 = vpop.f32.mrf.mxu1  ;;  %9428 = vmatprep.subr.bf16.mxu1 %v10338_v7 }
 0xa04   : > { %9443 = vmatpush3.bf16.msra.mxu0 %v10072_v20 }
 0xa05   : > { %9429 = vmatpush3.bf16.msra.mxu1 %v10067_v15  ;;  %9444 = vmatprep.subr.bf16.mxu0 %v10338_v7 }
 0xa06   : > { %9430 = vmatprep.subr.bf16.mxu1 %v10338_v7 }
 0xa08   : > { %9445 = vmatpush3.bf16.msra.mxu0 %v10073_v19 }
 0xa09   : > { %9431 = vmatpush3.bf16.msra.mxu1 %v10068_v53  ;;  %9446 = vmatprep.subr.bf16.mxu0 %v10338_v7 }
 0xa0a   : > { %9432 = vmatprep.subr.bf16.mxu1 %v10338_v7 }
 0xa0c   : > { %9447 = vmatpush3.bf16.msra.mxu0 %v10074_v30 }
 0xa0d   : > { %9433 = vmatpush3.bf16.msra.mxu1 %v10069_v16  ;;  %9448 = vmatprep.subr.bf16.mxu0 %v10338_v7 }
 0xa0e   : > { %9434 = vmatprep.subr.bf16.mxu1 %v10338_v7 }
 0xa10   : > { %9449 = vmatpush3.bf16.msra.mxu0 %v10075_v4 }
 0xa11   : > { %9435 = vmatpush3.bf16.msra.mxu1 %v10070_v9  ;;  %9450 = vmatprep.subr.bf16.mxu0 %v10338_v7 }
 0xa14   : > { %9451 = vmatpush3.bf16.msra.mxu0 %v10076_v59 }
 0xa15   : > { %9452 = vmatprep.subr.bf16.mxu0 %v10338_v7 }
 0xa18   : > { %9453 = vmatpush3.bf16.msra.mxu0 %v10077_v33 }
 0xa19   : > { %9454 = vmatprep.subr.bf16.mxu0 %v10338_v7  ;;  %v8162_v7 = vld [vmem:[%s13291_s25] ss:$0 sm:$0xff] }
 0xa1c   : > { %9455 = vmatpush3.bf16.msra.mxu0 %v10078_v13 }
 0xa9c   : > { %v8935_v43 = vpop.f32.mrf.mxu0 }
 0xa9e   : > { %v8936_v1 = vpop.f32.mrf.mxu0 }
 0xa9f   : > { %v8937_v48 = vadd.f32 %v8936_v1, %v8935_v43 }
 0xaa0   : > { %v8938_v22 = vpop.f32.mrf.mxu0 }
 0xaa1   : > { %v7038_v56 = vadd.f32 %v8937_v48, %v8112_v54 }
 0xaa2   : > { %v8939_v51 = vpop.f32.mrf.mxu0 }
 0xab4   : > { %v8957_v25 = vpop.f32.mrf.mxu1 }
 0xab6   : > { %v8958_v41 = vpop.f32.mrf.mxu1 }
 0xab7   : > { %v8959_v28 = vadd.f32 %v8958_v41, %v8957_v25 }
 0xab8   : > { %v8960_v35 = vpop.f32.mrf.mxu1 }
 0xab9   : > { %v7078_v21 = vadd.f32 %v8959_v28, %v7038_v56 }
 0xaba   : > { %v8961_v45 = vpop.f32.mrf.mxu1 }
 0xabf   : > { %v7117_v11 = vpop.f32.mrf.mxu0 }
 0xac0   : > { %v7118_v0 = vadd.f32 %v7117_v11, %v7078_v21 }
 0xac1   : > { %v9418_v39 = vpop.f32.mrf.mxu0 }
 0xac2   : > { %v7123_v36 = vmax.f32 %v7118_v0, 0.0 }
 0xac3   : > { %v7120_v3 = vpop.f32.mrf.mxu0 }
 0xac4   : > { %v7140_v14 = vpack.c.bf16 %v7123_v36, %v7123_v36 }
 0xac5   : > { %v9419_v50 = vpop.f32.mrf.mxu0 }
 0xac6   : > { %9437 = vmatmul.mubr.bf16.vlgmr.msra.gmra.mxu1 %v7140_v14 }
 0xb86   : > { %v7230_v32 = vpop.f32.mrf.mxu1 }
 0xb87   : > { %v7231_v18 = vadd.f32 %v8153_v37, %v7230_v32 }
 0xb88   : > { %v9438_v52 = vpop.f32.mrf.mxu1 }
 0xb89   : > { %v7236_v55 = vmax.f32 %v7231_v18, 0.0 }
 0xb8a   : > { %v7233_v47 = vpop.f32.mrf.mxu1 }
 0xb8b   : > { %v7253_v42 = vpack.c.bf16 %v7236_v55, %v7236_v55 }
 0xb8c   : > { %v9439_v6 = vpop.f32.mrf.mxu1 }
 0xb8d   : > { %9457 = vmatmul.mubr.bf16.vlgmr.msra.gmra.mxu0 %v7253_v42 }
 0xc4d   : > { %v7343_v57 = vpop.f32.mrf.mxu0 }
 0xc4e   : > { %v7344_v44 = vadd.f32 %v8162_v7, %v7343_v57 }
 0xc4f   : > { %v9458_v49 = vpop.f32.mrf.mxu0 }
 0xc50   : > { %7349 = vst [vmem:[%s711_s20] sm:$0xff] %v7344_v44 }
 0xc51   : > { %v7346_v23 = vpop.f32.mrf.mxu0 }
 0xc52   : > { %10262 = shalt.err (!%p10259_p3)
}
 0xc53   : > { %s10263_s25 = scalar_lea.hbm %s12977_s3, 128  ;;  %s10267_s20 = scalar_lea.hbm %s13292_s26, 256 }
 0xc54   : > { %p10264_p2 = scmp.ne.s32.totalorder %s12977_s3, %s10263_s25  ;;  %p10268_p9 = scmp.lt.s32.totalorder %s12977_s3, %s13292_s26 }
 0xc55   : > { %p10269_p4 = scmp.lt.s32.totalorder %s10267_s20, %s10263_s25 }
 0xc56   : > { %p10265_p12 = pnand %p10264_p2, %p10484_p5 }
 0xc57   : > { %p10270_p7 = por %p10269_p4, %p10268_p9 }
 0xc58   : > { %p10266_p10 = pneg %p10265_p12 }
 0xc5a   : > { %p10271_p8 = pnand %p10270_p7, %p10266_p10 }
 0xc5c   : > { %10274 = shalt.err (!%p10271_p8)
}
 0xc5d   : > { %9484 = dma.vmem_to_hbm [thread:$0]  (%p10484_p5), %s12979_s21, 128, %s12977_s3, %s7351_s1   ;;  %v9459_v12 = vpop.f32.mrf.mxu0 }
 0xc5e PF: > { %s13293_s28 = sld [smem:[#allocation21_spill]] }
 0xc5f   : > { %s13294_s2 = sld [smem:[#allocation19_spill]] }
 0xc64   : > { %p9521_p0 = scmp.ge.s32.totalorder %s13293_s28, 2 }
 0xc65   : > { %s7376_s30 = sand.u32 1, %s13294_s2  }
 0xc66   : > { %p9506_p13 = pnand %p9521_p0, %p10488_p6  ;;  %s7377_s19 = scalar_lea.sflag [#allocation4], %s7376_s30 }
 0xc68   : > { %p9507_p11 = pneg %p9506_p13 }
 0xc6a   : > { %10308 = dma.done.wait (%p9507_p11), %s7377_s19, 128  }
 0xc6b   : > { %10310 = vsyncadd (%p9507_p11), %s7377_s19, 4294967168  ;;  %s13296_s24 = sld [smem:[#allocation22_spill]]  ;;  %s13299_s1 = smov %s10317_s22 }
 0xc6c   : > { %s13297_s25 = sld [smem:[#allocation20_spill]] }
 0xc6d   : > { %s13298_s23 = sld [smem:[#allocation23_spill]] }
 0xc71   : > { %p34_p1 = scmp.ge.s32.totalorder %s13296_s24, 4  }
 0xc72   : > { %s13300_s22 = smov %s13297_s25 }
 0xc73   :  { %36 = sbr.rel (!%p34_p1) target bundleno = 16 (0x10), region = 172 }
 0xc78   :  { %7382 = vsyncpa [#allocation3], 1 }
 0xc79   :  { %7384 = vsyncpa [#allocation3 + $0x1], 1 }
 0xc7a   :  { %7385 = vsyncpa [#allocation6], 1 }
 0xc7b   :  { %7386 = vsyncpa [#allocation9], 1 }
 0xc7c   :  { %7387 = vsyncpa [#allocation12], 1 }
 0xc7d   :  { %7388 = vsyncpa [#allocation4], 1 }
 0xc7e   :  { %7390 = vsyncpa [#allocation4 + $0x1], 1 }

</bundles_post_ra>
